<compile_context>
chip_gen: v6e
topology: v6e:2x2x1
jax: 0.10.0
libtpu: 0.0.40
codegen_flags: <defaults>
</compile_context>

<pallas_src>
import jax
import jax.numpy as jnp
from jax.experimental import pallas as pl
from jax.experimental.pallas import tpu as pltpu

C = 64            # fixed by the module definition
LEAKY_SLOPE = 0.2
EPS = 1e-5        # PyTorch InstanceNorm2d default


def _residual_block_kernel(x_ref, wk1_ref, wk2_ref, g1_ref, b1_ref,
                           g2_ref, b2_ref, out_ref, col_ref):
    # x_ref   : (1, H, W, C)     f32, one sample (NHWC)
    # wk*_ref : (3, 3*C, C)      bf16, per-ky weights, K axis = [kx=0 | kx=1 | kx=2] x Cin
    # g*/b*   : (1, C)           f32, InstanceNorm affine params
    # out_ref : (1, H, W*C)      f32, lane-dense output block
    # col_ref : (H+2, W, 3*C)    bf16 scratch: col[r, w, kx*C:(kx+1)*C] = x_pad[r, w+kx, :]
    _, H, W, Cc = x_ref.shape
    HW = H * W
    inv_n = 1.0 / float(HW)

    # --- zero only the padding cells that are never overwritten (cheap, per sample) ---
    col_ref[0] = jnp.zeros((W, 3 * Cc), jnp.bfloat16)                       # top pad row
    col_ref[H + 1] = jnp.zeros((W, 3 * Cc), jnp.bfloat16)                   # bottom pad row
    col_ref[1:H + 1, 0:1, 0:Cc] = jnp.zeros((H, 1, Cc), jnp.bfloat16)       # left pad (kx=0)
    col_ref[1:H + 1, W - 1:W, 2 * Cc:3 * Cc] = jnp.zeros((H, 1, Cc), jnp.bfloat16)  # right pad (kx=2)

    def fill_col(act):
        # act: (H, W, C) bf16 (unpadded activation). Three shifted writes per conv.
        col_ref[1:H + 1, 1:W, 0:Cc] = act[:, 0:W - 1, :]             # kx = 0
        col_ref[1:H + 1, :, Cc:2 * Cc] = act                          # kx = 1
        col_ref[1:H + 1, 0:W - 1, 2 * Cc:3 * Cc] = act[:, 1:W, :]     # kx = 2

    def conv3x3(wk_ref):
        # One K=3*C matmul per ky row; f32 accumulation on the MXU.
        acc = jnp.dot(col_ref[0:H, :, :].reshape(HW, 3 * Cc), wk_ref[0],
                      preferred_element_type=jnp.float32)
        acc += jnp.dot(col_ref[1:H + 1, :, :].reshape(HW, 3 * Cc), wk_ref[1],
                       preferred_element_type=jnp.float32)
        acc += jnp.dot(col_ref[2:H + 2, :, :].reshape(HW, 3 * Cc), wk_ref[2],
                       preferred_element_type=jnp.float32)
        return acc                                                    # (H*W, C) f32

    def instance_norm(y, g_ref, b_ref):
        # One-pass per-channel stats over the spatial axis (biased variance, like PyTorch).
        s1 = jnp.sum(y, axis=0, keepdims=True)
        s2 = jnp.sum(y * y, axis=0, keepdims=True)
        mean = s1 * inv_n
        var = s2 * inv_n - mean * mean
        scale = g_ref[...] * jax.lax.rsqrt(var + EPS)
        shift = b_ref[...] - mean * scale
        return y * scale + shift

    # ---- conv1 -> IN1 -> LeakyReLU(0.2) ----
    fill_col(x_ref[0].astype(jnp.bfloat16))
    y = conv3x3(wk1_ref)
    y = instance_norm(y, g1_ref, b1_ref)
    y = jnp.where(y > 0, y, LEAKY_SLOPE * y)

    # ---- conv2 -> IN2 ----
    fill_col(y.astype(jnp.bfloat16).reshape(H, W, Cc))
    z = conv3x3(wk2_ref)
    z = instance_norm(z, g2_ref, b2_ref)

    # ---- residual add (x re-read from its ref), lane-dense store ----
    res = z.reshape(H, W, Cc) + x_ref[0]
    out_ref[0] = res.reshape(H, W * Cc).astype(out_ref.dtype)


def residual_block(x_nchw, w1_oihw, w2_oihw, g1, b1, g2, b2):
    """PyTorch-semantics _Residual_Block forward. Input/output are NCHW f32."""
    x = jnp.transpose(x_nchw, (0, 2, 3, 1)).astype(jnp.float32)      # NCHW -> NHWC
    N, H, W, Cc = x.shape

    def pack_w(w):
        # OIHW -> (ky, kx, Cin, Cout) -> (3, 3*Cin, Cout), bf16 for the MXU.
        return jnp.transpose(w, (2, 3, 1, 0)).reshape(3, 3 * Cc, Cc).astype(jnp.bfloat16)

    wk1, wk2 = pack_w(w1_oihw), pack_w(w2_oihw)
    g1r, b1r, g2r, b2r = (v.reshape(1, Cc).astype(jnp.float32)
                          for v in (g1, b1, g2, b2))

    out = pl.pallas_call(
        _residual_block_kernel,
        out_shape=jax.ShapeDtypeStruct((N, H, W * Cc), jnp.float32),
        grid_spec=pltpu.PrefetchScalarGridSpec(
            num_scalar_prefetch=0,
            grid=(N,),
            in_specs=[
                pl.BlockSpec((1, H, W, Cc), lambda n: (n, 0, 0, 0)),
                pl.BlockSpec((3, 3 * Cc, Cc), lambda n: (0, 0, 0)),   # grid-invariant
                pl.BlockSpec((3, 3 * Cc, Cc), lambda n: (0, 0, 0)),   # grid-invariant
                pl.BlockSpec((1, Cc), lambda n: (0, 0)),
                pl.BlockSpec((1, Cc), lambda n: (0, 0)),
                pl.BlockSpec((1, Cc), lambda n: (0, 0)),
                pl.BlockSpec((1, Cc), lambda n: (0, 0)),
            ],
            out_specs=pl.BlockSpec((1, H, W * Cc), lambda n: (n, 0, 0)),
            scratch_shapes=[pltpu.VMEM((H + 2, W, 3 * Cc), jnp.bfloat16)],
        ),
        compiler_params=pltpu.CompilerParams(
            dimension_semantics=("parallel",),
            vmem_limit_bytes=64 * 1024 * 1024),
    )(x, wk1, wk2, g1r, b1r, g2r, b2r)

    out = out.reshape(N, H, W, Cc)
    return jnp.transpose(out, (0, 3, 1, 2))                          # NHWC -> NCHW


def _reference_nhwc(x, w1_hwio, w2_hwio, g1, b1, g2, b2):
    """Plain-JAX f32 reference (PyTorch semantics), used only for the correctness check."""
    def conv(h, w):
        return jax.lax.conv_general_dilated(
            h, w, window_strides=(1, 1), padding="SAME",
            dimension_numbers=("NHWC", "HWIO", "NHWC"))

    def inorm(h, g, b):
        mean = jnp.mean(h, axis=(1, 2), keepdims=True)
        var = jnp.mean((h - mean) ** 2, axis=(1, 2), keepdims=True)
        return (h - mean) * jax.lax.rsqrt(var + EPS) * g + b

    y = conv(x, w1_hwio)
    y = inorm(y, g1, b1)
    y = jnp.where(y > 0, y, LEAKY_SLOPE * y)
    z = conv(y, w2_hwio)
    z = inorm(z, g2, b2)
    return z + x


if __name__ == "__main__":
    key = jax.random.PRNGKey(0)
    kx, k1, k2, kg1, kb1, kg2, kb2 = jax.random.split(key, 7)

    N, H, W = 2, 16, 16                       # small batch / spatial; C fixed at 64
    x = jax.random.normal(kx, (N, C, H, W), jnp.float32)

    fan_in = C * 9
    w1 = jax.random.normal(k1, (C, C, 3, 3), jnp.float32) / jnp.sqrt(fan_in)
    w2 = jax.random.normal(k2, (C, C, 3, 3), jnp.float32) / jnp.sqrt(fan_in)
    g1 = 1.0 + 0.1 * jax.random.normal(kg1, (C,), jnp.float32)
    b1 = 0.1 * jax.random.normal(kb1, (C,), jnp.float32)
    g2 = 1.0 + 0.1 * jax.random.normal(kg2, (C,), jnp.float32)
    b2 = 0.1 * jax.random.normal(kb2, (C,), jnp.float32)

    out = jax.block_until_ready(residual_block(x, w1, w2, g1, b1, g2, b2))
    assert out.shape == (N, C, H, W)

    # correctness check against a plain-JAX f32 reference
    # (kernel uses bf16 conv operands with f32 accumulation -> slightly looser tolerance)
    x_nhwc = jnp.transpose(x, (0, 2, 3, 1))
    ref = _reference_nhwc(x_nhwc,
                          jnp.transpose(w1, (2, 3, 1, 0)),
                          jnp.transpose(w2, (2, 3, 1, 0)),
                          g1, b1, g2, b2)
    ref = jnp.transpose(ref, (0, 3, 1, 2))
    max_err = float(jnp.max(jnp.abs(out - ref)))
    mean_err = float(jnp.mean(jnp.abs(out - ref)))
    assert max_err < 4e-2, f"max abs error {max_err}"
    assert mean_err < 5e-3, f"mean abs error {mean_err}"

    print("KERNEL_OK")
</pallas_src>

<mosaic_0001>
module attributes {stable_mosaic.version = 11 : i64} {
  func.func @_residual_block_kernel(%arg0: i32, %arg1: memref<1x16x16x64xf32, #tpu.memory_space<vmem>>, %arg2: memref<3x192x64xbf16, #tpu.memory_space<vmem>>, %arg3: memref<3x192x64xbf16, #tpu.memory_space<vmem>>, %arg4: memref<1x64xf32, #tpu.memory_space<vmem>>, %arg5: memref<1x64xf32, #tpu.memory_space<vmem>>, %arg6: memref<1x64xf32, #tpu.memory_space<vmem>>, %arg7: memref<1x64xf32, #tpu.memory_space<vmem>>, %arg8: memref<1x16x1024xf32, #tpu.memory_space<vmem>>, %arg9: memref<18x16x192xbf16, #tpu.memory_space<vmem>>) attributes {dimension_semantics = [#tpu.dimension_semantics<parallel>], iteration_bounds = array<i64: 2>, scalar_prefetch = 0 : i64, scratch_operands = 1 : i64, tpu.core_type = #tpu.core_type<tc>, window_params = [{transform_indices = @transform_0, window_bounds = array<i64: 1, 16, 16, 64>}, {pipeline_mode = #tpu.pipeline_mode<synchronous>, transform_indices = @transform_1, window_bounds = array<i64: 3, 192, 64>}, {pipeline_mode = #tpu.pipeline_mode<synchronous>, transform_indices = @transform_2, window_bounds = array<i64: 3, 192, 64>}, {pipeline_mode = #tpu.pipeline_mode<synchronous>, transform_indices = @transform_3, window_bounds = array<i64: 1, 64>}, {pipeline_mode = #tpu.pipeline_mode<synchronous>, transform_indices = @transform_4, window_bounds = array<i64: 1, 64>}, {pipeline_mode = #tpu.pipeline_mode<synchronous>, transform_indices = @transform_5, window_bounds = array<i64: 1, 64>}, {pipeline_mode = #tpu.pipeline_mode<synchronous>, transform_indices = @transform_6, window_bounds = array<i64: 1, 64>}, {transform_indices = @transform_7, window_bounds = array<i64: 1, 16, 1024>}]} {
    %cst = arith.constant 0.000000e+00 : bf16
    %0 = vector.broadcast %cst : bf16 to vector<16x192xbf16>
    %c0 = arith.constant 0 : index
    %c0_0 = arith.constant 0 : index
    %c0_1 = arith.constant 0 : index
    %1 = vector.load %arg9[%c0, %c0_0, %c0_1] : memref<18x16x192xbf16, #tpu.memory_space<vmem>>, vector<1x16x192xbf16>
    %2 = vector.shape_cast %1 : vector<1x16x192xbf16> to vector<16x192xbf16>
    %3 = vector.shape_cast %0 : vector<16x192xbf16> to vector<1x16x192xbf16>
    tpu.vector_store %arg9[%c0, %c0_0, %c0_1], %3 {strides = array<i32>} : memref<18x16x192xbf16, #tpu.memory_space<vmem>>, vector<1x16x192xbf16>,
    %cst_2 = arith.constant 0.000000e+00 : bf16
    %4 = vector.broadcast %cst_2 : bf16 to vector<16x192xbf16>
    %c17 = arith.constant 17 : index
    %c0_3 = arith.constant 0 : index
    %c0_4 = arith.constant 0 : index
    %5 = vector.load %arg9[%c17, %c0_3, %c0_4] : memref<18x16x192xbf16, #tpu.memory_space<vmem>>, vector<1x16x192xbf16>
    %6 = vector.shape_cast %5 : vector<1x16x192xbf16> to vector<16x192xbf16>
    %7 = vector.shape_cast %4 : vector<16x192xbf16> to vector<1x16x192xbf16>
    tpu.vector_store %arg9[%c17, %c0_3, %c0_4], %7 {strides = array<i32>} : memref<18x16x192xbf16, #tpu.memory_space<vmem>>, vector<1x16x192xbf16>,
    %cst_5 = arith.constant 0.000000e+00 : bf16
    %8 = vector.broadcast %cst_5 : bf16 to vector<16x1x64xbf16>
    %c1 = arith.constant 1 : index
    %c0_6 = arith.constant 0 : index
    %c0_7 = arith.constant 0 : index
    %9 = vector.load %arg9[%c1, %c0_6, %c0_7] : memref<18x16x192xbf16, #tpu.memory_space<vmem>>, vector<16x1x64xbf16>
    tpu.vector_store %arg9[%c1, %c0_6, %c0_7], %8 {strides = array<i32>} : memref<18x16x192xbf16, #tpu.memory_space<vmem>>, vector<16x1x64xbf16>,
    %cst_8 = arith.constant 0.000000e+00 : bf16
    %10 = vector.broadcast %cst_8 : bf16 to vector<16x1x64xbf16>
    %c1_9 = arith.constant 1 : index
    %c15 = arith.constant 15 : index
    %c128 = arith.constant 128 : index
    %11 = vector.load %arg9[%c1_9, %c15, %c128] : memref<18x16x192xbf16, #tpu.memory_space<vmem>>, vector<16x1x64xbf16>
    tpu.vector_store %arg9[%c1_9, %c15, %c128], %10 {strides = array<i32>} : memref<18x16x192xbf16, #tpu.memory_space<vmem>>, vector<16x1x64xbf16>,
    %c0_10 = arith.constant 0 : index
    %c0_11 = arith.constant 0 : index
    %c0_12 = arith.constant 0 : index
    %c0_13 = arith.constant 0 : index
    %12 = vector.load %arg1[%c0_10, %c0_11, %c0_12, %c0_13] : memref<1x16x16x64xf32, #tpu.memory_space<vmem>>, vector<1x16x16x64xf32>
    %13 = vector.shape_cast %12 : vector<1x16x16x64xf32> to vector<16x16x64xf32>
    %14 = arith.truncf %13 : vector<16x16x64xf32> to vector<16x16x64xbf16>
    %15 = vector.extract_strided_slice %14 {offsets = [0, 0, 0], sizes = [16, 15, 64], strides = [1, 1, 1]} : vector<16x16x64xbf16> to vector<16x15x64xbf16>
    %c1_14 = arith.constant 1 : index
    %c1_15 = arith.constant 1 : index
    %c0_16 = arith.constant 0 : index
    %16 = vector.load %arg9[%c1_14, %c1_15, %c0_16] : memref<18x16x192xbf16, #tpu.memory_space<vmem>>, vector<16x15x64xbf16>
    tpu.vector_store %arg9[%c1_14, %c1_15, %c0_16], %15 {strides = array<i32>} : memref<18x16x192xbf16, #tpu.memory_space<vmem>>, vector<16x15x64xbf16>,
    %c1_17 = arith.constant 1 : index
    %c0_18 = arith.constant 0 : index
    %c64 = arith.constant 64 : index
    %17 = vector.load %arg9[%c1_17, %c0_18, %c64] : memref<18x16x192xbf16, #tpu.memory_space<vmem>>, vector<16x16x64xbf16>
    tpu.vector_store %arg9[%c1_17, %c0_18, %c64], %14 {strides = array<i32>} : memref<18x16x192xbf16, #tpu.memory_space<vmem>>, vector<16x16x64xbf16>,
    %18 = vector.extract_strided_slice %14 {offsets = [0, 1, 0], sizes = [16, 15, 64], strides = [1, 1, 1]} : vector<16x16x64xbf16> to vector<16x15x64xbf16>
    %c1_19 = arith.constant 1 : index
    %c0_20 = arith.constant 0 : index
    %c128_21 = arith.constant 128 : index
    %19 = vector.load %arg9[%c1_19, %c0_20, %c128_21] : memref<18x16x192xbf16, #tpu.memory_space<vmem>>, vector<16x15x64xbf16>
    tpu.vector_store %arg9[%c1_19, %c0_20, %c128_21], %18 {strides = array<i32>} : memref<18x16x192xbf16, #tpu.memory_space<vmem>>, vector<16x15x64xbf16>,
    %c0_22 = arith.constant 0 : index
    %c0_23 = arith.constant 0 : index
    %c0_24 = arith.constant 0 : index
    %20 = vector.load %arg9[%c0_22, %c0_23, %c0_24] : memref<18x16x192xbf16, #tpu.memory_space<vmem>>, vector<16x16x192xbf16>
    %21 = vector.shape_cast %20 : vector<16x16x192xbf16> to vector<256x192xbf16>
    %c0_25 = arith.constant 0 : index
    %c0_26 = arith.constant 0 : index
    %c0_27 = arith.constant 0 : index
    %22 = vector.load %arg2[%c0_25, %c0_26, %c0_27] : memref<3x192x64xbf16, #tpu.memory_space<vmem>>, vector<1x192x64xbf16>
    %23 = vector.shape_cast %22 : vector<1x192x64xbf16> to vector<192x64xbf16>
    %cst_28 = arith.constant dense<0.000000e+00> : vector<256x64xf32>
    %24 = tpu.matmul %21, %23, %cst_28 {dimension_numbers = #tpu.dot_dimension_numbers<[1], [0], [0], [1], [0, 0, 1, 1], [], []>} : vector<256x192xbf16>, vector<192x64xbf16>, vector<256x64xf32> -> vector<256x64xf32>
    %c1_29 = arith.constant 1 : index
    %c0_30 = arith.constant 0 : index
    %c0_31 = arith.constant 0 : index
    %25 = vector.load %arg9[%c1_29, %c0_30, %c0_31] : memref<18x16x192xbf16, #tpu.memory_space<vmem>>, vector<16x16x192xbf16>
    %26 = vector.shape_cast %25 : vector<16x16x192xbf16> to vector<256x192xbf16>
    %c1_32 = arith.constant 1 : index
    %c0_33 = arith.constant 0 : index
    %c0_34 = arith.constant 0 : index
    %27 = vector.load %arg2[%c1_32, %c0_33, %c0_34] : memref<3x192x64xbf16, #tpu.memory_space<vmem>>, vector<1x192x64xbf16>
    %28 = vector.shape_cast %27 : vector<1x192x64xbf16> to vector<192x64xbf16>
    %cst_35 = arith.constant dense<0.000000e+00> : vector<256x64xf32>
    %29 = tpu.matmul %26, %28, %cst_35 {dimension_numbers = #tpu.dot_dimension_numbers<[1], [0], [0], [1], [0, 0, 1, 1], [], []>} : vector<256x192xbf16>, vector<192x64xbf16>, vector<256x64xf32> -> vector<256x64xf32>
    %30 = arith.addf %24, %29 : vector<256x64xf32>
    %c2 = arith.constant 2 : index
    %c0_36 = arith.constant 0 : index
    %c0_37 = arith.constant 0 : index
    %31 = vector.load %arg9[%c2, %c0_36, %c0_37] : memref<18x16x192xbf16, #tpu.memory_space<vmem>>, vector<16x16x192xbf16>
    %32 = vector.shape_cast %31 : vector<16x16x192xbf16> to vector<256x192xbf16>
    %c2_38 = arith.constant 2 : index
    %c0_39 = arith.constant 0 : index
    %c0_40 = arith.constant 0 : index
    %33 = vector.load %arg2[%c2_38, %c0_39, %c0_40] : memref<3x192x64xbf16, #tpu.memory_space<vmem>>, vector<1x192x64xbf16>
    %34 = vector.shape_cast %33 : vector<1x192x64xbf16> to vector<192x64xbf16>
    %cst_41 = arith.constant dense<0.000000e+00> : vector<256x64xf32>
    %35 = tpu.matmul %32, %34, %cst_41 {dimension_numbers = #tpu.dot_dimension_numbers<[1], [0], [0], [1], [0, 0, 1, 1], [], []>} : vector<256x192xbf16>, vector<192x64xbf16>, vector<256x64xf32> -> vector<256x64xf32>
    %36 = arith.addf %30, %35 : vector<256x64xf32>
    %cst_42 = arith.constant dense<0.000000e+00> : vector<64xf32>
    %37 = vector.multi_reduction <add>, %36, %cst_42 [0] : vector<256x64xf32> to vector<64xf32>
    %38 = vector.shape_cast %37 : vector<64xf32> to vector<1x64xf32>
    %39 = arith.mulf %36, %36 : vector<256x64xf32>
    %cst_43 = arith.constant dense<0.000000e+00> : vector<64xf32>
    %40 = vector.multi_reduction <add>, %39, %cst_43 [0] : vector<256x64xf32> to vector<64xf32>
    %41 = vector.shape_cast %40 : vector<64xf32> to vector<1x64xf32>
    %cst_44 = arith.constant 3.906250e-03 : f32
    %42 = vector.broadcast %cst_44 : f32 to vector<1x64xf32>
    %43 = arith.mulf %38, %42 : vector<1x64xf32>
    %cst_45 = arith.constant 3.906250e-03 : f32
    %44 = vector.broadcast %cst_45 : f32 to vector<1x64xf32>
    %45 = arith.mulf %41, %44 : vector<1x64xf32>
    %46 = arith.mulf %43, %43 : vector<1x64xf32>
    %47 = arith.subf %45, %46 : vector<1x64xf32>
    %c0_46 = arith.constant 0 : index
    %c0_47 = arith.constant 0 : index
    %48 = vector.load %arg4[%c0_46, %c0_47] : memref<1x64xf32, #tpu.memory_space<vmem>>, vector<1x64xf32>
    %cst_48 = arith.constant 9.99999974E-6 : f32
    %49 = vector.broadcast %cst_48 : f32 to vector<1x64xf32>
    %50 = arith.addf %47, %49 : vector<1x64xf32>
    %51 = math.rsqrt %50 : vector<1x64xf32>
    %52 = arith.mulf %48, %51 : vector<1x64xf32>
    %c0_49 = arith.constant 0 : index
    %c0_50 = arith.constant 0 : index
    %53 = vector.load %arg5[%c0_49, %c0_50] : memref<1x64xf32, #tpu.memory_space<vmem>>, vector<1x64xf32>
    %54 = arith.mulf %43, %52 : vector<1x64xf32>
    %55 = arith.subf %53, %54 : vector<1x64xf32>
    %56 = vector.broadcast %52 : vector<1x64xf32> to vector<256x64xf32>
    %57 = arith.mulf %36, %56 : vector<256x64xf32>
    %58 = vector.broadcast %55 : vector<1x64xf32> to vector<256x64xf32>
    %59 = arith.addf %57, %58 : vector<256x64xf32>
    %cst_51 = arith.constant 0.000000e+00 : f32
    %60 = vector.broadcast %cst_51 : f32 to vector<256x64xf32>
    %61 = arith.cmpf ogt, %59, %60 : vector<256x64xf32>
    %cst_52 = arith.constant 2.000000e-01 : f32
    %62 = vector.broadcast %cst_52 : f32 to vector<256x64xf32>
    %63 = arith.mulf %62, %59 : vector<256x64xf32>
    %64 = arith.select %61, %59, %63 : vector<256x64xi1>, vector<256x64xf32>
    %65 = arith.truncf %64 : vector<256x64xf32> to vector<256x64xbf16>
    %66 = vector.shape_cast %65 : vector<256x64xbf16> to vector<16x16x64xbf16>
    %67 = vector.extract_strided_slice %66 {offsets = [0, 0, 0], sizes = [16, 15, 64], strides = [1, 1, 1]} : vector<16x16x64xbf16> to vector<16x15x64xbf16>
    %c1_53 = arith.constant 1 : index
    %c1_54 = arith.constant 1 : index
    %c0_55 = arith.constant 0 : index
    %68 = vector.load %arg9[%c1_53, %c1_54, %c0_55] : memref<18x16x192xbf16, #tpu.memory_space<vmem>>, vector<16x15x64xbf16>
    tpu.vector_store %arg9[%c1_53, %c1_54, %c0_55], %67 {strides = array<i32>} : memref<18x16x192xbf16, #tpu.memory_space<vmem>>, vector<16x15x64xbf16>,
    %c1_56 = arith.constant 1 : index
    %c0_57 = arith.constant 0 : index
    %c64_58 = arith.constant 64 : index
    %69 = vector.load %arg9[%c1_56, %c0_57, %c64_58] : memref<18x16x192xbf16, #tpu.memory_space<vmem>>, vector<16x16x64xbf16>
    tpu.vector_store %arg9[%c1_56, %c0_57, %c64_58], %66 {strides = array<i32>} : memref<18x16x192xbf16, #tpu.memory_space<vmem>>, vector<16x16x64xbf16>,
    %70 = vector.extract_strided_slice %66 {offsets = [0, 1, 0], sizes = [16, 15, 64], strides = [1, 1, 1]} : vector<16x16x64xbf16> to vector<16x15x64xbf16>
    %c1_59 = arith.constant 1 : index
    %c0_60 = arith.constant 0 : index
    %c128_61 = arith.constant 128 : index
    %71 = vector.load %arg9[%c1_59, %c0_60, %c128_61] : memref<18x16x192xbf16, #tpu.memory_space<vmem>>, vector<16x15x64xbf16>
    tpu.vector_store %arg9[%c1_59, %c0_60, %c128_61], %70 {strides = array<i32>} : memref<18x16x192xbf16, #tpu.memory_space<vmem>>, vector<16x15x64xbf16>,
    %c0_62 = arith.constant 0 : index
    %c0_63 = arith.constant 0 : index
    %c0_64 = arith.constant 0 : index
    %72 = vector.load %arg9[%c0_62, %c0_63, %c0_64] : memref<18x16x192xbf16, #tpu.memory_space<vmem>>, vector<16x16x192xbf16>
    %73 = vector.shape_cast %72 : vector<16x16x192xbf16> to vector<256x192xbf16>
    %c0_65 = arith.constant 0 : index
    %c0_66 = arith.constant 0 : index
    %c0_67 = arith.constant 0 : index
    %74 = vector.load %arg3[%c0_65, %c0_66, %c0_67] : memref<3x192x64xbf16, #tpu.memory_space<vmem>>, vector<1x192x64xbf16>
    %75 = vector.shape_cast %74 : vector<1x192x64xbf16> to vector<192x64xbf16>
    %cst_68 = arith.constant dense<0.000000e+00> : vector<256x64xf32>
    %76 = tpu.matmul %73, %75, %cst_68 {dimension_numbers = #tpu.dot_dimension_numbers<[1], [0], [0], [1], [0, 0, 1, 1], [], []>} : vector<256x192xbf16>, vector<192x64xbf16>, vector<256x64xf32> -> vector<256x64xf32>
    %c1_69 = arith.constant 1 : index
    %c0_70 = arith.constant 0 : index
    %c0_71 = arith.constant 0 : index
    %77 = vector.load %arg9[%c1_69, %c0_70, %c0_71] : memref<18x16x192xbf16, #tpu.memory_space<vmem>>, vector<16x16x192xbf16>
    %78 = vector.shape_cast %77 : vector<16x16x192xbf16> to vector<256x192xbf16>
    %c1_72 = arith.constant 1 : index
    %c0_73 = arith.constant 0 : index
    %c0_74 = arith.constant 0 : index
    %79 = vector.load %arg3[%c1_72, %c0_73, %c0_74] : memref<3x192x64xbf16, #tpu.memory_space<vmem>>, vector<1x192x64xbf16>
    %80 = vector.shape_cast %79 : vector<1x192x64xbf16> to vector<192x64xbf16>
    %cst_75 = arith.constant dense<0.000000e+00> : vector<256x64xf32>
    %81 = tpu.matmul %78, %80, %cst_75 {dimension_numbers = #tpu.dot_dimension_numbers<[1], [0], [0], [1], [0, 0, 1, 1], [], []>} : vector<256x192xbf16>, vector<192x64xbf16>, vector<256x64xf32> -> vector<256x64xf32>
    %82 = arith.addf %76, %81 : vector<256x64xf32>
    %c2_76 = arith.constant 2 : index
    %c0_77 = arith.constant 0 : index
    %c0_78 = arith.constant 0 : index
    %83 = vector.load %arg9[%c2_76, %c0_77, %c0_78] : memref<18x16x192xbf16, #tpu.memory_space<vmem>>, vector<16x16x192xbf16>
    %84 = vector.shape_cast %83 : vector<16x16x192xbf16> to vector<256x192xbf16>
    %c2_79 = arith.constant 2 : index
    %c0_80 = arith.constant 0 : index
    %c0_81 = arith.constant 0 : index
    %85 = vector.load %arg3[%c2_79, %c0_80, %c0_81] : memref<3x192x64xbf16, #tpu.memory_space<vmem>>, vector<1x192x64xbf16>
    %86 = vector.shape_cast %85 : vector<1x192x64xbf16> to vector<192x64xbf16>
    %cst_82 = arith.constant dense<0.000000e+00> : vector<256x64xf32>
    %87 = tpu.matmul %84, %86, %cst_82 {dimension_numbers = #tpu.dot_dimension_numbers<[1], [0], [0], [1], [0, 0, 1, 1], [], []>} : vector<256x192xbf16>, vector<192x64xbf16>, vector<256x64xf32> -> vector<256x64xf32>
    %88 = arith.addf %82, %87 : vector<256x64xf32>
    %cst_83 = arith.constant dense<0.000000e+00> : vector<64xf32>
    %89 = vector.multi_reduction <add>, %88, %cst_83 [0] : vector<256x64xf32> to vector<64xf32>
    %90 = vector.shape_cast %89 : vector<64xf32> to vector<1x64xf32>
    %91 = arith.mulf %88, %88 : vector<256x64xf32>
    %cst_84 = arith.constant dense<0.000000e+00> : vector<64xf32>
    %92 = vector.multi_reduction <add>, %91, %cst_84 [0] : vector<256x64xf32> to vector<64xf32>
    %93 = vector.shape_cast %92 : vector<64xf32> to vector<1x64xf32>
    %cst_85 = arith.constant 3.906250e-03 : f32
    %94 = vector.broadcast %cst_85 : f32 to vector<1x64xf32>
    %95 = arith.mulf %90, %94 : vector<1x64xf32>
    %cst_86 = arith.constant 3.906250e-03 : f32
    %96 = vector.broadcast %cst_86 : f32 to vector<1x64xf32>
    %97 = arith.mulf %93, %96 : vector<1x64xf32>
    %98 = arith.mulf %95, %95 : vector<1x64xf32>
    %99 = arith.subf %97, %98 : vector<1x64xf32>
    %c0_87 = arith.constant 0 : index
    %c0_88 = arith.constant 0 : index
    %100 = vector.load %arg6[%c0_87, %c0_88] : memref<1x64xf32, #tpu.memory_space<vmem>>, vector<1x64xf32>
    %cst_89 = arith.constant 9.99999974E-6 : f32
    %101 = vector.broadcast %cst_89 : f32 to vector<1x64xf32>
    %102 = arith.addf %99, %101 : vector<1x64xf32>
    %103 = math.rsqrt %102 : vector<1x64xf32>
    %104 = arith.mulf %100, %103 : vector<1x64xf32>
    %c0_90 = arith.constant 0 : index
    %c0_91 = arith.constant 0 : index
    %105 = vector.load %arg7[%c0_90, %c0_91] : memref<1x64xf32, #tpu.memory_space<vmem>>, vector<1x64xf32>
    %106 = arith.mulf %95, %104 : vector<1x64xf32>
    %107 = arith.subf %105, %106 : vector<1x64xf32>
    %108 = vector.broadcast %104 : vector<1x64xf32> to vector<256x64xf32>
    %109 = arith.mulf %88, %108 : vector<256x64xf32>
    %110 = vector.broadcast %107 : vector<1x64xf32> to vector<256x64xf32>
    %111 = arith.addf %109, %110 : vector<256x64xf32>
    %112 = vector.shape_cast %111 : vector<256x64xf32> to vector<16x16x64xf32>
    %c0_92 = arith.constant 0 : index
    %c0_93 = arith.constant 0 : index
    %c0_94 = arith.constant 0 : index
    %c0_95 = arith.constant 0 : index
    %113 = vector.load %arg1[%c0_92, %c0_93, %c0_94, %c0_95] : memref<1x16x16x64xf32, #tpu.memory_space<vmem>>, vector<1x16x16x64xf32>
    %114 = vector.shape_cast %113 : vector<1x16x16x64xf32> to vector<16x16x64xf32>
    %115 = arith.addf %112, %114 : vector<16x16x64xf32>
    %116 = vector.shape_cast %115 : vector<16x16x64xf32> to vector<16x1024xf32>
    %c0_96 = arith.constant 0 : index
    %c0_97 = arith.constant 0 : index
    %c0_98 = arith.constant 0 : index
    %117 = vector.load %arg8[%c0_96, %c0_97, %c0_98] : memref<1x16x1024xf32, #tpu.memory_space<vmem>>, vector<1x16x1024xf32>
    %118 = vector.shape_cast %117 : vector<1x16x1024xf32> to vector<16x1024xf32>
    %119 = vector.shape_cast %116 : vector<16x1024xf32> to vector<1x16x1024xf32>
    tpu.vector_store %arg8[%c0_96, %c0_97, %c0_98], %119 {strides = array<i32>} : memref<1x16x1024xf32, #tpu.memory_space<vmem>>, vector<1x16x1024xf32>,
    return
  }
  func.func @transform_0(%arg0: i32) -> (i32, i32, i32, i32) {
    %c0_i32 = arith.constant 0 : i32
    %c0_i32_0 = arith.constant 0 : i32
    %c0_i32_1 = arith.constant 0 : i32
    %c0_i32_2 = arith.constant 0 : i32
    return %arg0, %c0_i32, %c0_i32_0, %c0_i32_1 : i32, i32, i32, i32
  }
  func.func @transform_1(%arg0: i32) -> (i32, i32, i32) {
    %c0_i32 = arith.constant 0 : i32
    %c0_i32_0 = arith.constant 0 : i32
    %c0_i32_1 = arith.constant 0 : i32
    %c0_i32_2 = arith.constant 0 : i32
    return %c0_i32, %c0_i32_0, %c0_i32_1 : i32, i32, i32
  }
  func.func @transform_2(%arg0: i32) -> (i32, i32, i32) {
    %c0_i32 = arith.constant 0 : i32
    %c0_i32_0 = arith.constant 0 : i32
    %c0_i32_1 = arith.constant 0 : i32
    %c0_i32_2 = arith.constant 0 : i32
    return %c0_i32, %c0_i32_0, %c0_i32_1 : i32, i32, i32
  }
  func.func @transform_3(%arg0: i32) -> (i32, i32) {
    %c0_i32 = arith.constant 0 : i32
    %c0_i32_0 = arith.constant 0 : i32
    %c0_i32_1 = arith.constant 0 : i32
    return %c0_i32, %c0_i32_0 : i32, i32
  }
  func.func @transform_4(%arg0: i32) -> (i32, i32) {
    %c0_i32 = arith.constant 0 : i32
    %c0_i32_0 = arith.constant 0 : i32
    %c0_i32_1 = arith.constant 0 : i32
    return %c0_i32, %c0_i32_0 : i32, i32
  }
  func.func @transform_5(%arg0: i32) -> (i32, i32) {
    %c0_i32 = arith.constant 0 : i32
    %c0_i32_0 = arith.constant 0 : i32
    %c0_i32_1 = arith.constant 0 : i32
    return %c0_i32, %c0_i32_0 : i32, i32
  }
  func.func @transform_6(%arg0: i32) -> (i32, i32) {
    %c0_i32 = arith.constant 0 : i32
    %c0_i32_0 = arith.constant 0 : i32
    %c0_i32_1 = arith.constant 0 : i32
    return %c0_i32, %c0_i32_0 : i32, i32
  }
  func.func @transform_7(%arg0: i32) -> (i32, i32, i32) {
    %c0_i32 = arith.constant 0 : i32
    %c0_i32_0 = arith.constant 0 : i32
    %c0_i32_1 = arith.constant 0 : i32
    return %arg0, %c0_i32, %c0_i32_0 : i32, i32, i32
  }
}

</mosaic_0001>

<bundles_post_ra>
// kernel: tpu_custom_call.1
= control target key start
LH: loop header
LB: loop body
LE: loop exit
PB: predicated region body
PF: predicated region fallthrough
CT: control target
= control target key end

     0   :  { %12 = vsyncpa [#allocation4], 0  ;;  %s10684_s0 = inlined_call_operand.vmem [shape: f32[2,16,16,64], index: 0, kind: input, shape index: {}]   ;;  %s10685_s1 = inlined_call_operand.vmem [shape: bf16[3,192,64], index: 1, kind: input, shape index: {}]   ;;  %s10686_s2 = inlined_call_operand.vmem [shape: bf16[3,192,64], index: 2, kind: input, shape index: {}]   ;;  %s10687_s3 = inlined_call_operand.vmem [shape: f32[1,64], index: 3, kind: input, shape index: {}]   ;;  %s10688_s4 = inlined_call_operand.vmem [shape: f32[1,64], index: 4, kind: input, shape index: {}]   ;;  %s10689_s5 = inlined_call_operand.vmem [shape: f32[1,64], index: 5, kind: input, shape index: {}]   ;;  %s10690_s6 = inlined_call_operand.vmem [shape: f32[1,64], index: 6, kind: input, shape index: {}]   ;;  %s10691_s7 = inlined_call_operand.hbm [shape: f32[2,16,1024], index: 7, kind: output, shape index: {}]  }
   0x1   :  { %14 = vsyncpa [#allocation4 + $0x1], 0  ;;  %s7337_s24 = smov 0   ;;  %s7339_s25 = smov 0  }
   0x2   :  { %s7341_s26 = smov 0   ;;  %s7343_s27 = smov 0  }
   0x3 LB: > { %s7358_s28 = sadd.s32 4294967295, %s7289_s27   ;;  %s6410_s29 = sadd.s32 4294967294, %s7289_s27   ;;  %s7289_s27 = sphi %s7343_s27, %s10823_s27   ;;  %s7285_s26 = sphi %s7341_s26, %s10822_s26   ;;  %s7281_s25 = sphi %s7339_s25, %s10821_s25   ;;  %s7277_s24 = sphi %s7337_s24, %s10820_s24  }
   0x4   : > { %s7362_s30 = sadd.s32 1, %s7289_s27   ;;  %s179_s8 = sadd.s32 1, %s7285_s26 }
   0x5   : > { %s176_s9 = ssub.s32 %s7289_s27, %s7362_s30  ;;  %p189_p0 = scmp.ne.s32.totalorder %s7285_s26, %s7281_s25 }
   0x6   : > { %p177_p1 = scmp.eq.s32.totalorder %s176_s9, 0  ;;  %p190_p2 = scmp.eq.s32.totalorder %s7358_s28, 1 }
   0x7   : > { %p195_p3 = scmp.ne.s32.totalorder %s7281_s25, %s7277_s24  ;;  %p196_p4 = scmp.eq.s32.totalorder %s6410_s29, 1 }
   0x8   : > { %s7373_s10 = scalar_select %p177_p1, %s7285_s26, %s179_s8  }
   0x9   : > { %p7375_p5 = por %p190_p2, %p189_p0  ;;  %p7379_p6 = por %p196_p4, %p195_p3 }
   0xa   : > { %p6413_p7 = scmp.ge.s32.totalorder %s7289_s27, 1  ;;  %p240_p8 = scmp.lt.s32.totalorder %s7289_s27, 3 }
   0xc   : > { %p241_p9 = pnand %p6413_p7, %p240_p8 }
   0xe   : > { %244 = sbr.rel (%p241_p9) target bundleno = 1479 (0x5c7), region = 48 }
  0x13   : > { %p272_p10 = scmp.lt.s32.totalorder %s7358_s28, 1  ;;  %vm338_vm0 = vcmask 519171   ;;  %vm339_vm1 = vsmask.f32 7950  ;;  %v341_v1 = vld [vmem:[#allocation2 + $0x1c] sm:$0x8] }
  0x14   : > { %vm7386_vm2 = vmand %vm338_vm0, %vm339_vm1  ;;  %v344_v3 = vld [vmem:[#allocation2 + $0x2c] sm:$0x8]  ;;  %v347_v4 = vld [vmem:[#allocation2 + $0x3c] sm:$0x8]  ;;  %v10712_v15 = vmov 0   ;;  %s7292_s20 = smov 64  }
  0x15   : > { %s273_s13 = scalar_select %p272_p10, %s7358_s28, 1  ;;  %v342_v2 = vsel %vm7386_vm2, 0, %v341_v1  ;;  %v345_v5 = vsel %vm7386_vm2, 0, %v344_v3  ;;  %v348_v6 = vsel %vm7386_vm2, 0, %v347_v4  ;;  %v350_v7 = vld [vmem:[#allocation2 + $0x4c] sm:$0x8]  ;;  %2051 = vmatprep.subr.bf16.mxu1 %v10712_v15  ;;  %1626 = vmatprep.subr.bf16.mxu0 %v10712_v15 }
  0x16   : > { %343 = vst [vmem:[#allocation2 + $0x1c] sm:$0x8] %v342_v2  ;;  %v353_v8 = vld [vmem:[#allocation2 + $0x5c] sm:$0x8]  ;;  %346 = vst [vmem:[#allocation2 + $0x2c] sm:$0x8] %v345_v5 }
  0x17   : > { %s6942_s14 = sshll.u32 %s273_s13, 8  ;;  %349 = vst [vmem:[#allocation2 + $0x3c] sm:$0x8] %v348_v6  ;;  %v351_v9 = vsel %vm7386_vm2, 0, %v350_v7  ;;  %v354_v10 = vsel %vm7386_vm2, 0, %v353_v8  ;;  %v7052_v16 = vld [vmem:[%s10685_s1 + $0x38] sm:$0xff]  }
  0x18   : > { %v356_v11 = vld [vmem:[#allocation2 + $0x6c] sm:$0x8]  ;;  %s7404_s17 = scalar_lea.vmem %s10684_s0, %s6942_s14  ;;  %352 = vst [vmem:[#allocation2 + $0x4c] sm:$0x8] %v351_v9  ;;  %355 = vst [vmem:[#allocation2 + $0x5c] sm:$0x8] %v354_v10  ;;  %2052 = vmatpush1.bf16.msra.mxu1 %v7052_v16 }
  0x19   : > { %v357_v12 = vsel %vm7386_vm2, 0, %v356_v11  ;;  %v359_v13 = vld [vmem:[#allocation2 + $0x7c] sm:$0x8]  ;;  %v362_v14 = vld [vmem:[#allocation2 + $0x8c] sm:$0x8]  ;;  %v389_v17 = vld [vmem:[%s7404_s17] sm:$0xff]  ;;  %2053 = vmatprep.subr.bf16.mxu1 %v10712_v15 }
  0x1a   : > { %v391_v18 = vld [vmem:[%s7404_s17 + $0x10] sm:$0xff]  ;;  %v390_v19 = vld [vmem:[%s7404_s17 + $0x8] sm:$0xff]  ;;  %358 = vst [vmem:[#allocation2 + $0x6c] sm:$0x8] %v357_v12  ;;  %v360_v20 = vsel %vm7386_vm2, 0, %v359_v13  ;;  %v363_v21 = vsel %vm7386_vm2, 0, %v362_v14  ;;  %v6943_v22 = vpack.c.bf16 %v389_v17, %v389_v17 }
  0x1b   : > { %v6945_v23 = vpack.c.bf16 %v391_v18, %v391_v18  ;;  %vm1004_vm3 = vsmask.f32 3328  ;;  %v392_v24 = vld [vmem:[%s7404_s17 + $0x18] sm:$0xff]  ;;  %v394_v25 = vld [vmem:[%s7404_s17 + $0x28] sm:$0xff]  ;;  %361 = vst [vmem:[#allocation2 + $0x7c] sm:$0x8] %v360_v20  ;;  %v7422_v26 = vpack.c.bf16 %v390_v19, %v390_v19 }
  0x1c   : > { %364 = vst [vmem:[#allocation2 + $0x8c] sm:$0x8] %v363_v21  ;;  %vm1005_vm4 = vsmask.f32 7440  ;;  %v7424_v27 = vpack.c.bf16 %v392_v24, %v392_v24  ;;  %v7426_v28 = vpack.c.bf16 %v394_v25, %v394_v25  ;;  %875 = vrot.lane.b32.xlu0 %v6943_v22, %s7292_s20  ;;  %v520_v29 = vshrl.u32 %v6943_v22, 16  ;;  %v393_v33 = vld [vmem:[%s7404_s17 + $0x20] sm:$0xff] }
  0x1d   : > { %v523_v30 = vshll.u32 %v6943_v22, 16  ;;  %879 = vrot.lane.b32.xlu1 %v6945_v23, %s7292_s20  ;;  %v536_v31 = vshrl.u32 %v6945_v23, 16  ;;  %v539_v32 = vshll.u32 %v6945_v23, 16  ;;  %v528_v34 = vshrl.u32 %v7422_v26, 16  ;;  %vm7456_vm6 = vmor %vm1004_vm3, %vm1005_vm4  ;;  %v1185_v60 = vld [vmem:[#allocation2 + $0x1c] sm:$0xf] }
  0x1e   : > { %v10700_v35 = vshll.u32 %v7422_v26, 16  ;;  %v544_v36 = vshrl.u32 %v7424_v27, 16  ;;  %v10699_v37 = vshll.u32 %v7424_v27, 16  ;;  %v7436_v38 = vrot.slane %v520_v29, 7  ;;  %v396_v1 = vld [vmem:[%s7404_s17 + $0x38] sm:$0xff]  ;;  %v395_v6 = vld [vmem:[%s7404_s17 + $0x30] sm:$0xff] }
  0x1f   : > { %v1007_v39 = vrot.slane %v520_v29, 4  ;;  %v1008_v40 = vrot.slane %v523_v30, 5  ;;  %v7438_v41 = vrot.slane %v536_v31, 7  ;;  %v1016_v42 = vrot.slane %v536_v31, 4  ;;  %v1189_v4 = vld [vmem:[#allocation2 + $0x2c] sm:$0xf] }
  0x20   : > { %v1017_v43 = vrot.slane %v539_v32, 5  ;;  %v1011_v44 = vrot.slane %v10700_v35, 5  ;;  %v6947_v45 = vpack.c.bf16 %v393_v33, %v393_v33  ;;  %v7443_v46 = vor.u32 %v523_v30, %v7436_v38  ;;  %877 = vrot.lane.b32.xlu0 %v7422_v26, %s7292_s20  ;;  %v398_v11 = vld [vmem:[%s7404_s17 + $0x48] sm:$0xff]  ;;  %v397_v12 = vld [vmem:[%s7404_s17 + $0x40] sm:$0xff]  ;;  %v1193_v20 = vld [vmem:[#allocation2 + $0x3c] sm:$0xf] }
  0x21   : > { %v1009_v47 = vor.u32 %v1008_v40, %v1007_v39  ;;  %v7446_v48 = vor.u32 %v539_v32, %v7438_v41  ;;  %v1013_v49 = vrot.slane %v528_v34, 4  ;;  %881 = vrot.lane.b32.xlu1 %v7424_v27, %s7292_s20  ;;  %vm807_vm5 = vcmask 519168   ;;  %v7053_v30 = vld [vmem:[%s10685_s1 + $0x30] sm:$0xff]   ;;  %v7054_v31 = vld [vmem:[%s10685_s1 + $0x98] sm:$0xff]   ;;  %s7007_s15 = sshll.u32 %s7358_s28, 11  ;;  %s7295_s23 = smov [#allocation3]  }
  0x22   : > { %v1018_v50 = vor.u32 %v1017_v43, %v1016_v42  ;;  %v10738_v51 = vmov 0  ;;  %v1020_v52 = vrot.slane %v10699_v37, 5  ;;  %v1022_v53 = vrot.slane %v544_v36, 4  ;;  %vm7468_vm7 = vmand %vm807_vm5, %vm1004_vm3  ;;  %2054 = vmatpush1.bf16.msra.mxu1 %v7053_v30  ;;  %1627 = vmatpush1.bf16.msra.mxu0 %v7054_v31  ;;  %v7058_v31 = vld [vmem:[%s10685_s1 + $0x88] sm:$0xff]   ;;  %v7067_v37 = vld [vmem:[%s10685_s1 + $0x58] sm:$0xff]   ;;  %s10634_s21 = scalar_lea.hbm %s10691_s7, %s7007_s15  ;;  %s7233_s29 = sshll.u32 %s7295_s23, 4  ;;  %s7234_s29 = int_to_ptr.vmem [resolvable:$false] %s7233_s29 }
  0x23   : > { %v10739_v51 = vsel %vm7456_vm6, 4294967295, %v10738_v51  ;;  %v1010_v54 = vrot.slane %v1009_v47, 4  ;;  %v1014_v55 = vor.u32 %v1013_v49, %v1011_v44  ;;  %v560_v56 = vshrl.u32 %v7426_v28, 16  ;;  %2055 = vmatprep.subr.bf16.mxu1 %v10712_v15  ;;  %1628 = vmatprep.subr.bf16.mxu0 %v10712_v15  ;;  %s7235_s8 = scalar_lea.vmem %s7234_s29, 4096 }
  0x24   : > { %10740 = vst [vmem:[#allocation6_spill] sm:$0xff] %v10739_v51  ;;  %v10698_v57 = vshll.u32 %v7426_v28, 16  ;;  %v1019_v58 = vrot.slane %v1018_v50, 4  ;;  %v10741_v59 = vmov 0  ;;  %v1023_v61 = vor.u32 %v1022_v53, %v1020_v52  ;;  %883 = vrot.lane.b32.xlu0 %v6947_v45, %s7292_s20 }
  0x25   : > { %v10742_v59 = vsel %vm7468_vm7, 4294967295, %v10741_v59  ;;  %v552_v62 = vshrl.u32 %v6947_v45, 16  ;;  %v555_v63 = vshll.u32 %v6947_v45, 16  ;;  %v1015_v2 = vrot.slane %v1014_v55, 4  ;;  %885 = vrot.lane.b32.xlu1 %v7426_v28, %s7292_s20  ;;  %v7055_v45 = vld [vmem:[%s10685_s1 + $0x28] sm:$0xff]  }
  0x26   : > { %10743 = vst [vmem:[#allocation7_spill] sm:$0xff] %v10742_v59  ;;  %v1012_v3 = vsel %vm7456_vm6, %v1010_v54, %v1011_v44  ;;  %v1029_v5 = vrot.slane %v10698_v57, 5  ;;  %v1024_v7 = vrot.slane %v1023_v61, 4  ;;  %v1021_v8 = vsel %vm7456_vm6, %v1019_v58, %v1020_v52  ;;  %v400_v52 = vld [vmem:[%s7404_s17 + $0x58] sm:$0xff]  ;;  %v1197_v55 = vld [vmem:[#allocation2 + $0x4c] sm:$0xf]  ;;  %2056 = vmatpush1.bf16.msra.mxu1 %v7055_v45 }
  0x27   : > { %1183 = vst.msk [vmem:[#allocation2 + $0x14] sm:$0xf] %vm807_vm5, %v1012_v3  ;;  %v1031_v9 = vrot.slane %v560_v56, 4  ;;  %v7486_v10 = vrot.slane %v552_v62, 7  ;;  %v1186_v13 = vsel %vm7468_vm7, %v1015_v2, %v1185_v60  ;;  %1188 = vst.msk [vmem:[#allocation2 + $0x24] sm:$0xf] %vm807_vm5, %v1021_v8  ;;  %v7493_v17 = vpack.c.bf16 %v396_v1, %v396_v1  ;;  %2057 = vmatprep.subr.bf16.mxu1 %v10712_v15 }
  0x28   : > { %v1025_v14 = vrot.slane %v552_v62, 4  ;;  %v1026_v16 = vrot.slane %v555_v63, 5  ;;  %1187 = vst [vmem:[#allocation2 + $0x1c] sm:$0xf] %v1186_v13  ;;  %v1190_v18 = vsel %vm7468_vm7, %v1024_v7, %v1189_v4  ;;  %v7500_v22 = vpack.c.bf16 %v395_v6, %v395_v6  ;;  %v399_v1 = vld [vmem:[%s7404_s17 + $0x50] sm:$0xff]  ;;  %v402_v6 = vld [vmem:[%s7404_s17 + $0x68] sm:$0xff] }
  0x29   : > { %v1032_v19 = vor.u32 %v1031_v9, %v1029_v5  ;;  %v7498_v21 = vor.u32 %v555_v63, %v7486_v10  ;;  %1191 = vst [vmem:[#allocation2 + $0x2c] sm:$0xf] %v1190_v18  ;;  %v576_v24 = vshrl.u32 %v7493_v17, 16  ;;  %v10696_v25 = vshll.u32 %v7493_v17, 16  ;;  %889 = vrot.lane.b32.xlu1 %v7493_v17, %s7292_s20  ;;  %v7056_v2 = vld [vmem:[%s10685_s1 + $0x90] sm:$0xff]  }
  0x2a   : > { %v1027_v23 = vor.u32 %v1026_v16, %v1025_v14  ;;  %v7506_v29 = vpack.c.bf16 %v398_v11, %v398_v11  ;;  %v568_v33 = vshrl.u32 %v7500_v22, 16  ;;  %v571_v39 = vshll.u32 %v7500_v22, 16  ;;  %887 = vrot.lane.b32.xlu0 %v7500_v22, %s7292_s20  ;;  %v1201_v9 = vld [vmem:[#allocation2 + $0x5c] sm:$0xf]  ;;  %1629 = vmatpush1.bf16.msra.mxu0 %v7056_v2  ;;  %v403_v2 = vld [vmem:[%s7404_s17 + $0x70] sm:$0xff] }
  0x2b   : > { %v1033_v32 = vrot.slane %v1032_v19, 4  ;;  %v7518_v40 = vpack.c.bf16 %v397_v12, %v397_v12  ;;  %v1038_v43 = vrot.slane %v10696_v25, 5  ;;  %v1040_v44 = vrot.slane %v576_v24, 4  ;;  %1630 = vmatprep.subr.bf16.mxu0 %v10712_v15  ;;  %v407_v25 = vld [vmem:[%s7404_s17 + $0x90] sm:$0xff]  ;;  %v374_v57 = vld [vmem:[#allocation2 + $0xcc] sm:$0x8] }
  0x2c   : > { %v1028_v42 = vrot.slane %v1027_v23, 4  ;;  %v1034_v49 = vrot.slane %v568_v33, 4  ;;  %v1035_v50 = vrot.slane %v571_v39, 5  ;;  %v592_v58 = vshrl.u32 %v7506_v29, 16 }
  0x2d   : > { %v1194_v47 = vsel %vm7468_vm7, %v1033_v32, %v1193_v20  ;;  %v1041_v54 = vor.u32 %v1040_v44, %v1038_v43  ;;  %v10695_v60 = vshll.u32 %v7506_v29, 16  ;;  %893 = vrot.lane.b32.xlu1 %v7506_v29, %s7292_s20  ;;  %v584_v62 = vshrl.u32 %v7518_v40, 16  ;;  %v401_v44 = vld [vmem:[%s7404_s17 + $0x60] sm:$0xff] }
  0x2e   : > { %1195 = vst [vmem:[#allocation2 + $0x3c] sm:$0xf] %v1194_v47  ;;  %v1030_v53 = vsel %vm7456_vm6, %v1028_v42, %v1029_v5  ;;  %v1036_v61 = vor.u32 %v1035_v50, %v1034_v49  ;;  %v587_v63 = vshll.u32 %v7518_v40, 16  ;;  %891 = vrot.lane.b32.xlu0 %v7518_v40, %s7292_s20  ;;  %v1049_v5 = vrot.slane %v592_v58, 4  ;;  %1631 = vmatpush1.bf16.msra.mxu0 %v7058_v31 }
  0x2f   : > { %1192 = vst.msk [vmem:[#allocation2 + $0x34] sm:$0xf] %vm807_vm5, %v1030_v53  ;;  %v1042_v3 = vrot.slane %v1041_v54, 4  ;;  %v1047_v4 = vrot.slane %v10695_v60, 5  ;;  %v7558_v7 = vrot.slane %v528_v34, 7  ;;  %v1043_v11 = vrot.slane %v584_v62, 4  ;;  %1632 = vmatprep.subr.bf16.mxu0 %v10712_v15 }
  0x30   : > { %v1037_v8 = vrot.slane %v1036_v61, 4  ;;  %v1044_v12 = vrot.slane %v587_v63, 5  ;;  %v7567_v16 = vpack.c.bf16 %v400_v52, %v400_v52  ;;  %v7569_v18 = vpack.c.bf16 %v399_v1, %v399_v1  ;;  %v7057_v34 = vld [vmem:[%s10685_s1 + $0x20] sm:$0xff]   ;;  %v404_v52 = vld [vmem:[%s7404_s17 + $0x78] sm:$0xff] }
  0x31   : > { %v1198_v13 = vsel %vm7468_vm7, %v1042_v3, %v1197_v55  ;;  %v1050_v14 = vor.u32 %v1049_v5, %v1047_v4  ;;  %v7577_v19 = vrot.slane %v544_v36, 7  ;;  %v7581_v30 = vpack.c.bf16 %v402_v6, %v402_v6  ;;  %2058 = vmatpush1.bf16.msra.mxu1 %v7057_v34  ;;  %v7059_v53 = vld [vmem:[%s10685_s1 + $0x18] sm:$0xff]   ;;  %v1205_v6 = vld [vmem:[#allocation2 + $0x6c] sm:$0xf] }
  0x32   : > { %1199 = vst [vmem:[#allocation2 + $0x4c] sm:$0xf] %v1198_v13  ;;  %v1039_v20 = vsel %vm7456_vm6, %v1037_v8, %v1038_v43  ;;  %v1045_v23 = vor.u32 %v1044_v12, %v1043_v11  ;;  %v608_v42 = vshrl.u32 %v7567_v16, 16  ;;  %v10694_v36 = vshll.u32 %v7567_v16, 16  ;;  %897 = vrot.lane.b32.xlu1 %v7567_v16, %s7292_s20  ;;  %895 = vrot.lane.b32.xlu0 %v7569_v18, %s7292_s20  ;;  %v365_v3 = vld [vmem:[#allocation2 + $0x9c] sm:$0x8] }
  0x33   : > { %1196 = vst.msk [vmem:[#allocation2 + $0x44] sm:$0xf] %vm807_vm5, %v1039_v20  ;;  %v1051_v32 = vrot.slane %v1050_v14, 4  ;;  %v600_v43 = vshrl.u32 %v7569_v18, 16  ;;  %v603_v47 = vshll.u32 %v7569_v18, 16  ;;  %v624_v49 = vshrl.u32 %v7581_v30, 16  ;;  %2059 = vmatprep.subr.bf16.mxu1 %v10712_v15 }
  0x34   : > { %v1046_v45 = vrot.slane %v1045_v23, 4  ;;  %v10693_v50 = vshll.u32 %v7581_v30, 16  ;;  %v7604_v54 = vrot.slane %v560_v56, 7  ;;  %v1056_v61 = vrot.slane %v10694_v36, 5  ;;  %v7060_v11 = vld [vmem:[%s10685_s1 + $0x80] sm:$0xff]   ;;  %v7061_v14 = vld [vmem:[%s10685_s1 + $0x10] sm:$0xff]  }
  0x35   : > { %v1202_v55 = vsel %vm7468_vm7, %v1051_v32, %v1201_v9  ;;  %v1058_v1 = vrot.slane %v608_v42, 4  ;;  %v7617_v5 = vrot.slane %v576_v24, 7  ;;  %v1052_v8 = vrot.slane %v600_v43, 4  ;;  %2060 = vmatpush1.bf16.msra.mxu1 %v7059_v53  ;;  %1633 = vmatpush1.bf16.msra.mxu0 %v7060_v11 }
  0x36   : > { %1203 = vst [vmem:[#allocation2 + $0x5c] sm:$0xf] %v1202_v55  ;;  %v1048_v56 = vsel %vm7456_vm6, %v1046_v45, %v1047_v4  ;;  %v1053_v9 = vrot.slane %v603_v47, 5  ;;  %v7630_v12 = vrot.slane %v568_v33, 7  ;;  %v7635_v4 = vrot.slane %v10693_v50, 5  ;;  %901 = vrot.lane.b32.xlu1 %v7581_v30, %s7292_s20  ;;  %2061 = vmatprep.subr.bf16.mxu1 %v10712_v15 }
  0x37   : > { %1200 = vst.msk [vmem:[#allocation2 + $0x54] sm:$0xf] %vm807_vm5, %v1048_v56  ;;  %v1059_v24 = vor.u32 %v1058_v1, %v1056_v61  ;;  %v1067_v13 = vrot.slane %v624_v49, 4  ;;  %v1209_v33 = vld [vmem:[#allocation2 + $0x7c] sm:$0xf]  ;;  %v7644_v20 = vpack.c.bf16 %v401_v44, %v401_v44  ;;  %v7646_v23 = vpack.c.bf16 %v404_v52, %v404_v52  ;;  %1634 = vmatprep.subr.bf16.mxu0 %v10712_v15 }
  0x38   : > { %v1054_v34 = vor.u32 %v1053_v9, %v1052_v8  ;;  %v7649_v45 = vpack.c.bf16 %v403_v2, %v403_v2  ;;  %v366_v55 = vsel %vm7386_vm2, 0, %v365_v3  ;;  %v7062_v44 = vld [vmem:[%s10685_s1 + $0x78] sm:$0xff]   ;;  %v406_v3 = vld [vmem:[%s7404_s17 + $0x88] sm:$0xff]  ;;  %vm287_vm8 = vcmask 516096  }
  0x39   : > { %v1060_v31 = vrot.slane %v1059_v24, 4  ;;  %v1068_v32 = vor.u32 %v1067_v13, %v7635_v4  ;;  %v616_v52 = vshrl.u32 %v7644_v20, 16  ;;  %v619_v53 = vshll.u32 %v7644_v20, 16  ;;  %899 = vrot.lane.b32.xlu0 %v7644_v20, %s7292_s20  ;;  %367 = vst [vmem:[#allocation2 + $0x9c] sm:$0x8] %v366_v55  ;;  %v405_v24 = vld [vmem:[%s7404_s17 + $0x80] sm:$0xff]  ;;  %2062 = vmatpush1.bf16.msra.mxu1 %v7061_v14 }
  0x3a   : > { %v1055_v1 = vrot.slane %v1054_v34, 4  ;;  %v640_v2 = vshrl.u32 %v7646_v23, 16  ;;  %v10692_v9 = vshll.u32 %v7646_v23, 16  ;;  %905 = vrot.lane.b32.xlu1 %v7646_v23, %s7292_s20  ;;  %v632_v11 = vshrl.u32 %v7649_v45, 16  ;;  %v7063_v55 = vld [vmem:[%s10685_s1 + $0x8] sm:$0xff]   ;;  %1635 = vmatpush1.bf16.msra.mxu0 %v7062_v44 }
  0x3b   : > { %v1206_v56 = vsel %vm7468_vm7, %v1060_v31, %v1205_v6  ;;  %v1069_v8 = vrot.slane %v1068_v32, 4  ;;  %v7673_v13 = vrot.slane %v584_v62, 7  ;;  %v1061_v6 = vrot.slane %v616_v52, 4  ;;  %v368_v32 = vld [vmem:[#allocation2 + $0xac] sm:$0x8]  ;;  %2063 = vmatprep.subr.bf16.mxu1 %v10712_v15  ;;  %1636 = vmatprep.subr.bf16.mxu0 %v10712_v15 }
  0x3c   : > { %1207 = vst [vmem:[#allocation2 + $0x6c] sm:$0xf] %v1206_v56  ;;  %v1057_v34 = vsel %vm7456_vm6, %v1055_v1, %v1056_v61  ;;  %v1062_v31 = vrot.slane %v619_v53, 5  ;;  %v7686_v62 = vrot.slane %v592_v58, 7  ;;  %v7693_v1 = vrot.slane %v10692_v9, 5  ;;  %v7064_v58 = vld [vmem:[%s10685_s1 + $0x70] sm:$0xff]  }
  0x3d   : > { %1204 = vst.msk [vmem:[#allocation2 + $0x64] sm:$0xf] %vm807_vm5, %v1057_v34  ;;  %v1210_v61 = vsel %vm7468_vm7, %v1069_v8, %v1209_v33  ;;  %v1076_v14 = vrot.slane %v640_v2, 4  ;;  %v7704_v56 = vor.u32 %v571_v39, %v7630_v12  ;;  %v7708_v33 = vrot.slane %v608_v42, 7  ;;  %v1213_v34 = vld [vmem:[#allocation2 + $0x8c] sm:$0xf]  ;;  %903 = vrot.lane.b32.xlu0 %v7649_v45, %s7292_s20  ;;  %2064 = vmatpush1.bf16.msra.mxu1 %v7063_v55 }
  0x3e   : > { %1211 = vst [vmem:[#allocation2 + $0x7c] sm:$0xf] %v1210_v61  ;;  %v1063_v8 = vor.u32 %v1062_v31, %v1061_v6  ;;  %v10703_v44 = vshll.u32 %v7649_v45, 16  ;;  %v1070_v22 = vrot.slane %v632_v11, 4  ;;  %v7717_v39 = vpack.c.bf16 %v406_v3, %v406_v3  ;;  %v408_v42 = vld [vmem:[%s7404_s17 + $0x98] sm:$0xff]  ;;  %v7065_v3 = vld [vmem:[%s10685_s1] sm:$0xff]   ;;  %1637 = vmatpush1.bf16.msra.mxu0 %v7064_v58  ;;  %2065 = vmatprep.subr.bf16.mxu1 %v10712_v15 }
  0x3f   : > { %10744 = vst [vmem:[#allocation8_spill] sm:$0xff] %v7704_v56  ;;  %v1077_v9 = vor.u32 %v1076_v14, %v7693_v1  ;;  %v7719_v50 = vpack.c.bf16 %v405_v24, %v405_v24  ;;  %v7725_v6 = vor.u32 %v587_v63, %v7673_v13  ;;  %v369_v14 = vsel %vm7386_vm2, 0, %v368_v32  ;;  %v7066_v32 = vld [vmem:[%s10685_s1 + $0x68] sm:$0xff]   ;;  %1638 = vmatprep.subr.bf16.mxu0 %v10712_v15 }
  0x40   : > { %v1064_v31 = vrot.slane %v1063_v8, 4  ;;  %v1071_v61 = vrot.slane %v10703_v44, 5  ;;  %v656_v36 = vshrl.u32 %v7717_v39, 16  ;;  %v10697_v40 = vshll.u32 %v7717_v39, 16  ;;  %909 = vrot.lane.b32.xlu1 %v7717_v39, %s7292_s20  ;;  %370 = vst [vmem:[#allocation2 + $0xac] sm:$0x8] %v369_v14 }
  0x41   : > { %10745 = vst [vmem:[#allocation9_spill] sm:$0xff] %v7725_v6  ;;  %v1078_v24 = vrot.slane %v1077_v9, 4  ;;  %v10702_v63 = vshrl.u32 %v7719_v50, 16  ;;  %v10701_v8 = vshll.u32 %v7719_v50, 16  ;;  %907 = vrot.lane.b32.xlu0 %v7719_v50, %s7292_s20  ;;  %v7748_v60 = vpack.c.bf16 %v408_v42, %v408_v42  ;;  %2066 = vmatpush1.bf16.msra.mxu1 %v7065_v3 }
  0x42   : > { %v1066_v9 = vsel %vm7456_vm6, %v1064_v31, %v7635_v4  ;;  %v1072_v55 = vor.u32 %v1071_v61, %v1070_v22  ;;  %v7754_v58 = vrot.slane %v600_v43, 7  ;;  %v1083_v22 = vrot.slane %v10697_v40, 5  ;;  %v371_v31 = vld [vmem:[#allocation2 + $0xbc] sm:$0x8]  ;;  %v410_v61 = vld [vmem:[%s7404_s17 + $0xa8] sm:$0xff]  ;;  %v409_v40 = vld [vmem:[%s7404_s17 + $0xa0] sm:$0xff]  ;;  %1639 = vmatpush1.bf16.msra.mxu0 %v7066_v32  ;;  %2075 = vmatprep.subr.bf16.mxu1 %v10712_v15 }
  0x43   : > { %10746 = vst [vmem:[#allocation10_spill] sm:$0xff] %v7748_v60  ;;  %1208 = vst.msk [vmem:[#allocation2 + $0x74] sm:$0xf] %vm807_vm5, %v1066_v9  ;;  %v1214_v4 = vsel %vm7468_vm7, %v1078_v24, %v1213_v34  ;;  %v1085_v42 = vrot.slane %v656_v36, 4  ;;  %v7767_v14 = vrot.slane %v624_v49, 7  ;;  %v1079_v34 = vrot.slane %v10702_v63, 4  ;;  %1640 = vmatprep.subr.bf16.mxu0 %v10712_v15 }
  0x44   : > { %1215 = vst [vmem:[#allocation2 + $0x8c] sm:$0xf] %v1214_v4  ;;  %v1073_v43 = vrot.slane %v1072_v55, 4  ;;  %v1217_v9 = vld [vmem:[#allocation2 + $0x9c] sm:$0xf]  ;;  %v1080_v24 = vrot.slane %v10701_v8, 5  ;;  %913 = vrot.lane.b32.xlu1 %v7748_v60, %s7292_s20  ;;  %v7784_v8 = vpack.c.bf16 %v407_v25, %v407_v25 }
  0x45   : > { %v7068_v49 = vld [vmem:[%s10685_s1 + $0x60] sm:$0xff]   ;;  %v1086_v4 = vor.u32 %v1085_v42, %v1083_v22  ;;  %v10709_v55 = vshrl.u32 %v7748_v60, 16  ;;  %v10704_v35 = vshll.u32 %v7748_v60, 16  ;;  %v7788_v3 = vrot.slane %v616_v52, 7  ;;  %2076 = vmatpush2.bf16.msra.mxu1 %v7067_v37  ;;  %v7070_v37 = vld [vmem:[%s10685_s1 + $0xb8] sm:$0xff]  }
  0x46   : > { %v1075_v63 = vsel %vm7456_vm6, %v1073_v43, %v7693_v1  ;;  %v1081_v44 = vor.u32 %v1080_v24, %v1079_v34  ;;  %v372_v42 = vsel %vm7386_vm2, 0, %v371_v31  ;;  %v7799_v25 = vrot.slane %v640_v2, 7  ;;  %911 = vrot.lane.b32.xlu0 %v7784_v8, %s7292_s20  ;;  %1641 = vmatpush1.bf16.msra.mxu0 %v7068_v49 }
  0x47   : > { %1212 = vst.msk [vmem:[#allocation2 + $0x84] sm:$0xf] %vm807_vm5, %v1075_v63  ;;  %v1087_v52 = vrot.slane %v1086_v4, 4  ;;  %v7804_v32 = vrot.slane %v10704_v35, 5  ;;  %v1094_v1 = vrot.slane %v10709_v55, 4  ;;  %v10706_v43 = vshrl.u32 %v7784_v8, 16  ;;  %2077 = vmatprep.subr.bf16.mxu1 %v10712_v15  ;;  %1650 = vmatprep.subr.bf16.mxu0 %v10712_v15 }
  0x48   : > { %373 = vst [vmem:[#allocation2 + $0xbc] sm:$0x8] %v372_v42  ;;  %v1082_v31 = vrot.slane %v1081_v44, 4  ;;  %v10705_v2 = vshll.u32 %v7784_v8, 16  ;;  %v7812_v34 = vpack.c.bf16 %v410_v61, %v410_v61  ;;  %v7069_v63 = vld [vmem:[%s10685_s1 + $0x50] sm:$0xff]   ;;  %v7820_v35 = vpack.c.bf16 %v409_v40, %v409_v40  ;;  %v412_v42 = vld [vmem:[%s7404_s17 + $0xb8] sm:$0xff] }
  0x49   : > { %v1218_v24 = vsel %vm7468_vm7, %v1087_v52, %v1217_v9  ;;  %v1095_v4 = vor.u32 %v1094_v1, %v7804_v32  ;;  %v375_v44 = vsel %vm7386_vm2, 0, %v374_v57  ;;  %v7832_v61 = vor.u32 %v603_v47, %v7754_v58  ;;  %v1221_v9 = vld [vmem:[#allocation2 + $0xac] sm:$0xf]  ;;  %v377_v1 = vld [vmem:[#allocation2 + $0xdc] sm:$0x8]  ;;  %2078 = vmatpush2.bf16.msra.mxu1 %v7069_v63 }
  0x4a   : > { %10747 = vst [vmem:[#allocation11_spill] sm:$0xff] %v7812_v34  ;;  %10748 = vst [vmem:[#allocation12_spill] sm:$0xff] %v7820_v35  ;;  %v1084_v40 = vsel %vm7456_vm6, %v1082_v31, %v1083_v22  ;;  %v1088_v57 = vrot.slane %v10706_v43, 4  ;;  %v1089_v49 = vrot.slane %v10705_v2, 5  ;;  %917 = vrot.lane.b32.xlu1 %v7812_v34, %s7292_s20  ;;  %v10708_v47 = vshrl.u32 %v7812_v34, 16  ;;  %915 = vrot.lane.b32.xlu0 %v7820_v35, %s7292_s20  ;;  %v7071_v2 = vld [vmem:[%s10685_s1 + $0x48] sm:$0xff]  }
  0x4b   : > { %10749 = vst [vmem:[#allocation13_spill] sm:$0xff] %v7832_v61  ;;  %1219 = vst [vmem:[#allocation2 + $0x9c] sm:$0xf] %v1218_v24  ;;  %v1096_v18 = vrot.slane %v1095_v4, 4  ;;  %v10707_v22 = vshll.u32 %v7812_v34, 16  ;;  %v10710_v52 = vshrl.u32 %v7820_v35, 16  ;;  %v7863_v43 = vor.u32 %v619_v53, %v7788_v3  ;;  %1651 = vmatpush2.bf16.msra.mxu0 %v7070_v37  ;;  %2079 = vmatprep.subr.bf16.mxu1 %v10712_v15 }
  0x4c   : > { %376 = vst [vmem:[#allocation2 + $0xcc] sm:$0x8] %v375_v44  ;;  %1216 = vst.msk [vmem:[#allocation2 + $0x94] sm:$0xf] %vm807_vm5, %v1084_v40  ;;  %v7851_v31 = vrot.slane %v632_v11, 7  ;;  %v1090_v24 = vor.u32 %v1089_v49, %v1088_v57  ;;  %v10711_v44 = vshll.u32 %v7820_v35, 16  ;;  %v7854_v40 = vpack.c.bf16 %v412_v42, %v412_v42  ;;  %1652 = vmatprep.subr.bf16.mxu0 %v10712_v15 }
  0x4d   : > { %v411_v4 = vld [vmem:[%s7404_s17 + $0xb0] sm:$0xff]  ;;  %vm288_vm9 = vsmask.f32 256  ;;  %10751 = vst [vmem:[#allocation15_spill] sm:$0xff] %v7863_v43  ;;  %v1222_v11 = vsel %vm7468_vm7, %v1096_v18, %v1221_v9  ;;  %v1101_v42 = vrot.slane %v10707_v22, 5  ;;  %v1103_v63 = vrot.slane %v10708_v47, 4  ;;  %2080 = vmatpush2.bf16.msra.mxu1 %v7071_v2 }
  0x4e   : > { %10750 = vst [vmem:[#allocation14_spill] sm:$0xff] %v7854_v40  ;;  %v414_v57 = vld [vmem:[%s7404_s17 + $0xc8] sm:$0xff]  ;;  %v7072_v49 = vld [vmem:[%s10685_s1 + $0xb0] sm:$0xff]   ;;  %v7878_v20 = vrot.slane %v656_v36, 7  ;;  %1223 = vst [vmem:[#allocation2 + $0xac] sm:$0xf] %v1222_v11  ;;  %921 = vrot.lane.b32.xlu1 %v7854_v40, %s7292_s20 }
  0x4f   : > { %v1091_v53 = vrot.slane %v1090_v24, 4  ;;  %v1097_v9 = vrot.slane %v10710_v52, 4  ;;  %v1098_v18 = vrot.slane %v10711_v44, 5  ;;  %v413_v37 = vld [vmem:[%s7404_s17 + $0xc0] sm:$0xff]  ;;  %v380_v22 = vld [vmem:[#allocation2 + $0xec] sm:$0x8]  ;;  %v1104_v47 = vor.u32 %v1103_v63, %v1101_v42  ;;  %1653 = vmatpush2.bf16.msra.mxu0 %v7072_v49  ;;  %vm7974_vm11 = vmand %vm287_vm8, %vm288_vm9 }
  0x50   : > { %v1225_v55 = vld [vmem:[#allocation2 + $0xbc] sm:$0xf]  ;;  %v10714_v11 = vshll.u32 %v7854_v40, 16  ;;  %v7890_v24 = vpack.c.bf16 %v411_v4, %v411_v4  ;;  %v10753_v52 = vshll.u32 %v7649_v45, 16  ;;  %v378_v63 = vsel %vm7386_vm2, 0, %v377_v1  ;;  %v7073_v15 = vld [vmem:[%s10685_s1 + $0x40] sm:$0xff]  }
  0x51   : > { %v1093_v44 = vsel %vm7456_vm6, %v1091_v53, %v7804_v32  ;;  %v1099_v61 = vor.u32 %v1098_v18, %v1097_v9  ;;  %v10755_v4 = vshrl.u32 %v7719_v50, 16  ;;  %v1105_v45 = vrot.slane %v1104_v47, 4  ;;  %379 = vst [vmem:[#allocation2 + $0xdc] sm:$0x8] %v378_v63  ;;  %v7077_v18 = vld [vmem:[%s10685_s1 + $0xa8] sm:$0xff]  }
  0x52   : > { %10752 = vst [vmem:[#allocation16_spill] sm:$0xff] %v7890_v24  ;;  %v7895_v43 = vor.u32 %v10753_v52, %v7851_v31  ;;  %1220 = vst.msk [vmem:[#allocation2 + $0xa4] sm:$0xf] %vm807_vm5, %v1093_v44  ;;  %v7912_v52 = vrot.slane %v10714_v11, 5  ;;  %v10756_v32 = vshrl.u32 %v7854_v40, 16  ;;  %919 = vrot.lane.b32.xlu0 %v7890_v24, %s7292_s20  ;;  %v696_v1 = vshrl.u32 %v7890_v24, 16 }
  0x53   : > { %v7907_v36 = vrot.slane %v10755_v4, 7  ;;  %v1100_v2 = vrot.slane %v1099_v61, 4  ;;  %v7920_v44 = vpack.c.bf16 %v414_v57, %v414_v57  ;;  %v10758_v47 = vmov 0   ;;  %v1229_v49 = vld [vmem:[#allocation2 + $0xcc] sm:$0xf] }
  0x54   : > { %10754 = vst [vmem:[#allocation17_spill] sm:$0xff] %v7895_v43  ;;  %v1112_v53 = vrot.slane %v10756_v32, 4  ;;  %2081 = vmatprep.subr.bf16.mxu1 %v10758_v47  ;;  %1654 = vmatprep.subr.bf16.mxu0 %v10758_v47  ;;  %v1226_v63 = vsel %vm7468_vm7, %v1105_v45, %v1225_v55  ;;  %v7930_v4 = vpack.c.bf16 %v413_v37, %v413_v37  ;;  %v381_v57 = vsel %vm7386_vm2, 0, %v380_v22  ;;  %v416_v32 = vld [vmem:[%s7404_s17 + $0xd8] sm:$0xff]  ;;  %v415_v37 = vld [vmem:[%s7404_s17 + $0xd0] sm:$0xff]  ;;  %v7078_v22 = vld [vmem:[%s10685_s1 + $0xa0] sm:$0xff]  }
  0x55   : > { %10757 = vst [vmem:[#allocation18_spill] sm:$0xff] %v7920_v44  ;;  %v10760_v11 = vshrl.u32 %v7748_v60, 16  ;;  %1227 = vst [vmem:[#allocation2 + $0xbc] sm:$0xf] %v1226_v63  ;;  %v1102_v43 = vsel %vm7456_vm6, %v1100_v2, %v1101_v42  ;;  %v1106_v6 = vrot.slane %v696_v1, 4  ;;  %v10761_v55 = vshll.u32 %v7890_v24, 16  ;;  %925 = vrot.lane.b32.xlu1 %v7920_v44, %s7292_s20  ;;  %2082 = vmatpush2.bf16.msra.mxu1 %v7073_v15 }
  0x56   : > { %v1113_v61 = vor.u32 %v1112_v53, %v7912_v52  ;;  %10759 = vst [vmem:[#allocation19_spill] sm:$0xff] %v7930_v4  ;;  %382 = vst [vmem:[#allocation2 + $0xec] sm:$0x8] %v381_v57  ;;  %vm517_vm10 = vsmask.f32 4368  ;;  %v720_v42 = vshrl.u32 %v7920_v44, 16  ;;  %923 = vrot.lane.b32.xlu0 %v7930_v4, %s7292_s20  ;;  %1655 = vmatpush2.bf16.msra.mxu0 %v7077_v18  ;;  %v7960_v24 = vpack.c.bf16 %v416_v32, %v416_v32 }
  0x57   : > { %v7937_v9 = vrot.slane %v10760_v11, 7  ;;  %v1107_v45 = vrot.slane %v10761_v55, 5  ;;  %1224 = vst.msk [vmem:[#allocation2 + $0xb4] sm:$0xf] %vm807_vm5, %v1102_v43  ;;  %v10717_v53 = vshll.u32 %v7920_v44, 16  ;;  %v712_v2 = vshrl.u32 %v7930_v4, 16  ;;  %1656 = vmatprep.subr.bf16.mxu0 %v10758_v47  ;;  %4273 = vmatprep.subr.bf16.mxu1 %v10758_v47  ;;  %vm8026_vm13 = vmor %vm288_vm9, %vm517_vm10 }
  0x58   : > { %v1114_v11 = vrot.slane %v1113_v61, 4  ;;  %v10762_v63 = vshrl.u32 %v7784_v8, 16  ;;  %10763 = vst [vmem:[#allocation20_spill] sm:$0xff] %v7960_v24  ;;  %v10764_v43 = vshrl.u32 %v7812_v34, 16  ;;  %v1121_v56 = vrot.slane %v720_v42, 4 }
  0x59   : > { %v1108_v57 = vor.u32 %v1107_v45, %v1106_v6  ;;  %v290_v32 = vld [vmem:[#allocation2 + $0x10] sm:$0x1]  ;;  %v10768_v45 = vshrl.u32 %v7820_v35, 16  ;;  %v1115_v34 = vrot.slane %v712_v2, 4  ;;  %929 = vrot.lane.b32.xlu1 %v7960_v24, %s7292_s20  ;;  %v736_v44 = vshrl.u32 %v7960_v24, 16 }
  0x5a   : > { %v7957_v15 = vrot.slane %v10762_v63, 7  ;;  %v7966_v61 = vrot.slane %v10764_v43, 7  ;;  %v1230_v18 = vsel %vm7468_vm7, %v1114_v11, %v1229_v49  ;;  %v1119_v63 = vrot.slane %v10717_v53, 5  ;;  %1657 = vmatpush2.bf16.msra.mxu0 %v7078_v22  ;;  %v383_v35 = vld [vmem:[#allocation2 + $0xfc] sm:$0x8] }
  0x5b   : > { %v7980_v55 = vrot.slane %v10768_v45, 7  ;;  %1231 = vst [vmem:[#allocation2 + $0xcc] sm:$0xf] %v1230_v18  ;;  %v1109_v43 = vrot.slane %v1108_v57, 4  ;;  %v10770_v49 = vshll.u32 %v7930_v4, 16  ;;  %v7988_v60 = vpack.c.bf16 %v415_v37, %v415_v37  ;;  %2534 = vmatprep.subr.bf16.mxu0 %v10758_v47 }
  0x5c   : > { %10765 = vst [vmem:[#allocation21_spill] sm:$0xff] %v7966_v61  ;;  %v1122_v53 = vor.u32 %v1121_v56, %v1119_v63  ;;  %v10724_v61 = vshll.u32 %v7960_v24, 16  ;;  %v10771_v45 = vshrl.u32 %v7854_v40, 16  ;;  %v291_v56 = vsel %vm7974_vm11, 0, %v290_v32 }
  0x5d   : > { %10769 = vst [vmem:[#allocation22_spill] sm:$0xff] %v7980_v55  ;;  %v1116_v11 = vrot.slane %v10770_v49, 5  ;;  %v1111_v57 = vsel %vm7456_vm6, %v1109_v43, %v7912_v52  ;;  %v1233_v49 = vld [vmem:[#allocation2 + $0xdc] sm:$0xf]  ;;  %v418_v55 = vld [vmem:[%s7404_s17 + $0xe8] sm:$0xff]  ;;  %v8001_v37 = vrot.slane %v696_v1, 7  ;;  %927 = vrot.lane.b32.xlu0 %v7988_v60, %s7292_s20 }
  0x5e   : > { %v7992_v18 = vrot.slane %v10771_v45, 7  ;;  %1228 = vst.msk [vmem:[#allocation2 + $0xc4] sm:$0xf] %vm807_vm5, %v1111_v57  ;;  %v1123_v22 = vrot.slane %v1122_v53, 4  ;;  %v1128_v45 = vrot.slane %v10724_v61, 5  ;;  %v1130_v40 = vrot.slane %v736_v44, 4 }
  0x5f   : > { %v1117_v4 = vor.u32 %v1116_v11, %v1115_v34  ;;  %10773 = vst [vmem:[#allocation24_spill] sm:$0xff] %v8001_v37  ;;  %292 = vst [vmem:[#allocation2 + $0x10] sm:$0x1] %v291_v56  ;;  %v293_v34 = vld [vmem:[#allocation2 + $0x20] sm:$0x1]  ;;  %v728_v32 = vshrl.u32 %v7988_v60, 16 }
  0x60   : > { %10772 = vst [vmem:[#allocation23_spill] sm:$0xff] %v7992_v18  ;;  %v10729_v43 = vshll.u32 %v7988_v60, 16  ;;  %vm808_vm12 = vsmask.f32 7938  ;;  %v417_v1 = vld [vmem:[%s7404_s17 + $0xe0] sm:$0xff]  ;;  %v8011_v11 = vrot.slane %v720_v42, 7  ;;  %v1234_v53 = vsel %vm7468_vm7, %v1123_v22, %v1233_v49 }
  0x61   : > { %v1118_v52 = vrot.slane %v1117_v4, 4  ;;  %v1131_v57 = vor.u32 %v1130_v40, %v1128_v45  ;;  %v384_v61 = vsel %vm7386_vm2, 0, %v383_v35  ;;  %1235 = vst [vmem:[#allocation2 + $0xdc] sm:$0xf] %v1234_v53  ;;  %v8017_v24 = vrot.slane %v712_v2, 7  ;;  %vm8040_vm14 = vmand %vm807_vm5, %vm808_vm12 }
  0x62   : > { %v1237_v56 = vld [vmem:[#allocation2 + $0xec] sm:$0xf]  ;;  %v1124_v18 = vrot.slane %v728_v32, 4  ;;  %v1125_v37 = vrot.slane %v10729_v43, 5  ;;  %385 = vst [vmem:[#allocation2 + $0xfc] sm:$0x8] %v384_v61  ;;  %v8030_v35 = vpack.c.bf16 %v418_v55, %v418_v55  ;;  %v8032_v2 = vpack.c.bf16 %v417_v1, %v417_v1 }
  0x63   : > { %v1120_v4 = vsel %vm7456_vm6, %v1118_v52, %v1119_v63  ;;  %v1132_v42 = vrot.slane %v1131_v57, 4  ;;  %v294_v63 = vsel %vm7974_vm11, 0, %v293_v34  ;;  %v8036_v49 = vrot.slane %v736_v44, 7 }
  0x64   : > { %1232 = vst.msk [vmem:[#allocation2 + $0xd4] sm:$0xf] %vm807_vm5, %v1120_v4  ;;  %v1126_v22 = vor.u32 %v1125_v37, %v1124_v18  ;;  %295 = vst [vmem:[#allocation2 + $0x20] sm:$0x1] %v294_v63  ;;  %v10778_v52 = vshll.u32 %v7422_v26, 16  ;;  %v526_v1 = vrot.slane %v7436_v38, 4  ;;  %933 = vrot.lane.b32.xlu1 %v8030_v35, %s7292_s20  ;;  %931 = vrot.lane.b32.xlu0 %v8032_v2, %s7292_s20 }
  0x65   : > { %v1238_v53 = vsel %vm7468_vm7, %v1132_v42, %v1237_v56  ;;  %v752_v44 = vshrl.u32 %v8030_v35, 16  ;;  %v10727_v18 = vshll.u32 %v8030_v35, 16  ;;  %v744_v37 = vshrl.u32 %v8032_v2, 16 }
  0x66   : > { %v533_v55 = vor.u32 %v10778_v52, %v7558_v7  ;;  %1239 = vst [vmem:[#allocation2 + $0xec] sm:$0xf] %v1238_v53  ;;  %v8057_v26 = vrot.slane %v728_v32, 7  ;;  %v1127_v38 = vrot.slane %v1126_v22, 4  ;;  %v810_v7 = vld [vmem:[#allocation2 + $0x10] sm:$0xf] }
  0x67   : > { %v10728_v34 = vshll.u32 %v8032_v2, 16  ;;  %v811_v4 = vsel %vm8040_vm14, %v7443_v46, %v810_v7  ;;  %v1137_v56 = vrot.slane %v10727_v18, 5  ;;  %v1139_v42 = vrot.slane %v752_v44, 4  ;;  %v386_v32 = vld [vmem:[#allocation2 + $0x10c] sm:$0x8]  ;;  %v419_v46 = vld [vmem:[%s7404_s17 + $0xf0] sm:$0xff] }
  0x68   : > { %v534_v57 = vsel %vm8026_vm13, %v526_v1, %v533_v55  ;;  %vm278_vm15 = vcmask 1043456   ;;  %v1129_v63 = vsel %vm7456_vm6, %v1127_v38, %v1128_v45  ;;  %812 = vst [vmem:[#allocation2 + $0x10] sm:$0xf] %v811_v4  ;;  %v8070_v22 = vrot.slane %v752_v44, 7  ;;  %v420_v1 = vld [vmem:[%s7404_s17 + $0xf8] sm:$0xff] }
  0x69   : > { %814 = vst.msk [vmem:[#allocation2 + $0x18] sm:$0xf] %vm807_vm5, %v534_v57  ;;  %v1133_v52 = vrot.slane %v744_v37, 4  ;;  %v1134_v55 = vrot.slane %v10728_v34, 5  ;;  %1236 = vst.msk [vmem:[#allocation2 + $0xe4] sm:$0xf] %vm807_vm5, %v1129_v63  ;;  %v1140_v53 = vor.u32 %v1139_v42, %v1137_v56 }
  0x6a   : > { %v8077_v7 = vrot.slane %v744_v37, 7  ;;  %vm279_vm0 = vcmask 523268   ;;  %v10779_v57 = vshll.u32 %v7424_v27, 16  ;;  %v296_v45 = vld [vmem:[#allocation2 + $0x30] sm:$0x1]  ;;  %v10780_v44 = vshll.u32 %v7719_v50, 16 }
  0x6b   : > { %v1241_v4 = vld [vmem:[#allocation2 + $0xfc] sm:$0xf]  ;;  %v1135_v34 = vor.u32 %v1134_v55, %v1133_v52  ;;  %vm280_vm1 = vmor %vm279_vm0, %vm278_vm15  ;;  %v542_v63 = vrot.slane %v7438_v41, 4  ;;  %v387_v37 = vsel %vm7386_vm2, 0, %v386_v32  ;;  %v1141_v42 = vrot.slane %v1140_v53, 4 }
  0x6c   : > { %v549_v18 = vor.u32 %v10779_v57, %v7577_v19  ;;  %v8085_v38 = vor.u32 %v10780_v44, %v7907_v36  ;;  %v815_v43 = vld [vmem:[#allocation2 + $0x20] sm:$0xf]  ;;  %281 = vst.msk [vmem:[#allocation2] sm:$0xff] %vm280_vm1, %v10758_v47  ;;  %282 = vst.msk [vmem:[#allocation2 + $0x8] sm:$0xff] %vm280_vm1, %v10758_v47  ;;  %v8095_v27 = vpack.c.bf16 %v420_v1, %v420_v1  ;;  %v558_v41 = vrot.slane %v7486_v10, 4 }
  0x6d   : > { %284 = vst.msk [vmem:[#allocation2 + $0x110] sm:$0xff] %vm280_vm1, %v10758_v47  ;;  %285 = vst.msk [vmem:[#allocation2 + $0x118] sm:$0xff] %vm280_vm1, %v10758_v47  ;;  %v8097_v19 = vpack.c.bf16 %v419_v46, %v419_v46  ;;  %v1136_v50 = vrot.slane %v1135_v34, 4  ;;  %v816_v0 = vsel %vm8040_vm14, %v7446_v48, %v815_v43  ;;  %v10781_v52 = vshll.u32 %v7426_v28, 16  ;;  %v299_v53 = vld [vmem:[#allocation2 + $0x40] sm:$0x1] }
  0x6e   : > { %388 = vst [vmem:[#allocation2 + $0x10c] sm:$0x8] %v387_v37  ;;  %v550_v32 = vsel %vm8026_vm13, %v542_v63, %v549_v18  ;;  %v1242_v1 = vsel %vm7468_vm7, %v1141_v42, %v1241_v4  ;;  %817 = vst [vmem:[#allocation2 + $0x20] sm:$0xf] %v816_v0  ;;  %v768_v10 = vshrl.u32 %v8095_v27, 16  ;;  %v771_v34 = vshll.u32 %v8095_v27, 16  ;;  %937 = vrot.lane.b32.xlu1 %v8095_v27, %s7292_s20 }
  0x6f   : > { %v565_v55 = vor.u32 %v10781_v52, %v7604_v54  ;;  %818 = vst.msk [vmem:[#allocation2 + $0x28] sm:$0xf] %vm807_vm5, %v550_v32  ;;  %v760_v48 = vshrl.u32 %v8097_v19, 16  ;;  %935 = vrot.lane.b32.xlu0 %v8097_v19, %s7292_s20  ;;  %1243 = vst [vmem:[#allocation2 + $0xfc] sm:$0xf] %v1242_v1  ;;  %v1138_v28 = vsel %vm7456_vm6, %v1136_v50, %v1137_v56  ;;  %v763_v54 = vshll.u32 %v8097_v19, 16 }
  0x70   : > { %v297_v18 = vsel %vm7974_vm11, 0, %v296_v45  ;;  %v302_v46 = vld [vmem:[#allocation2 + $0x50] sm:$0x1]  ;;  %1240 = vst.msk [vmem:[#allocation2 + $0xf4] sm:$0xf] %vm807_vm5, %v1138_v28  ;;  %vm1577_vm2 = vcmask 523264  }
  0x71   : > { %v566_v43 = vsel %vm8026_vm13, %v558_v41, %v565_v55  ;;  %v8126_v57 = vrot.slane %v768_v10, 7  ;;  %v1146_v44 = vrot.slane %v771_v34, 5  ;;  %v1148_v4 = vrot.slane %v768_v10, 4  ;;  %298 = vst [vmem:[#allocation2 + $0x30] sm:$0x1] %v297_v18 }
  0x72   : > { %822 = vst.msk [vmem:[#allocation2 + $0x38] sm:$0xf] %vm807_vm5, %v566_v43  ;;  %v305_v56 = vld [vmem:[#allocation2 + $0x60] sm:$0x1]  ;;  %v1142_v63 = vrot.slane %v760_v48, 4  ;;  %v1143_v45 = vrot.slane %v763_v54, 5 }
  0x73   : > { %v574_v37 = vrot.slane %v7630_v12, 4  ;;  %v10782_v42 = vshll.u32 %v7493_v17, 16  ;;  %v308_v50 = vld [vmem:[#allocation2 + $0x70] sm:$0x1]  ;;  %v10783_v0 = vshll.u32 %v7784_v8, 16  ;;  %v1149_v52 = vor.u32 %v1148_v4, %v1146_v44 }
  0x74   : > { %v300_v55 = vsel %vm7974_vm11, 0, %v299_v53  ;;  %v590_v1 = vrot.slane %v7673_v13, 4  ;;  %v311_v10 = vld [vmem:[#allocation2 + $0x80] sm:$0x1]  ;;  %v1144_v43 = vor.u32 %v1143_v45, %v1142_v63  ;;  %v10784_v17 = vshll.u32 %v7506_v29, 16 }
  0x75   : > { %v581_v41 = vor.u32 %v10782_v42, %v7617_v5  ;;  %v8142_v32 = vor.u32 %v10783_v0, %v7957_v15  ;;  %v7074_v28 = vld [vmem:[#allocation2] ss:$8 sps:$4 sm:$0xff]   ;;  %301 = vst [vmem:[#allocation2 + $0x40] sm:$0x1] %v300_v55  ;;  %v303_v8 = vsel %vm7974_vm11, 0, %v302_v46  ;;  %v1150_v42 = vrot.slane %v1149_v52, 4 }
  0x76   : > { %v597_v5 = vor.u32 %v10784_v17, %v7686_v62  ;;  %v314_v18 = vld [vmem:[#allocation2 + $0x90] sm:$0x1]  ;;  %v7076_v4 = vld [vmem:[#allocation2 + $0x4] ss:$8 sps:$4 sm:$0xff]   ;;  %304 = vst [vmem:[#allocation2 + $0x50] sm:$0x1] %v303_v8  ;;  %v773_v6 = vor.u32 %v771_v34, %v8126_v57 }
  0x77   : > { %v582_v12 = vsel %vm8026_vm13, %v574_v37, %v581_v41  ;;  %v1245_v53 = vld [vmem:[#allocation2 + $0x10c] sm:$0xf]  ;;  %v606_v13 = vrot.slane %v7754_v58, 4  ;;  %v10785_v63 = vshll.u32 %v7567_v16, 16  ;;  %v10786_v29 = vshll.u32 %v7581_v30, 16  ;;  %6577 = vmatprep.mubr.msk.bf16.mxu1 %vm1577_vm2, %v7076_v4  ;;  %v7082_v57 = vld [vmem:[%s10685_s1 + $0xf8] sm:$0xff]  }
  0x78   : > { %826 = vst.msk [vmem:[#allocation2 + $0x48] sm:$0xf] %vm807_vm5, %v582_v12  ;;  %v317_v37 = vld [vmem:[#allocation2 + $0xa0] sm:$0x1]  ;;  %v1145_v41 = vrot.slane %v1144_v43, 4  ;;  %v598_v46 = vsel %vm8026_vm13, %v590_v1, %v597_v5  ;;  %v306_v0 = vsel %vm7974_vm11, 0, %v305_v56  ;;  %v1246_v16 = vsel %vm7468_vm7, %v1150_v42, %v1245_v53  ;;  %2084 = vmatmul.mubr.bf16.vlgmr.msra.gmra.mxu1 %v7074_v28 }
  0x79   : > { %v613_v45 = vor.u32 %v10785_v63, %v7708_v33  ;;  %v629_v62 = vor.u32 %v10786_v29, %v7767_v14  ;;  %v622_v52 = vrot.slane %v7788_v3, 4  ;;  %v320_v55 = vld [vmem:[#allocation2 + $0xb0] sm:$0x1]  ;;  %830 = vst.msk [vmem:[#allocation2 + $0x58] sm:$0xf] %vm807_vm5, %v598_v46  ;;  %v309_v33 = vsel %vm7974_vm11, 0, %v308_v50 }
  0x7a   : > { %307 = vst [vmem:[#allocation2 + $0x60] sm:$0x1] %v306_v0  ;;  %v638_v58 = vrot.slane %v7851_v31, 4  ;;  %1247 = vst [vmem:[#allocation2 + $0x10c] sm:$0xf] %v1246_v16  ;;  %v1147_v14 = vsel %vm7456_vm6, %v1145_v41, %v1146_v44  ;;  %v10787_v1 = vshll.u32 %v7646_v23, 16 }
  0x7b   : > { %v614_v30 = vsel %vm8026_vm13, %v606_v13, %v613_v45  ;;  %v819_v3 = vld [vmem:[#allocation2 + $0x30] sm:$0xf]  ;;  %v630_v56 = vsel %vm8026_vm13, %v622_v52, %v629_v62  ;;  %310 = vst [vmem:[#allocation2 + $0x70] sm:$0x1] %v309_v33  ;;  %v312_v50 = vsel %vm7974_vm11, 0, %v311_v10  ;;  %v654_v28 = vrot.slane %v7907_v36, 4 }
  0x7c   : > { %834 = vst.msk [vmem:[#allocation2 + $0x68] sm:$0xf] %vm807_vm5, %v614_v30  ;;  %v645_v43 = vor.u32 %v10787_v1, %v7799_v25  ;;  %v323_v31 = vld [vmem:[#allocation2 + $0xc0] sm:$0x1]  ;;  %1244 = vst.msk [vmem:[#allocation2 + $0x104] sm:$0xf] %vm807_vm5, %v1147_v14  ;;  %v820_v44 = vsel %vm8040_vm14, %v7498_v21, %v819_v3 }
  0x7d   : > { %838 = vst.msk [vmem:[#allocation2 + $0x78] sm:$0xf] %vm807_vm5, %v630_v56  ;;  %313 = vst [vmem:[#allocation2 + $0x80] sm:$0x1] %v312_v50  ;;  %v10788_v12 = vshll.u32 %v7717_v39, 16  ;;  %v315_v25 = vsel %vm7974_vm11, 0, %v314_v18 }
  0x7e   : > { %v326_v10 = vld [vmem:[#allocation2 + $0xd0] sm:$0x1]  ;;  %821 = vst [vmem:[#allocation2 + $0x30] sm:$0xf] %v820_v44  ;;  %v646_v17 = vsel %vm8026_vm13, %v638_v58, %v645_v43  ;;  %316 = vst [vmem:[#allocation2 + $0x90] sm:$0x1] %v315_v25 }
  0x7f   : > { %v661_v23 = vor.u32 %v10788_v12, %v7878_v20  ;;  %v670_v21 = vrot.slane %v7957_v15, 4  ;;  %v10789_v5 = vld [vmem:[#allocation10_spill] sm:$0xff]  ;;  %v318_v36 = vsel %vm7974_vm11, 0, %v317_v37  ;;  %842 = vst.msk [vmem:[#allocation2 + $0x88] sm:$0xf] %vm807_vm5, %v646_v17  ;;  %v10792_v13 = vld [vmem:[#allocation21_spill] sm:$0xff] }
  0x80   : > { %v10790_v8 = vshll.u32 %v10789_v5, 16  ;;  %v329_v39 = vld [vmem:[#allocation2 + $0xe0] sm:$0x1]  ;;  %319 = vst [vmem:[#allocation2 + $0xa0] sm:$0x1] %v318_v36  ;;  %v10793_v63 = vld [vmem:[#allocation11_spill] sm:$0xff] }
  0x81   : > { %v823_v20 = vld [vmem:[#allocation2 + $0x40] sm:$0xf]  ;;  %v662_v18 = vsel %vm8026_vm13, %v654_v28, %v661_v23  ;;  %v10794_v15 = vshll.u32 %v10793_v63, 16  ;;  %v10795_v29 = vld [vmem:[#allocation8_spill] sm:$0xff]  ;;  %v10797_v52 = vld [vmem:[#allocation23_spill] sm:$0xff]  ;;  %v324_v3 = vsel %vm7974_vm11, 0, %v323_v31 }
  0x82   : > { %v677_v4 = vor.u32 %v10790_v8, %v7937_v9  ;;  %v10791_v42 = vld [vmem:[#allocation22_spill] sm:$0xff]  ;;  %v321_v9 = vsel %vm7974_vm11, 0, %v320_v55  ;;  %v824_v62 = vsel %vm8040_vm14, %v10795_v29, %v823_v20  ;;  %v827_v37 = vld [vmem:[#allocation2 + $0x50] sm:$0xf]  ;;  %846 = vst.msk [vmem:[#allocation2 + $0x98] sm:$0xf] %vm807_vm5, %v662_v18 }
  0x83   : > { %v686_v53 = vrot.slane %v10791_v42, 4  ;;  %v693_v45 = vor.u32 %v10794_v15, %v10792_v13  ;;  %322 = vst [vmem:[#allocation2 + $0xb0] sm:$0x1] %v321_v9  ;;  %v10796_v46 = vld [vmem:[#allocation24_spill] sm:$0xff]  ;;  %v10798_v16 = vld [vmem:[#allocation14_spill] sm:$0xff]  ;;  %v10800_v58 = vld [vmem:[#allocation9_spill] sm:$0xff] }
  0x84   : > { %v678_v41 = vsel %vm8026_vm13, %v670_v21, %v677_v4  ;;  %v702_v0 = vrot.slane %v10796_v46, 4  ;;  %v10799_v30 = vshll.u32 %v10798_v16, 16  ;;  %825 = vst [vmem:[#allocation2 + $0x40] sm:$0xf] %v824_v62  ;;  %v828_v55 = vsel %vm8040_vm14, %v10800_v58, %v827_v37  ;;  %v831_v1 = vld [vmem:[#allocation2 + $0x60] sm:$0xf] }
  0x85   : > { %850 = vst.msk [vmem:[#allocation2 + $0xa8] sm:$0xf] %vm807_vm5, %v678_v41  ;;  %v694_v14 = vsel %vm8026_vm13, %v686_v53, %v693_v45  ;;  %v718_v56 = vrot.slane %v8017_v24, 4  ;;  %829 = vst [vmem:[#allocation2 + $0x50] sm:$0xf] %v828_v55  ;;  %v10801_v50 = vld [vmem:[#allocation18_spill] sm:$0xff] }
  0x86   : > { %v709_v33 = vor.u32 %v10799_v30, %v10797_v52  ;;  %854 = vst.msk [vmem:[#allocation2 + $0xb8] sm:$0xf] %vm807_vm5, %v694_v14  ;;  %325 = vst [vmem:[#allocation2 + $0xc0] sm:$0x1] %v324_v3  ;;  %v10802_v44 = vshll.u32 %v10801_v50, 16  ;;  %v327_v12 = vsel %vm7974_vm11, 0, %v326_v10 }
  0x87   : > { %v734_v23 = vrot.slane %v8057_v26, 4  ;;  %v332_v31 = vld [vmem:[#allocation2 + $0xf0] sm:$0x1]  ;;  %v10803_v25 = vld [vmem:[#allocation13_spill] sm:$0xff]  ;;  %328 = vst [vmem:[#allocation2 + $0xd0] sm:$0x1] %v327_v12 }
  0x88   : > { %v710_v43 = vsel %vm8026_vm13, %v702_v0, %v709_v33  ;;  %v725_v28 = vor.u32 %v10802_v44, %v8011_v11  ;;  %v832_v17 = vsel %vm8040_vm14, %v10803_v25, %v831_v1  ;;  %v835_v21 = vld [vmem:[#allocation2 + $0x70] sm:$0xf]  ;;  %v330_v11 = vsel %vm7974_vm11, 0, %v329_v39  ;;  %v10808_v53 = vld [vmem:[#allocation15_spill] sm:$0xff]  ;;  %v839_v63 = vld [vmem:[#allocation2 + $0x80] sm:$0xf] }
  0x89   : > { %858 = vst.msk [vmem:[#allocation2 + $0xc8] sm:$0xf] %vm807_vm5, %v710_v43  ;;  %v10804_v5 = vld [vmem:[#allocation20_spill] sm:$0xff]  ;;  %v333_v10 = vsel %vm7974_vm11, 0, %v332_v31  ;;  %833 = vst [vmem:[#allocation2 + $0x60] sm:$0xf] %v832_v17  ;;  %v836_v13 = vsel %vm8040_vm14, %v10808_v53, %v835_v21 }
  0x8a   : > { %v10805_v8 = vshll.u32 %v10804_v5, 16  ;;  %v10806_v36 = vld [vmem:[#allocation12_spill] sm:$0xff]  ;;  %v726_v15 = vsel %vm8026_vm13, %v718_v56, %v725_v28  ;;  %331 = vst [vmem:[#allocation2 + $0xe0] sm:$0x1] %v330_v11  ;;  %334 = vst [vmem:[#allocation2 + $0xf0] sm:$0x1] %v333_v10 }
  0x8b   : > { %v10807_v20 = vshll.u32 %v10806_v36, 16  ;;  %837 = vst [vmem:[#allocation2 + $0x70] sm:$0xf] %v836_v13  ;;  %v843_v45 = vld [vmem:[#allocation2 + $0x90] sm:$0xf]  ;;  %v10812_v0 = vld [vmem:[#allocation19_spill] sm:$0xff] }
  0x8c   : > { %v741_v4 = vor.u32 %v10805_v8, %v8036_v49  ;;  %v10809_v49 = vld [vmem:[#allocation17_spill] sm:$0xff]  ;;  %862 = vst.msk [vmem:[#allocation2 + $0xd8] sm:$0xf] %vm807_vm5, %v726_v15  ;;  %v10810_v9 = vld [vmem:[#allocation16_spill] sm:$0xff]  ;;  %v844_v37 = vsel %vm8040_vm14, %v8085_v38, %v843_v45  ;;  %v847_v41 = vld [vmem:[#allocation2 + $0xa0] sm:$0xf] }
  0x8d   : > { %v685_v18 = vor.u32 %v10807_v20, %v10791_v42  ;;  %v840_v39 = vsel %vm8040_vm14, %v10809_v49, %v839_v63  ;;  %v10811_v29 = vshll.u32 %v10810_v9, 16  ;;  %v10813_v52 = vshll.u32 %v10812_v0, 16  ;;  %845 = vst [vmem:[#allocation2 + $0x90] sm:$0xf] %v844_v37  ;;  %v851_v55 = vld [vmem:[#allocation2 + $0xb0] sm:$0xf] }
  0x8e   : > { %v742_v42 = vsel %vm8026_vm13, %v734_v23, %v741_v4  ;;  %841 = vst [vmem:[#allocation2 + $0x80] sm:$0xf] %v840_v39  ;;  %v10814_v30 = vshll.u32 %v7988_v60, 16  ;;  %v10815_v58 = vshll.u32 %v8032_v2, 16  ;;  %v848_v38 = vsel %vm8040_vm14, %v8142_v32, %v847_v41  ;;  %v855_v3 = vld [vmem:[#allocation2 + $0xc0] sm:$0xf]  ;;  %v876_v17 = vpop.permute.xlu0 %875 }
  0x8f   : > { %v701_v62 = vor.u32 %v10811_v29, %v10796_v46  ;;  %866 = vst.msk [vmem:[#allocation2 + $0xe8] sm:$0xf] %vm807_vm5, %v742_v42  ;;  %v717_v16 = vor.u32 %v10813_v52, %v8017_v24  ;;  %v762_v14 = vrot.slane %v760_v48, 7  ;;  %849 = vst [vmem:[#allocation2 + $0xa0] sm:$0xf] %v848_v38  ;;  %v852_v24 = vsel %vm8040_vm14, %v685_v18, %v851_v55  ;;  %v880_v21 = vpop.permute.xlu1 %879  ;;  %v7085_v36 = vld [vmem:[%s10685_s1 + $0xf0] sm:$0xff]  }
  0x90   : > { %v733_v33 = vor.u32 %v10814_v30, %v8057_v26  ;;  %v749_v46 = vor.u32 %v10815_v58, %v8077_v7  ;;  %v750_v60 = vrot.slane %v8077_v7, 4  ;;  %v10816_v26 = vshll.u32 %v8030_v35, 16  ;;  %853 = vst [vmem:[#allocation2 + $0xb0] sm:$0xf] %v852_v24  ;;  %v859_v32 = vld [vmem:[#allocation2 + $0xd0] sm:$0xf] }
  0x91   : > { %v856_v56 = vsel %vm8040_vm14, %v701_v62, %v855_v3  ;;  %v335_v48 = vld [vmem:[#allocation2 + $0x100] sm:$0x1]  ;;  %v860_v43 = vsel %vm8040_vm14, %v717_v16, %v859_v32  ;;  %v867_v7 = vld [vmem:[#allocation2 + $0xf0] sm:$0xf]  ;;  %vm971_vm3 = vcmask 1043968   ;;  %v765_v28 = vor.u32 %v763_v54, %v762_v14  ;;  %v7089_v49 = vld [vmem:[%s10685_s1 + $0xe8] sm:$0xff]  }
  0x92   : > { %v757_v2 = vor.u32 %v10816_v26, %v8070_v22  ;;  %857 = vst [vmem:[#allocation2 + $0xc0] sm:$0xf] %v856_v56  ;;  %v863_v50 = vld [vmem:[#allocation2 + $0xe0] sm:$0xf]  ;;  %v336_v35 = vsel %vm7974_vm11, 0, %v335_v48  ;;  %v868_v44 = vsel %vm8040_vm14, %v749_v46, %v867_v7  ;;  %v766_v12 = vrot.slane %v762_v14, 4  ;;  %v878_v19 = vpop.permute.xlu0 %877 }
  0x93   : > { %861 = vst [vmem:[#allocation2 + $0xd0] sm:$0xf] %v860_v43  ;;  %v864_v22 = vsel %vm8040_vm14, %v733_v33, %v863_v50  ;;  %337 = vst [vmem:[#allocation2 + $0x100] sm:$0x1] %v336_v35  ;;  %v882_v54 = vpop.permute.xlu1 %881  ;;  %v7079_v5 = vld [vmem:[#allocation2 + $0x14] ss:$8 sps:$4 sm:$0xff]  }
  0x94   : > { %v758_v1 = vsel %vm8026_vm13, %v750_v60, %v757_v2  ;;  %865 = vst [vmem:[#allocation2 + $0xe0] sm:$0xf] %v864_v22  ;;  %869 = vst [vmem:[#allocation2 + $0xf0] sm:$0xf] %v868_v44  ;;  %v774_v23 = vsel %vm8026_vm13, %v766_v12, %v773_v6  ;;  %v8326_v11 = vld [vmem:[#allocation2 + $0x24] ss:$8 sps:$4 sm:$0xff]   ;;  %6517 = vmatprep.mubr.msk.bf16.mxu0 %vm1577_vm2, %v7079_v5  ;;  %6578 = vmatprep.mubr.msk.bf16.mxu1 %vm1577_vm2, %v7079_v5 }
  0x95   : > { %870 = vst.msk [vmem:[#allocation2 + $0xf8] sm:$0xf] %vm807_vm5, %v758_v1  ;;  %874 = vst.msk [vmem:[#allocation2 + $0x108] sm:$0xf] %vm807_vm5, %v774_v23  ;;  %v8342_v63 = vld [vmem:[#allocation2 + $0x34] ss:$8 sps:$4 sm:$0xff]  }
  0x96   : > { %972 = vst.msk [vmem:[#allocation2 + $0x10] sm:$0xf] %vm971_vm3, %v876_v17  ;;  %974 = vst.msk [vmem:[#allocation2 + $0x20] sm:$0xf] %vm971_vm3, %v880_v21  ;;  %v884_v34 = vpop.permute.xlu0 %883  ;;  %v7096_v42 = vld [vmem:[%s10685_s1 + $0xe0] sm:$0xff]   ;;  %v7100_v41 = vld [vmem:[%s10685_s1 + $0xd8] sm:$0xff]  }
  0x97   : > { %973 = vst.msk [vmem:[#allocation2 + $0x18] sm:$0xf] %vm971_vm3, %v878_v19  ;;  %975 = vst.msk [vmem:[#allocation2 + $0x28] sm:$0xf] %vm971_vm3, %v882_v54  ;;  %v886_v27 = vpop.permute.xlu1 %885  ;;  %v8365_v62 = vld [vmem:[#allocation2 + $0x44] ss:$8 sps:$4 sm:$0xff]  }
  0x98   : > { %977 = vst.msk [vmem:[#allocation2 + $0x38] sm:$0xf] %vm971_vm3, %v886_v27  ;;  %976 = vst.msk [vmem:[#allocation2 + $0x30] sm:$0xf] %vm971_vm3, %v884_v34  ;;  %v7104_v16 = vld [vmem:[%s10685_s1 + $0xd0] sm:$0xff]   ;;  %v7111_v38 = vld [vmem:[%s10685_s1 + $0xc8] sm:$0xff]  }
  0x99   : > { %v8386_v33 = vld [vmem:[#allocation2 + $0x54] ss:$8 sps:$4 sm:$0xff]   ;;  %v7115_v14 = vld [vmem:[%s10685_s1 + $0xc0] sm:$0xff]   ;;  %v7130_v7 = vld [vmem:[%s10685_s1 + $0x108] sm:$0xff]  }
  0x9a   : > { %v871_v31 = vld [vmem:[#allocation2 + $0x100] sm:$0xf]  ;;  %v8408_v26 = vld [vmem:[#allocation2 + $0x64] ss:$8 sps:$4 sm:$0xff]   ;;  %v7119_v3 = vld [vmem:[%s10685_s1 + $0x118] sm:$0xff]  }
  0x9b   : > { %v872_v25 = vsel %vm8040_vm14, %v765_v28, %v871_v31  ;;  %v890_v4 = vpop.permute.xlu1 %889  ;;  %v7126_v1 = vld [vmem:[%s10685_s1 + $0x110] sm:$0xff]   ;;  %v7134_v44 = vld [vmem:[%s10685_s1 + $0x100] sm:$0xff]  }
  0x9c   : > { %873 = vst [vmem:[#allocation2 + $0x100] sm:$0xf] %v872_v25  ;;  %979 = vst.msk [vmem:[#allocation2 + $0x48] sm:$0xf] %vm971_vm3, %v890_v4  ;;  %v888_v10 = vpop.permute.xlu0 %887  ;;  %v8429_v43 = vld [vmem:[#allocation2 + $0x74] ss:$8 sps:$4 sm:$0xff]  }
  0x9d   : > { %978 = vst.msk [vmem:[#allocation2 + $0x40] sm:$0xf] %vm971_vm3, %v888_v10  ;;  %v1306_v53 = vld [vmem:[#allocation2 + $0x20] sm:$0xff]  ;;  %v8463_v25 = vld [vmem:[#allocation2 + $0x94] ss:$8 sps:$4 sm:$0xff]  }
  0x9e   : > { %v7081_v8 = vld [vmem:[#allocation2 + $0x10] ss:$8 sps:$4 sm:$0xff]   ;;  %v1307_v13 = vld [vmem:[#allocation2 + $0x28] sm:$0xff]  ;;  %v7116_v5 = vld [vmem:[#allocation2 + $0xb4] ss:$8 sps:$4 sm:$0xff]  }
  0x9f   : > { %1659 = vmatmul.mubr.bf16.vlgmr.msra.gmra.mxu0 %v7081_v8  ;;  %2092 = vmatmul.mubr.bf16.gmra.mxu1 %v7081_v8  ;;  %v894_v20 = vpop.permute.xlu1 %893  ;;  %v8344_v15 = vcombine.low %v1306_v53, %v1307_v13  ;;  %v8362_v29 = vld [vmem:[#allocation2 + $0x30] ss:$8 sps:$4 sm:$0xff]   ;;  %v8450_v6 = vld [vmem:[#allocation2 + $0x84] ss:$8 sps:$4 sm:$0xff]   ;;  %v8519_v13 = vld [vmem:[#allocation2 + $0xf4] ss:$8 sps:$4 sm:$0xff]  }
  0xa0   : > { %2535 = vmatpush1.bf16.msra.mxu0 %v7082_v57  ;;  %6518 = vmatprep.mubr.msk.bf16.mxu0 %vm1577_vm2, %v8326_v11  ;;  %981 = vst.msk [vmem:[#allocation2 + $0x58] sm:$0xf] %vm971_vm3, %v894_v20  ;;  %v892_v18 = vpop.permute.xlu0 %891  ;;  %v8475_v54 = vld [vmem:[#allocation2 + $0xa4] ss:$8 sps:$4 sm:$0xff]  }
  0xa1   : > { %6579 = vmatprep.mubr.msk.bf16.mxu1 %vm1577_vm2, %v8326_v11  ;;  %2536 = vmatprep.subr.bf16.mxu0 %v10758_v47  ;;  %980 = vst.msk [vmem:[#allocation2 + $0x50] sm:$0xf] %vm971_vm3, %v892_v18  ;;  %v8489_v4 = vld [vmem:[#allocation2 + $0xc4] ss:$8 sps:$4 sm:$0xff]  }
  0xa2   : > { %v8509_v18 = vld [vmem:[#allocation2 + $0xe4] ss:$8 sps:$4 sm:$0xff]  }
  0xa4   : > { %2537 = vmatpush1.bf16.msra.mxu0 %v7085_v36  ;;  %v898_v39 = vpop.permute.xlu1 %897  ;;  %v896_v45 = vpop.permute.xlu0 %895  ;;  %v8384_v30 = vld [vmem:[#allocation2 + $0x40] ss:$8 sps:$4 sm:$0xff]   ;;  %v8499_v36 = vld [vmem:[#allocation2 + $0xd4] ss:$8 sps:$4 sm:$0xff]  }
  0xa5   : > { %2538 = vmatprep.subr.bf16.mxu0 %v10758_v47  ;;  %983 = vst.msk [vmem:[#allocation2 + $0x68] sm:$0xf] %vm971_vm3, %v898_v39  ;;  %982 = vst.msk [vmem:[#allocation2 + $0x60] sm:$0xf] %vm971_vm3, %v896_v45  ;;  %v8529_v39 = vld [vmem:[#allocation2 + $0x104] ss:$8 sps:$4 sm:$0xff]  }
  0xa7   : > { %1667 = vmatmul.mubr.bf16.gmra.mxu0 %v8344_v15  ;;  %2100 = vmatmul.mubr.bf16.gmra.mxu1 %v8344_v15 }
  0xa8   : > { %6519 = vmatprep.mubr.msk.bf16.mxu0 %vm1577_vm2, %v8342_v63  ;;  %6580 = vmatprep.mubr.msk.bf16.mxu1 %vm1577_vm2, %v8342_v63  ;;  %v902_v9 = vpop.permute.xlu1 %901  ;;  %v8405_v60 = vld [vmem:[#allocation2 + $0x50] ss:$8 sps:$4 sm:$0xff]  }
  0xa9   : > { %2539 = vmatpush1.bf16.msra.mxu0 %v7089_v49  ;;  %985 = vst.msk [vmem:[#allocation2 + $0x78] sm:$0xf] %vm971_vm3, %v902_v9 }
  0xaa   : > { %2540 = vmatprep.subr.bf16.mxu0 %v10758_v47 }
  0xab   : > { %v900_v37 = vpop.permute.xlu0 %899 }
  0xac   : > { %984 = vst.msk [vmem:[#allocation2 + $0x70] sm:$0xf] %vm971_vm3, %v900_v37  ;;  %v906_v0 = vpop.permute.xlu1 %905  ;;  %v8427_v48 = vld [vmem:[#allocation2 + $0x60] ss:$8 sps:$4 sm:$0xff]  }
  0xad   : > { %2541 = vmatpush1.bf16.msra.mxu0 %v7096_v42  ;;  %987 = vst.msk [vmem:[#allocation2 + $0x88] sm:$0xf] %vm971_vm3, %v906_v0 }
  0xae   : > { %2542 = vmatprep.subr.bf16.mxu0 %v10758_v47 }
  0xaf   : > { %1675 = vmatmul.mubr.bf16.gmra.mxu0 %v8362_v29  ;;  %2108 = vmatmul.mubr.bf16.gmra.mxu1 %v8362_v29  ;;  %v904_v52 = vpop.permute.xlu0 %903 }
  0xb0   : > { %6520 = vmatprep.mubr.msk.bf16.mxu0 %vm1577_vm2, %v8365_v62  ;;  %6581 = vmatprep.mubr.msk.bf16.mxu1 %vm1577_vm2, %v8365_v62  ;;  %986 = vst.msk [vmem:[#allocation2 + $0x80] sm:$0xf] %vm971_vm3, %v904_v52 }
  0xb1   : > { %2543 = vmatpush1.bf16.msra.mxu0 %v7100_v41 }
  0xb2   : > { %2544 = vmatprep.subr.bf16.mxu0 %v10758_v47  ;;  %v910_v58 = vpop.permute.xlu1 %909 }
  0xb3   : > { %989 = vst.msk [vmem:[#allocation2 + $0x98] sm:$0xf] %vm971_vm3, %v910_v58  ;;  %v908_v46 = vpop.permute.xlu0 %907  ;;  %v8448_v28 = vld [vmem:[#allocation2 + $0x70] ss:$8 sps:$4 sm:$0xff]  }
  0xb4   : > { %988 = vst.msk [vmem:[#allocation2 + $0x90] sm:$0xf] %vm971_vm3, %v908_v46 }
  0xb5   : > { %2545 = vmatpush1.bf16.msra.mxu0 %v7104_v16 }
  0xb6   : > { %2546 = vmatprep.subr.bf16.mxu0 %v10758_v47  ;;  %v914_v55 = vpop.permute.xlu1 %913 }
  0xb7   : > { %1683 = vmatmul.mubr.bf16.gmra.mxu0 %v8384_v30  ;;  %2116 = vmatmul.mubr.bf16.gmra.mxu1 %v8384_v30  ;;  %991 = vst.msk [vmem:[#allocation2 + $0xa8] sm:$0xf] %vm971_vm3, %v914_v55  ;;  %v8461_v31 = vld [vmem:[#allocation2 + $0x80] ss:$8 sps:$4 sm:$0xff]  }
  0xb8   : > { %6521 = vmatprep.mubr.msk.bf16.mxu0 %vm1577_vm2, %v8386_v33  ;;  %6582 = vmatprep.mubr.msk.bf16.mxu1 %vm1577_vm2, %v8386_v33  ;;  %v912_v24 = vpop.permute.xlu0 %911 }
  0xb9   : > { %2547 = vmatpush1.bf16.msra.mxu0 %v7111_v38  ;;  %990 = vst.msk [vmem:[#allocation2 + $0xa0] sm:$0xf] %vm971_vm3, %v912_v24 }
  0xba   : > { %2548 = vmatprep.subr.bf16.mxu0 %v10758_v47 }
  0xbb   : > { %v8473_v19 = vld [vmem:[#allocation2 + $0x90] ss:$8 sps:$4 sm:$0xff]  }
  0xbc   : > { %v918_v2 = vpop.permute.xlu1 %917  ;;  %v916_v56 = vpop.permute.xlu0 %915 }
  0xbd   : > { %2549 = vmatpush1.bf16.msra.mxu0 %v7115_v14  ;;  %993 = vst.msk [vmem:[#allocation2 + $0xb8] sm:$0xf] %vm971_vm3, %v918_v2  ;;  %992 = vst.msk [vmem:[#allocation2 + $0xb0] sm:$0xf] %vm971_vm3, %v916_v56 }
  0xbe   : > { %2558 = vmatprep.subr.bf16.mxu0 %v10758_v47 }
  0xbf   : > { %1691 = vmatmul.mubr.bf16.gmra.mxu0 %v8405_v60  ;;  %2124 = vmatmul.mubr.bf16.gmra.mxu1 %v8405_v60 }
  0xc0   : > { %6522 = vmatprep.mubr.msk.bf16.mxu0 %vm1577_vm2, %v8408_v26  ;;  %6583 = vmatprep.mubr.msk.bf16.mxu1 %vm1577_vm2, %v8408_v26  ;;  %v922_v32 = vpop.permute.xlu1 %921  ;;  %v7114_v57 = vld [vmem:[#allocation2 + $0xa0] ss:$8 sps:$4 sm:$0xff]  }
  0xc1   : > { %2559 = vmatpush2.bf16.msra.mxu0 %v7119_v3  ;;  %995 = vst.msk [vmem:[#allocation2 + $0xc8] sm:$0xf] %vm971_vm3, %v922_v32 }
  0xc2   : > { %2560 = vmatprep.subr.bf16.mxu0 %v10758_v47 }
  0xc4   : > { %v920_v50 = vpop.permute.xlu0 %919  ;;  %v8487_v8 = vld [vmem:[#allocation2 + $0xb0] ss:$8 sps:$4 sm:$0xff]  }
  0xc5   : > { %994 = vst.msk [vmem:[#allocation2 + $0xc0] sm:$0xf] %vm971_vm3, %v920_v50  ;;  %2561 = vmatpush2.bf16.msra.mxu0 %v7126_v1 }
  0xc6   : > { %2562 = vmatprep.subr.bf16.mxu0 %v10758_v47 }
  0xc7   : > { %1699 = vmatmul.mubr.bf16.gmra.mxu0 %v8427_v48  ;;  %2132 = vmatmul.mubr.bf16.gmra.mxu1 %v8427_v48  ;;  %v926_v35 = vpop.permute.xlu1 %925 }
  0xc8   : > { %6523 = vmatprep.mubr.msk.bf16.mxu0 %vm1577_vm2, %v8429_v43  ;;  %6584 = vmatprep.mubr.msk.bf16.mxu1 %vm1577_vm2, %v8429_v43  ;;  %997 = vst.msk [vmem:[#allocation2 + $0xd8] sm:$0xf] %vm971_vm3, %v926_v35  ;;  %v924_v22 = vpop.permute.xlu0 %923 }
  0xc9   : > { %996 = vst.msk [vmem:[#allocation2 + $0xd0] sm:$0xf] %vm971_vm3, %v924_v22  ;;  %2563 = vmatpush2.bf16.msra.mxu0 %v7130_v7 }
  0xca   : > { %2564 = vmatprep.subr.bf16.mxu0 %v10758_v47 }
  0xcb   : > { %v930_v12 = vpop.permute.xlu1 %929 }
  0xcc   : > { %999 = vst.msk [vmem:[#allocation2 + $0xe8] sm:$0xf] %vm971_vm3, %v930_v12  ;;  %v8497_v10 = vld [vmem:[#allocation2 + $0xc0] ss:$8 sps:$4 sm:$0xff]  }
  0xcd   : > { %2565 = vmatpush2.bf16.msra.mxu0 %v7134_v44 }
  0xce   : > { %4698 = vmatprep.subr.bf16.mxu0 %v10758_v47 }
  0xcf   : > { %v928_v23 = vpop.permute.xlu0 %927  ;;  %1707 = vmatmul.mubr.bf16.gmra.mxu0 %v8448_v28  ;;  %2140 = vmatmul.mubr.bf16.gmra.mxu1 %v8448_v28 }
  0xd0   : > { %998 = vst.msk [vmem:[#allocation2 + $0xe0] sm:$0xf] %vm971_vm3, %v928_v23  ;;  %6524 = vmatprep.mubr.msk.bf16.mxu0 %vm1577_vm2, %v8450_v6  ;;  %6585 = vmatprep.mubr.msk.bf16.mxu1 %vm1577_vm2, %v8450_v6  ;;  %v8507_v20 = vld [vmem:[#allocation2 + $0xd0] ss:$8 sps:$4 sm:$0xff]  }
  0xd6   : > { %v934_v17 = vpop.permute.xlu1 %933  ;;  %v932_v21 = vpop.permute.xlu0 %931 }
  0xd7   : > { %1001 = vst.msk [vmem:[#allocation2 + $0xf8] sm:$0xf] %vm971_vm3, %v934_v17  ;;  %1000 = vst.msk [vmem:[#allocation2 + $0xf0] sm:$0xf] %vm971_vm3, %v932_v21  ;;  %1715 = vmatmul.mubr.bf16.gmra.mxu0 %v8461_v31  ;;  %2148 = vmatmul.mubr.bf16.gmra.mxu1 %v8461_v31  ;;  %v8517_v53 = vld [vmem:[#allocation2 + $0xe0] ss:$8 sps:$4 sm:$0xff]  }
  0xd8   : > { %6525 = vmatprep.mubr.msk.bf16.mxu0 %vm1577_vm2, %v8463_v25  ;;  %6586 = vmatprep.mubr.msk.bf16.mxu1 %vm1577_vm2, %v8463_v25 }
  0xde   : > { %v8527_v49 = vld [vmem:[#allocation2 + $0xf0] ss:$8 sps:$4 sm:$0xff]  }
  0xdf   : > { %1723 = vmatmul.mubr.bf16.gmra.mxu0 %v8473_v19  ;;  %2156 = vmatmul.mubr.bf16.gmra.mxu1 %v8473_v19 }
  0xe0   : > { %v938_v27 = vpop.permute.xlu1 %937  ;;  %6526 = vmatprep.mubr.msk.bf16.mxu0 %vm1577_vm2, %v8475_v54  ;;  %6587 = vmatprep.mubr.msk.bf16.mxu1 %vm1577_vm2, %v8475_v54 }
  0xe1   : > { %v936_v34 = vpop.permute.xlu0 %935  ;;  %1003 = vst.msk [vmem:[#allocation2 + $0x108] sm:$0xf] %vm971_vm3, %v938_v27 }
  0xe2   : > { %1002 = vst.msk [vmem:[#allocation2 + $0x100] sm:$0xf] %vm971_vm3, %v936_v34 }
  0xe7   : > { %1731 = vmatmul.mubr.bf16.gmra.mxu0 %v7114_v57  ;;  %2164 = vmatmul.mubr.bf16.gmra.mxu1 %v7114_v57 }
  0xe8   : > { %6527 = vmatprep.mubr.msk.bf16.mxu0 %vm1577_vm2, %v7116_v5  ;;  %6588 = vmatprep.mubr.msk.bf16.mxu1 %vm1577_vm2, %v7116_v5 }
  0xe9   : > { %v8535_v45 = vld [vmem:[#allocation2 + $0x100] ss:$8 sps:$4 sm:$0xff]  }
  0xef   : > { %1739 = vmatmul.mubr.bf16.gmra.mxu0 %v8487_v8  ;;  %2172 = vmatmul.mubr.bf16.gmra.mxu1 %v8487_v8 }
  0xf0   : > { %6528 = vmatprep.mubr.msk.bf16.mxu0 %vm1577_vm2, %v8489_v4  ;;  %6589 = vmatprep.mubr.msk.bf16.mxu1 %vm1577_vm2, %v8489_v4 }
  0xf7   : > { %1747 = vmatmul.mubr.bf16.gmra.mxu0 %v8497_v10  ;;  %2180 = vmatmul.mubr.bf16.gmra.mxu1 %v8497_v10 }
  0xf8   : > { %6529 = vmatprep.mubr.msk.bf16.mxu0 %vm1577_vm2, %v8499_v36  ;;  %6590 = vmatprep.mubr.msk.bf16.mxu1 %vm1577_vm2, %v8499_v36 }
  0xff   : > { %1755 = vmatmul.mubr.bf16.gmra.mxu0 %v8507_v20  ;;  %2188 = vmatmul.mubr.bf16.gmra.mxu1 %v8507_v20 }
 0x100   : > { %6530 = vmatprep.mubr.msk.bf16.mxu0 %vm1577_vm2, %v8509_v18  ;;  %6591 = vmatprep.mubr.msk.bf16.mxu1 %vm1577_vm2, %v8509_v18 }
 0x107   : > { %1763 = vmatmul.mubr.bf16.gmra.mxu0 %v8517_v53  ;;  %2196 = vmatmul.mubr.bf16.gmra.mxu1 %v8517_v53 }
 0x108   : > { %6531 = vmatprep.mubr.msk.bf16.mxu0 %vm1577_vm2, %v8519_v13  ;;  %6592 = vmatprep.mubr.msk.bf16.mxu1 %vm1577_vm2, %v8519_v13 }
 0x10f   : > { %1771 = vmatmul.mubr.bf16.gmra.mxu0 %v8527_v49  ;;  %2204 = vmatmul.mubr.bf16.gmra.mxu1 %v8527_v49 }
 0x110   : > { %6532 = vmatprep.mubr.msk.bf16.mxu0 %vm1577_vm2, %v8529_v39 }
 0x117   : > { %1779 = vmatmul.mubr.bf16.gmra.mxu0 %v8535_v45 }
 0x118   : > { %6661 = vmatprep.mubr.msk.bf16.mxu0 %vm1577_vm2, %v8326_v11 }
 0x11f   : > { %2567 = vmatmul.mubr.bf16.vlgmr.msra.gmra.mxu0 %v8344_v15 }
 0x120   : > { %6662 = vmatprep.mubr.msk.bf16.mxu0 %vm1577_vm2, %v8342_v63 }
 0x127   : > { %2575 = vmatmul.mubr.bf16.gmra.mxu0 %v8362_v29 }
 0x128   : > { %6663 = vmatprep.mubr.msk.bf16.mxu0 %vm1577_vm2, %v8365_v62 }
 0x12f   : > { %2583 = vmatmul.mubr.bf16.gmra.mxu0 %v8384_v30 }
 0x130   : > { %6664 = vmatprep.mubr.msk.bf16.mxu0 %vm1577_vm2, %v8386_v33 }
 0x137   : > { %2591 = vmatmul.mubr.bf16.gmra.mxu0 %v8405_v60 }
 0x138   : > { %v2085_v42 = vpop.f32.mrf.mxu1  ;;  %6665 = vmatprep.mubr.msk.bf16.mxu0 %vm1577_vm2, %v8408_v26 }
 0x13a   : > { %v2087_v9 = vpop.f32.mrf.mxu1 }
 0x13c   : > { %v2088_v11 = vpop.f32.mrf.mxu1 }
 0x13e   : > { %v2090_v15 = vpop.f32.mrf.mxu1 }
 0x13f   : > { %2599 = vmatmul.mubr.bf16.gmra.mxu0 %v8427_v48 }
 0x140   : > { %6666 = vmatprep.mubr.msk.bf16.mxu0 %vm1577_vm2, %v8429_v43 }
 0x147   : > { %2607 = vmatmul.mubr.bf16.gmra.mxu0 %v8448_v28 }
 0x148   : > { %6667 = vmatprep.mubr.msk.bf16.mxu0 %vm1577_vm2, %v8450_v6 }
 0x14f   : > { %2615 = vmatmul.mubr.bf16.gmra.mxu0 %v8461_v31 }
 0x150   : > { %6668 = vmatprep.mubr.msk.bf16.mxu0 %vm1577_vm2, %v8463_v25 }
 0x157   : > { %2623 = vmatmul.mubr.bf16.gmra.mxu0 %v8473_v19 }
 0x158   : > { %6669 = vmatprep.mubr.msk.bf16.mxu0 %vm1577_vm2, %v8475_v54 }
 0x15f   : > { %v1660_v63 = vpop.f32.mrf.mxu0  ;;  %v2093_v29 = vpop.f32.mrf.mxu1  ;;  %2631 = vmatmul.mubr.bf16.gmra.mxu0 %v7114_v57 }
 0x160   : > { %v8564_v62 = vadd.f32 %v2085_v42, %v1660_v63  ;;  %6670 = vmatprep.mubr.msk.bf16.mxu0 %vm1577_vm2, %v7116_v5 }
 0x161   : > { %v1662_v37 = vpop.f32.mrf.mxu0  ;;  %v2095_v41 = vpop.f32.mrf.mxu1 }
 0x162   : > { %v7138_v37 = vld [vmem:[#allocation2 + $0x114] ss:$8 sps:$4 sm:$0xff]  }
 0x163   : > { %v1663_v0 = vpop.f32.mrf.mxu0  ;;  %v2096_v52 = vpop.f32.mrf.mxu1 }
 0x164   : > { %v8567_v16 = vadd.f32 %v2088_v11, %v1663_v0 }
 0x165   : > { %v1665_v30 = vpop.f32.mrf.mxu0  ;;  %v2098_v33 = vpop.f32.mrf.mxu1 }
 0x167   : > { %v1668_v58 = vpop.f32.mrf.mxu0  ;;  %v2101_v46 = vpop.f32.mrf.mxu1  ;;  %2639 = vmatmul.mubr.bf16.gmra.mxu0 %v8487_v8 }
 0x168   : > { %v8570_v38 = vadd.f32 %v2093_v29, %v1668_v58  ;;  %6671 = vmatprep.mubr.msk.bf16.mxu0 %vm1577_vm2, %v8489_v4 }
 0x169   : > { %v1670_v55 = vpop.f32.mrf.mxu0  ;;  %v2103_v14 = vpop.f32.mrf.mxu1 }
 0x16a   : > { %v7140_v55 = vld [vmem:[#allocation2 + $0x110] ss:$8 sps:$4 sm:$0xff]  }
 0x16b   : > { %v1671_v24 = vpop.f32.mrf.mxu0  ;;  %v2104_v60 = vpop.f32.mrf.mxu1 }
 0x16c   : > { %v8574_v26 = vadd.f32 %v2096_v52, %v1671_v24 }
 0x16d   : > { %v1673_v2 = vpop.f32.mrf.mxu0  ;;  %v2106_v3 = vpop.f32.mrf.mxu1 }
 0x16f   : > { %v1676_v56 = vpop.f32.mrf.mxu0  ;;  %v2109_v32 = vpop.f32.mrf.mxu1  ;;  %2647 = vmatmul.mubr.bf16.gmra.mxu0 %v8497_v10 }
 0x170   : > { %v8577_v1 = vadd.f32 %v2101_v46, %v1676_v56  ;;  %6672 = vmatprep.mubr.msk.bf16.mxu0 %vm1577_vm2, %v8499_v36 }
 0x171   : > { %v1678_v48 = vpop.f32.mrf.mxu0  ;;  %v2111_v43 = vpop.f32.mrf.mxu1 }
 0x173   : > { %v1679_v50 = vpop.f32.mrf.mxu0  ;;  %v2112_v7 = vpop.f32.mrf.mxu1 }
 0x174   : > { %v8581_v35 = vadd.f32 %v2104_v60, %v1679_v50 }
 0x175   : > { %v1681_v22 = vpop.f32.mrf.mxu0  ;;  %v2114_v44 = vpop.f32.mrf.mxu1 }
 0x177   : > { %v1684_v28 = vpop.f32.mrf.mxu0  ;;  %v2117_v12 = vpop.f32.mrf.mxu1  ;;  %2655 = vmatmul.mubr.bf16.gmra.mxu0 %v8507_v20 }
 0x178   : > { %v8584_v6 = vadd.f32 %v2109_v32, %v1684_v28  ;;  %6673 = vmatprep.mubr.msk.bf16.mxu0 %vm1577_vm2, %v8509_v18 }
 0x179   : > { %v1686_v23 = vpop.f32.mrf.mxu0  ;;  %v2119_v31 = vpop.f32.mrf.mxu1 }
 0x17b   : > { %v1687_v25 = vpop.f32.mrf.mxu0  ;;  %v2120_v17 = vpop.f32.mrf.mxu1 }
 0x17c   : > { %v8588_v21 = vadd.f32 %v2112_v7, %v1687_v25 }
 0x17d   : > { %v1689_v19 = vpop.f32.mrf.mxu0  ;;  %v2122_v54 = vpop.f32.mrf.mxu1 }
 0x17f   : > { %v1692_v27 = vpop.f32.mrf.mxu0  ;;  %v2125_v34 = vpop.f32.mrf.mxu1  ;;  %2663 = vmatmul.mubr.bf16.gmra.mxu0 %v8517_v53 }
 0x180   : > { %v8591_v57 = vadd.f32 %v2117_v12, %v1692_v27  ;;  %6674 = vmatprep.mubr.msk.bf16.mxu0 %vm1577_vm2, %v8519_v13 }
 0x181   : > { %v1694_v5 = vpop.f32.mrf.mxu0  ;;  %v2127_v8 = vpop.f32.mrf.mxu1 }
 0x183   : > { %v1695_v4 = vpop.f32.mrf.mxu0  ;;  %v2128_v10 = vpop.f32.mrf.mxu1 }
 0x184   : > { %v8595_v36 = vadd.f32 %v2120_v17, %v1695_v4 }
 0x185   : > { %v1697_v20 = vpop.f32.mrf.mxu0  ;;  %v2130_v18 = vpop.f32.mrf.mxu1 }
 0x187   : > { %v1700_v42 = vpop.f32.mrf.mxu0  ;;  %v2133_v9 = vpop.f32.mrf.mxu1  ;;  %2671 = vmatmul.mubr.bf16.gmra.mxu0 %v8527_v49 }
 0x188   : > { %v8598_v11 = vadd.f32 %v2125_v34, %v1700_v42  ;;  %6675 = vmatprep.mubr.msk.bf16.mxu0 %vm1577_vm2, %v8529_v39 }
 0x189   : > { %v1702_v53 = vpop.f32.mrf.mxu0  ;;  %v2135_v15 = vpop.f32.mrf.mxu1 }
 0x18b   : > { %v1703_v13 = vpop.f32.mrf.mxu0  ;;  %v2136_v63 = vpop.f32.mrf.mxu1 }
 0x18c   : > { %v8602_v29 = vadd.f32 %v2128_v10, %v1703_v13 }
 0x18d   : > { %v1705_v41 = vpop.f32.mrf.mxu0  ;;  %v2138_v0 = vpop.f32.mrf.mxu1 }
 0x18f   : > { %v1708_v52 = vpop.f32.mrf.mxu0  ;;  %v2141_v30 = vpop.f32.mrf.mxu1  ;;  %2679 = vmatmul.mubr.bf16.gmra.mxu0 %v8535_v45 }
 0x190   : > { %v8605_v33 = vadd.f32 %v2133_v9, %v1708_v52  ;;  %6676 = vmatprep.mubr.msk.bf16.mxu0 %vm1577_vm2, %v7138_v37 }
 0x191   : > { %v1710_v49 = vpop.f32.mrf.mxu0  ;;  %v2143_v58 = vpop.f32.mrf.mxu1 }
 0x193   : > { %v1711_v39 = vpop.f32.mrf.mxu0  ;;  %v2144_v46 = vpop.f32.mrf.mxu1 }
 0x194   : > { %v8608_v14 = vadd.f32 %v2136_v63, %v1711_v39 }
 0x195   : > { %v1713_v24 = vpop.f32.mrf.mxu0  ;;  %v2146_v60 = vpop.f32.mrf.mxu1 }
 0x197   : > { %v1716_v2 = vpop.f32.mrf.mxu0  ;;  %v2149_v3 = vpop.f32.mrf.mxu1  ;;  %2687 = vmatmul.mubr.bf16.gmra.mxu0 %v7140_v55 }
 0x198   : > { %v8610_v56 = vadd.f32 %v2141_v30, %v1716_v2 }
 0x199   : > { %v1718_v32 = vpop.f32.mrf.mxu0  ;;  %v2151_v45 = vpop.f32.mrf.mxu1 }
 0x19b   : > { %v1719_v48 = vpop.f32.mrf.mxu0  ;;  %v2152_v43 = vpop.f32.mrf.mxu1 }
 0x19c   : > { %v8612_v50 = vadd.f32 %v2144_v46, %v1719_v48 }
 0x19d   : > { %v1721_v7 = vpop.f32.mrf.mxu0  ;;  %v2154_v22 = vpop.f32.mrf.mxu1 }
 0x19f   : > { %v1724_v44 = vpop.f32.mrf.mxu0  ;;  %v2157_v28 = vpop.f32.mrf.mxu1 }
 0x1a0   : > { %v8614_v12 = vadd.f32 %v2149_v3, %v1724_v44 }
 0x1a1   : > { %v1726_v23 = vpop.f32.mrf.mxu0  ;;  %v2159_v31 = vpop.f32.mrf.mxu1 }
 0x1a3   : > { %v1727_v25 = vpop.f32.mrf.mxu0  ;;  %v2160_v17 = vpop.f32.mrf.mxu1 }
 0x1a4   : > { %v8616_v19 = vadd.f32 %v2152_v43, %v1727_v25 }
 0x1a5   : > { %v1729_v54 = vpop.f32.mrf.mxu0  ;;  %v2162_v27 = vpop.f32.mrf.mxu1 }
 0x1a7   : > { %v1732_v34 = vpop.f32.mrf.mxu0  ;;  %v2165_v5 = vpop.f32.mrf.mxu1 }
 0x1a8   : > { %v8618_v8 = vadd.f32 %v2157_v28, %v1732_v34 }
 0x1a9   : > { %v1734_v4 = vpop.f32.mrf.mxu0  ;;  %v2167_v10 = vpop.f32.mrf.mxu1 }
 0x1ab   : > { %v1735_v20 = vpop.f32.mrf.mxu0  ;;  %v2168_v18 = vpop.f32.mrf.mxu1 }
 0x1ac   : > { %v8620_v42 = vadd.f32 %v2160_v17, %v1735_v20 }
 0x1ad   : > { %v1737_v9 = vpop.f32.mrf.mxu0  ;;  %v2170_v53 = vpop.f32.mrf.mxu1 }
 0x1af   : > { %v1740_v15 = vpop.f32.mrf.mxu0  ;;  %v2173_v13 = vpop.f32.mrf.mxu1 }
 0x1b0   : > { %v8622_v63 = vadd.f32 %v2165_v5, %v1740_v15 }
 0x1b1   : > { %v1742_v37 = vpop.f32.mrf.mxu0  ;;  %v2175_v41 = vpop.f32.mrf.mxu1 }
 0x1b3   : > { %v1743_v0 = vpop.f32.mrf.mxu0  ;;  %v2176_v52 = vpop.f32.mrf.mxu1 }
 0x1b4   : > { %v8624_v30 = vadd.f32 %v2168_v18, %v1743_v0 }
 0x1b5   : > { %v1745_v49 = vpop.f32.mrf.mxu0  ;;  %v2178_v58 = vpop.f32.mrf.mxu1 }
 0x1b7   : > { %v1748_v39 = vpop.f32.mrf.mxu0  ;;  %v2181_v46 = vpop.f32.mrf.mxu1 }
 0x1b8   : > { %v8626_v55 = vadd.f32 %v2173_v13, %v1748_v39 }
 0x1b9   : > { %v1750_v24 = vpop.f32.mrf.mxu0  ;;  %v2183_v60 = vpop.f32.mrf.mxu1 }
 0x1bb   : > { %v1751_v2 = vpop.f32.mrf.mxu0  ;;  %v2184_v3 = vpop.f32.mrf.mxu1 }
 0x1bc   : > { %v8628_v32 = vadd.f32 %v2176_v52, %v1751_v2 }
 0x1bd   : > { %v1753_v45 = vpop.f32.mrf.mxu0  ;;  %v2186_v48 = vpop.f32.mrf.mxu1 }
 0x1bf   : > { %v1756_v43 = vpop.f32.mrf.mxu0  ;;  %v2189_v7 = vpop.f32.mrf.mxu1 }
 0x1c0   : > { %v8630_v22 = vadd.f32 %v2181_v46, %v1756_v43 }
 0x1c1   : > { %v1758_v44 = vpop.f32.mrf.mxu0  ;;  %v2191_v28 = vpop.f32.mrf.mxu1 }
 0x1c3   : > { %v1759_v23 = vpop.f32.mrf.mxu0  ;;  %v2192_v31 = vpop.f32.mrf.mxu1 }
 0x1c4   : > { %v8632_v25 = vadd.f32 %v2184_v3, %v1759_v23 }
 0x1c5   : > { %v1761_v17 = vpop.f32.mrf.mxu0  ;;  %v2194_v54 = vpop.f32.mrf.mxu1 }
 0x1c7   : > { %v1764_v27 = vpop.f32.mrf.mxu0  ;;  %v2197_v34 = vpop.f32.mrf.mxu1 }
 0x1c8   : > { %v8634_v5 = vadd.f32 %v2189_v7, %v1764_v27 }
 0x1c9   : > { %v1766_v4 = vpop.f32.mrf.mxu0  ;;  %v2199_v10 = vpop.f32.mrf.mxu1 }
 0x1cb   : > { %v1767_v20 = vpop.f32.mrf.mxu0  ;;  %v2200_v18 = vpop.f32.mrf.mxu1 }
 0x1cc   : > { %v8636_v9 = vadd.f32 %v2192_v31, %v1767_v20 }
 0x1cd   : > { %v1769_v53 = vpop.f32.mrf.mxu0  ;;  %v2202_v15 = vpop.f32.mrf.mxu1 }
 0x1cf   : > { %v1772_v13 = vpop.f32.mrf.mxu0  ;;  %v2205_v37 = vpop.f32.mrf.mxu1 }
 0x1d0   : > { %v8638_v41 = vadd.f32 %v2197_v34, %v1772_v13 }
 0x1d1   : > { %v1774_v0 = vpop.f32.mrf.mxu0  ;;  %v2207_v52 = vpop.f32.mrf.mxu1 }
 0x1d3   : > { %v1775_v49 = vpop.f32.mrf.mxu0  ;;  %v2208_v58 = vpop.f32.mrf.mxu1 }
 0x1d4   : > { %v8640_v39 = vadd.f32 %v2200_v18, %v1775_v49 }
 0x1d5   : > { %v1777_v46 = vpop.f32.mrf.mxu0  ;;  %v2210_v24 = vpop.f32.mrf.mxu1 }
 0x1d7   : > { %v1780_v60 = vpop.f32.mrf.mxu0 }
 0x1d8   : > { %v8642_v2 = vadd.f32 %v2205_v37, %v1780_v60 }
 0x1d9   : > { %v1782_v3 = vpop.f32.mrf.mxu0 }
 0x1db   : > { %v1783_v45 = vpop.f32.mrf.mxu0 }
 0x1dc   : > { %v8644_v48 = vadd.f32 %v2208_v58, %v1783_v45 }
 0x1dd   : > { %v1785_v43 = vpop.f32.mrf.mxu0 }
 0x1df   : > { %v2568_v7 = vpop.f32.mrf.mxu0 }
 0x1e0   : > { %v8647_v44 = vadd.f32 %v2568_v7, %v8564_v62 }
 0x1e1   : > { %v2570_v28 = vpop.f32.mrf.mxu0 }
 0x1e3   : > { %v2571_v23 = vpop.f32.mrf.mxu0 }
 0x1e4   : > { %v8650_v31 = vadd.f32 %v2571_v23, %v8567_v16  ;;  %v7141_v23 = vld [vmem:[%s10686_s2 + $0x98] sm:$0xff]  }
 0x1e5   : > { %v2573_v17 = vpop.f32.mrf.mxu0  ;;  %4274 = vmatpush1.bf16.msra.mxu1 %v7141_v23 }
 0x1e6   : > { %v2797_v17 = vmul.f32 %v8650_v31, %v8650_v31  ;;  %4275 = vmatprep.subr.bf16.mxu1 %v10758_v47 }
 0x1e7   : > { %v2576_v54 = vpop.f32.mrf.mxu0 }
 0x1e8   : > { %v8653_v27 = vadd.f32 %v2576_v54, %v8570_v38  ;;  %v2796_v54 = vmul.f32 %v8647_v44, %v8647_v44 }
 0x1e9   : > { %v2578_v34 = vpop.f32.mrf.mxu0 }
 0x1eb   : > { %v2579_v4 = vpop.f32.mrf.mxu0 }
 0x1ec   : > { %v8656_v10 = vadd.f32 %v2579_v4, %v8574_v26  ;;  %v2728_v4 = vsel %vm1577_vm2, %v8650_v31, 0.0 }
 0x1ed   : > { %v2581_v20 = vpop.f32.mrf.mxu0 }
 0x1ee   : > { %v2798_v20 = vmul.f32 %v8653_v27, %v8653_v27 }
 0x1ef   : > { %v2584_v18 = vpop.f32.mrf.mxu0 }
 0x1f0   : > { %v8659_v62 = vadd.f32 %v2584_v18, %v8577_v1  ;;  %v2727_v18 = vsel %vm1577_vm2, %v8647_v44, 0.0 }
 0x1f1   : > { %v2586_v53 = vpop.f32.mrf.mxu0 }
 0x1f2   : > { %v2800_v23 = vmul.f32 %v8659_v62, %v8659_v62 }
 0x1f3   : > { %v2587_v15 = vpop.f32.mrf.mxu0 }
 0x1f5   : > { %v2589_v13 = vpop.f32.mrf.mxu0 }
 0x1f6   : > { %v2829_v13 = vsel %vm1577_vm2, %v2797_v17, 0.0 }
 0x1f7   : > { %v2592_v16 = vpop.f32.mrf.mxu0 }
 0x1f8   : > { %v8698_v17 = vadd.f32 %v2592_v16, %v8584_v6  ;;  %v2835_v6 = vsel %vm1577_vm2, %v2800_v23, 0.0 }
 0x1f9   : > { %v2594_v37 = vpop.f32.mrf.mxu0 }
 0x1fa   : > { %v2730_v37 = vsel %vm1577_vm2, %v8653_v27, 0.0 }
 0x1fb   : > { %v2595_v0 = vpop.f32.mrf.mxu0 }
 0x1fd   : > { %v2597_v52 = vpop.f32.mrf.mxu0 }
 0x1fe   : > { %v2799_v52 = vmul.f32 %v8656_v10, %v8656_v10 }
 0x1ff   : > { %v2600_v49 = vpop.f32.mrf.mxu0 }
 0x201   : > { %v2602_v38 = vpop.f32.mrf.mxu0 }
 0x202   : > { %v8689_v38 = vadd.f32 %v2587_v15, %v8581_v35  ;;  %v2833_v35 = vsel %vm1577_vm2, %v2799_v52, 0.0  ;;  %v2734_v15 = vsel %vm1577_vm2, %v8659_v62, 0.0 }
 0x203   : > { %v2603_v58 = vpop.f32.mrf.mxu0 }
 0x204   : > { %v2736_v16 = vsel %vm1577_vm2, %v8689_v38, 0.0 }
 0x205   : > { %v2605_v46 = vpop.f32.mrf.mxu0 }
 0x206   : > { %v2828_v46 = vsel %vm1577_vm2, %v2796_v54, 0.0  ;;  %v2801_v54 = vmul.f32 %v8689_v38, %v8689_v38 }
 0x207   : > { %v2608_v24 = vpop.f32.mrf.mxu0 }
 0x209   : > { %v2610_v60 = vpop.f32.mrf.mxu0 }
 0x20a   : > { %v2729_v60 = vadd.f32 %v2728_v4, %v2727_v18  ;;  %v8708_v4 = vadd.f32 %v2595_v0, %v8588_v21  ;;  %v2837_v21 = vsel %vm1577_vm2, %v2801_v54, 0.0 }
 0x20b   : > { %v2611_v26 = vpop.f32.mrf.mxu0 }
 0x20c   : > { %v2731_v51 = vadd.f32 %v2730_v37, %v2729_v60  ;;  %v8716_v37 = vadd.f32 %v2600_v49, %v8591_v57  ;;  %v2803_v0 = vmul.f32 %v8708_v4, %v8708_v4  ;;  %v2740_v49 = vsel %vm1577_vm2, %v8708_v4, 0.0 }
 0x20d   : > { %v2613_v3 = vpop.f32.mrf.mxu0 }
 0x20f   : > { %v8661_v45 = vpop.f32.mrf.mxu0 }
 0x211   : > { %v2618_v43 = vpop.f32.mrf.mxu0 }
 0x212   : > { %v2831_v43 = vsel %vm1577_vm2, %v2798_v20, 0.0 }
 0x213   : > { %v8663_v1 = vpop.f32.mrf.mxu0 }
 0x215   : > { %v2621_v7 = vpop.f32.mrf.mxu0 }
 0x216   : > { %v2732_v7 = vsel %vm1577_vm2, %v8656_v10, 0.0 }
 0x217   : > { %v8665_v28 = vpop.f32.mrf.mxu0  ;;  %v2733_v18 = vadd.f32 %v2732_v7, %v2731_v51  ;;  %v2738_v51 = vsel %vm1577_vm2, %v8698_v17, 0.0 }
 0x219   : > { %v2626_v34 = vpop.f32.mrf.mxu0 }
 0x21a   : > { %v2830_v34 = vadd.f32 %v2829_v13, %v2828_v46  ;;  %v2802_v13 = vmul.f32 %v8698_v17, %v8698_v17  ;;  %v2735_v46 = vadd.f32 %v2734_v15, %v2733_v18  ;;  %v8732_v15 = vadd.f32 %v2608_v24, %v8598_v11 }
 0x21b   : > { %v8681_v53 = vpop.f32.mrf.mxu0 }
 0x21c   : > { %v2832_v20 = vadd.f32 %v2831_v43, %v2830_v34  ;;  %v8724_v43 = vadd.f32 %v2603_v58, %v8595_v36  ;;  %v2737_v23 = vadd.f32 %v2736_v16, %v2735_v46  ;;  %v2839_v57 = vsel %vm1577_vm2, %v2802_v13, 0.0 }
 0x21d   : > { %v2629_v3 = vpop.f32.mrf.mxu0  ;;  %v2841_v36 = vsel %vm1577_vm2, %v2803_v0, 0.0  ;;  %v2742_v58 = vsel %vm1577_vm2, %v8716_v37, 0.0  ;;  %v2806_v46 = vmul.f32 %v8732_v15, %v8732_v15 }
 0x21e   : > { %v2834_v52 = vadd.f32 %v2833_v35, %v2832_v20  ;;  %v2804_v35 = vmul.f32 %v8716_v37, %v8716_v37  ;;  %v2739_v20 = vadd.f32 %v2738_v51, %v2737_v23  ;;  %v2744_v24 = vsel %vm1577_vm2, %v8724_v43, 0.0 }
 0x21f   : > { %v8700_v59 = vpop.f32.mrf.mxu0 }
 0x220   : > { %v2836_v7 = vadd.f32 %v2835_v6, %v2834_v52  ;;  %v8740_v6 = vadd.f32 %v2611_v26, %v8602_v29  ;;  %v2741_v13 = vadd.f32 %v2740_v49, %v2739_v20  ;;  %v2843_v11 = vsel %vm1577_vm2, %v2804_v35, 0.0 }
 0x221   : > { %v2634_v3 = vpop.f32.mrf.mxu0  ;;  %v2746_v26 = vsel %vm1577_vm2, %v8732_v15, 0.0  ;;  %v8767_v20 = vadd.f32 %v8665_v28, %v8610_v56 }
 0x222   : > { %v2838_v54 = vadd.f32 %v2837_v21, %v2836_v7  ;;  %v2805_v3 = vmul.f32 %v8724_v43, %v8724_v43  ;;  %v8749_v21 = vadd.f32 %v8661_v45, %v8605_v33  ;;  %v2743_v0 = vadd.f32 %v2742_v58, %v2741_v13 }
 0x223   : > { %v2635_v60 = vpop.f32.mrf.mxu0  ;;  %v2807_v23 = vmul.f32 %v8740_v6, %v8740_v6  ;;  %v2847_v33 = vsel %vm1577_vm2, %v2806_v46, 0.0  ;;  %v2748_v45 = vsel %vm1577_vm2, %v8740_v6, 0.0  ;;  %v8776_v13 = vadd.f32 %v8681_v53, %v8612_v50  ;;  %v7142_v50 = vld [vmem:[%s10686_s2 + $0x90] sm:$0xff]  }
 0x224   : > { %v2840_v16 = vadd.f32 %v2839_v57, %v2838_v54  ;;  %v2845_v29 = vsel %vm1577_vm2, %v2805_v3, 0.0  ;;  %v2745_v49 = vadd.f32 %v2744_v24, %v2743_v0  ;;  %v2808_v54 = vmul.f32 %v8749_v21, %v8749_v21  ;;  %4276 = vmatpush1.bf16.msra.mxu1 %v7142_v50 }
 0x225   : > { %v2637_v34 = vpop.f32.mrf.mxu0  ;;  %v2810_v46 = vmul.f32 %v8767_v20, %v8767_v20  ;;  %4277 = vmatprep.subr.bf16.mxu1 %v10758_v47 }
 0x226   : > { %v2842_v51 = vadd.f32 %v2841_v36, %v2840_v16  ;;  %v8758_v34 = vadd.f32 %v8663_v1, %v8608_v14  ;;  %v2747_v58 = vadd.f32 %v2746_v26, %v2745_v49  ;;  %v2849_v14 = vsel %vm1577_vm2, %v2807_v23, 0.0 }
 0x227   : > { %v2640_v18 = vpop.f32.mrf.mxu0  ;;  %v2750_v1 = vsel %vm1577_vm2, %v8749_v21, 0.0  ;;  %v2851_v56 = vsel %vm1577_vm2, %v2808_v54, 0.0  ;;  %v2754_v23 = vsel %vm1577_vm2, %v8767_v20, 0.0  ;;  %v8796_v49 = vadd.f32 %v2635_v60, %v8616_v19 }
 0x228   : > { %v2844_v57 = vadd.f32 %v2843_v11, %v2842_v51  ;;  %v2809_v16 = vmul.f32 %v8758_v34, %v8758_v34  ;;  %v2749_v11 = vadd.f32 %v2748_v45, %v2747_v58  ;;  %v2752_v28 = vsel %vm1577_vm2, %v8758_v34, 0.0 }
 0x229   : > { %v2642_v52 = vpop.f32.mrf.mxu0  ;;  %v8785_v51 = vadd.f32 %v8700_v59, %v8614_v12  ;;  %v2756_v45 = vsel %vm1577_vm2, %v8776_v13, 0.0 }
 0x22a   : > { %v2846_v36 = vadd.f32 %v2845_v29, %v2844_v57  ;;  %v2751_v29 = vadd.f32 %v2750_v1, %v2749_v11  ;;  %v2853_v53 = vsel %vm1577_vm2, %v2809_v16, 0.0  ;;  %v2811_v57 = vmul.f32 %v8776_v13, %v8776_v13 }
 0x22b   : > { %v2643_v7 = vpop.f32.mrf.mxu0  ;;  %v2812_v54 = vmul.f32 %v8785_v51, %v8785_v51  ;;  %v2758_v1 = vsel %vm1577_vm2, %v8785_v51, 0.0  ;;  %v2813_v16 = vmul.f32 %v8796_v49, %v8796_v49 }
 0x22c   : > { %v2848_v52 = vadd.f32 %v2847_v33, %v2846_v36  ;;  %v2753_v12 = vadd.f32 %v2752_v28, %v2751_v29  ;;  %v2855_v33 = vsel %vm1577_vm2, %v2810_v46, 0.0  ;;  %v8804_v36 = vadd.f32 %v2640_v18, %v8618_v8 }
 0x22d   : > { %v2645_v35 = vpop.f32.mrf.mxu0  ;;  %v2859_v18 = vsel %vm1577_vm2, %v2812_v54, 0.0 }
 0x22e   : > { %v2850_v0 = vadd.f32 %v2849_v14, %v2848_v52  ;;  %v2755_v19 = vadd.f32 %v2754_v23, %v2753_v12  ;;  %v2857_v14 = vsel %vm1577_vm2, %v2811_v57, 0.0  ;;  %v8813_v52 = vadd.f32 %v2643_v7, %v8620_v42 }
 0x22f   : > { %v2648_v3 = vpop.f32.mrf.mxu0  ;;  %v2814_v28 = vmul.f32 %v8804_v36, %v8804_v36  ;;  %v2861_v42 = vsel %vm1577_vm2, %v2813_v16, 0.0  ;;  %v2762_v7 = vsel %vm1577_vm2, %v8804_v36, 0.0 }
 0x230   : > { %v2852_v59 = vadd.f32 %v2851_v56, %v2850_v0  ;;  %v2760_v56 = vsel %vm1577_vm2, %v8796_v49, 0.0  ;;  %v8821_v46 = vadd.f32 %v2648_v3, %v8622_v63  ;;  %v2764_v3 = vsel %vm1577_vm2, %v8813_v52, 0.0 }
 0x231   : > { %v2650_v24 = vpop.f32.mrf.mxu0  ;;  %v2863_v63 = vsel %vm1577_vm2, %v2814_v28, 0.0 }
 0x232   : > { %v2854_v58 = vadd.f32 %v2853_v53, %v2852_v59  ;;  %v2757_v24 = vadd.f32 %v2756_v45, %v2755_v19  ;;  %v2815_v53 = vmul.f32 %v8813_v52, %v8813_v52 }
 0x233   : > { %v2651_v26 = vpop.f32.mrf.mxu0 }
 0x234   : > { %v2856_v11 = vadd.f32 %v2855_v33, %v2854_v58  ;;  %v2759_v29 = vadd.f32 %v2758_v1, %v2757_v24  ;;  %v8829_v23 = vadd.f32 %v2651_v26, %v8624_v30  ;;  %v2865_v30 = vsel %vm1577_vm2, %v2815_v53, 0.0 }
 0x235   : > { %v2653_v35 = vpop.f32.mrf.mxu0  ;;  %v2766_v26 = vsel %vm1577_vm2, %v8821_v46, 0.0 }
 0x236   : > { %v2858_v0 = vadd.f32 %v2857_v14, %v2856_v11  ;;  %v2761_v59 = vadd.f32 %v2760_v56, %v2759_v29  ;;  %v2816_v35 = vmul.f32 %v8821_v46, %v8821_v46  ;;  %v2817_v19 = vmul.f32 %v8829_v23, %v8829_v23 }
 0x237   : > { %v2656_v60 = vpop.f32.mrf.mxu0 }
 0x238   : > { %v2860_v57 = vadd.f32 %v2859_v18, %v2858_v0  ;;  %v8837_v33 = vadd.f32 %v2656_v60, %v8626_v55  ;;  %v2763_v54 = vadd.f32 %v2762_v7, %v2761_v59  ;;  %v2867_v55 = vsel %vm1577_vm2, %v2816_v35, 0.0 }
 0x239   : > { %v2658_v8 = vpop.f32.mrf.mxu0  ;;  %v2768_v60 = vsel %vm1577_vm2, %v8829_v23, 0.0  ;;  %v2869_v0 = vsel %vm1577_vm2, %v2817_v19, 0.0 }
 0x23a   : > { %v2862_v45 = vadd.f32 %v2861_v42, %v2860_v57  ;;  %v2765_v16 = vadd.f32 %v2764_v3, %v2763_v54  ;;  %v2818_v24 = vmul.f32 %v8837_v33, %v8837_v33  ;;  %v2770_v29 = vsel %vm1577_vm2, %v8837_v33, 0.0 }
 0x23b   : > { %v2659_v50 = vpop.f32.mrf.mxu0 }
 0x23c   : > { %v8845_v14 = vadd.f32 %v2659_v50, %v8628_v32  ;;  %v2864_v1 = vadd.f32 %v2863_v63, %v2862_v45  ;;  %v2767_v56 = vadd.f32 %v2766_v26, %v2765_v16  ;;  %v7143_v32 = vld [vmem:[%s10686_s2 + $0x88] sm:$0xff]   ;;  %v2871_v57 = vsel %vm1577_vm2, %v2818_v24, 0.0 }
 0x23d   : > { %v2661_v12 = vpop.f32.mrf.mxu0  ;;  %4278 = vmatpush1.bf16.msra.mxu1 %v7143_v32 }
 0x23e   : > { %v2866_v18 = vadd.f32 %v2865_v30, %v2864_v1  ;;  %v2819_v50 = vmul.f32 %v8845_v14, %v8845_v14  ;;  %v2769_v7 = vadd.f32 %v2768_v60, %v2767_v56  ;;  %v2772_v59 = vsel %vm1577_vm2, %v8845_v14, 0.0  ;;  %4279 = vmatprep.subr.bf16.mxu1 %v10758_v47 }
 0x23f   : > { %v2664_v58 = vpop.f32.mrf.mxu0 }
 0x240   : > { %v8853_v8 = vadd.f32 %v2664_v58, %v8630_v22  ;;  %v2868_v22 = vadd.f32 %v2867_v55, %v2866_v18  ;;  %v2771_v3 = vadd.f32 %v2770_v29, %v2769_v7 }
 0x241   : > { %v2666_v11 = vpop.f32.mrf.mxu0 }
 0x242   : > { %v2820_v12 = vmul.f32 %v8853_v8, %v8853_v8  ;;  %v2870_v63 = vadd.f32 %v2869_v0, %v2868_v22  ;;  %v2774_v45 = vsel %vm1577_vm2, %v8853_v8, 0.0  ;;  %v2773_v26 = vadd.f32 %v2772_v59, %v2771_v3 }
 0x243   : > { %v2667_v28 = vpop.f32.mrf.mxu0 }
 0x244   : > { %v8864_v42 = vadd.f32 %v2667_v28, %v8632_v25  ;;  %v2873_v25 = vsel %vm1577_vm2, %v2819_v50, 0.0  ;;  %v2872_v30 = vadd.f32 %v2871_v57, %v2870_v63  ;;  %v2875_v1 = vsel %vm1577_vm2, %v2820_v12, 0.0 }
 0x245   : > { %v2669_v53 = vpop.f32.mrf.mxu0  ;;  %v2775_v60 = vadd.f32 %v2774_v45, %v2773_v26 }
 0x246   : > { %v2821_v54 = vmul.f32 %v8864_v42, %v8864_v42  ;;  %v2776_v16 = vsel %vm1577_vm2, %v8864_v42, 0.0  ;;  %v2874_v55 = vadd.f32 %v2873_v25, %v2872_v30 }
 0x247   : > { %v2672_v35 = vpop.f32.mrf.mxu0  ;;  %v2777_v32 = vadd.f32 %v2776_v16, %v2775_v60 }
 0x248   : > { %v8878_v58 = vadd.f32 %v2672_v35, %v8634_v5  ;;  %v2877_v18 = vsel %vm1577_vm2, %v2821_v54, 0.0  ;;  %v2876_v28 = vadd.f32 %v2875_v1, %v2874_v55 }
 0x249   : > { %v2674_v19 = vpop.f32.mrf.mxu0 }
 0x24a   : > { %v2822_v11 = vmul.f32 %v8878_v58, %v8878_v58  ;;  %v2778_v5 = vsel %vm1577_vm2, %v8878_v58, 0.0  ;;  %v2878_v7 = vadd.f32 %v2877_v18, %v2876_v28 }
 0x24b   : > { %v2675_v24 = vpop.f32.mrf.mxu0  ;;  %v2779_v53 = vadd.f32 %v2778_v5, %v2777_v32 }
 0x24c   : > { %v8889_v56 = vadd.f32 %v2675_v24, %v8636_v9  ;;  %v2879_v29 = vsel %vm1577_vm2, %v2822_v11, 0.0  ;;  %v7144_v24 = vld [vmem:[%s10686_s2 + $0x80] sm:$0xff]  }
 0x24d   : > { %v2677_v0 = vpop.f32.mrf.mxu0  ;;  %v2880_v9 = vadd.f32 %v2879_v29, %v2878_v7  ;;  %4280 = vmatpush1.bf16.msra.mxu1 %v7144_v24  ;;  %v7145_v24 = vld [vmem:[%s10686_s2 + $0x78] sm:$0xff]  }
 0x24e   : > { %v2780_v50 = vsel %vm1577_vm2, %v8889_v56, 0.0  ;;  %v2823_v22 = vmul.f32 %v8889_v56, %v8889_v56  ;;  %4281 = vmatprep.subr.bf16.mxu1 %v10758_v47 }
 0x24f   : > { %v2680_v57 = vpop.f32.mrf.mxu0  ;;  %v2781_v63 = vadd.f32 %v2780_v50, %v2779_v53 }
 0x250   : > { %v2881_v59 = vsel %vm1577_vm2, %v2823_v22, 0.0  ;;  %v8898_v12 = vadd.f32 %v2680_v57, %v8638_v41 }
 0x251   : > { %v2682_v3 = vpop.f32.mrf.mxu0  ;;  %v2882_v45 = vadd.f32 %v2881_v59, %v2880_v9  ;;  %4282 = vmatpush1.bf16.msra.mxu1 %v7145_v24 }
 0x252   : > { %v2782_v35 = vsel %vm1577_vm2, %v8898_v12, 0.0  ;;  %v2824_v25 = vmul.f32 %v8898_v12, %v8898_v12  ;;  %4283 = vmatprep.subr.bf16.mxu1 %v10758_v47 }
 0x253   : > { %v2783_v54 = vadd.f32 %v2782_v35, %v2781_v63  ;;  %v2683_v30 = vpop.f32.mrf.mxu0 }
 0x254   : > { %v2883_v26 = vsel %vm1577_vm2, %v2824_v25, 0.0  ;;  %v8906_v19 = vadd.f32 %v2683_v30, %v8640_v39 }
 0x255   : > { %v2884_v1 = vadd.f32 %v2883_v26, %v2882_v45  ;;  %v2685_v41 = vpop.f32.mrf.mxu0 }
 0x256   : > { %v2784_v16 = vsel %vm1577_vm2, %v8906_v19, 0.0  ;;  %v2825_v11 = vmul.f32 %v8906_v19, %v8906_v19 }
 0x257   : > { %v2785_v55 = vadd.f32 %v2784_v16, %v2783_v54  ;;  %v2688_v60 = vpop.f32.mrf.mxu0 }
 0x258   : > { %v2885_v18 = vsel %vm1577_vm2, %v2825_v11, 0.0  ;;  %v8917_v5 = vadd.f32 %v2688_v60, %v8642_v2 }
 0x259   : > { %v2886_v39 = vadd.f32 %v2885_v18, %v2884_v1  ;;  %v2690_v28 = vpop.f32.mrf.mxu0 }
 0x25a   : > { %v2786_v32 = vsel %vm1577_vm2, %v8917_v5, 0.0  ;;  %v2826_v0 = vmul.f32 %v8917_v5, %v8917_v5 }
 0x25b   : > { %v2787_v29 = vadd.f32 %v2786_v32, %v2785_v55  ;;  %v2691_v50 = vpop.f32.mrf.mxu0 }
 0x25c   : > { %v2887_v22 = vsel %vm1577_vm2, %v2826_v0, 0.0  ;;  %v2726_v7 = vadd.f32 %v2691_v50, %v8644_v48  ;;  %v2909_v0 = vlaneseq  ;;  %v7146_v50 = vld [vmem:[%s10686_s2 + $0x70] sm:$0xff]  }
 0x25d   : > { %v2888_v53 = vadd.f32 %v2887_v22, %v2886_v39  ;;  %v2693_v2 = vpop.f32.mrf.mxu0  ;;  %4284 = vmatpush1.bf16.msra.mxu1 %v7146_v50  ;;  %v2901_v22 = vld [vmem:[%s10687_s3] sm:$0x1] }
 0x25e   : > { %v2788_v57 = vsel %vm1577_vm2, %v2726_v7, 0.0  ;;  %v2827_v59 = vmul.f32 %v2726_v7, %v2726_v7  ;;  %4285 = vmatprep.subr.bf16.mxu1 %v10758_v47 }
 0x25f   : > { %v2789_v9 = vadd.f32 %v2788_v57, %v2787_v29  ;;  %v8932_v29 = vshrl.u32 %v2909_v0, 7 }
 0x260   : > { %v2889_v63 = vsel %vm1577_vm2, %v2827_v59, 0.0  ;;  %v2905_v59 = vld [vmem:[%s10688_s4] sm:$0x1] }
 0x261   : > { %v2790_v3 = vrot.slane %v2789_v9, 4  ;;  %v2890_v35 = vadd.f32 %v2889_v63, %v2888_v53  ;;  %v8942_v53 = vsub.s32 0, %v8932_v29 }
 0x263   : > { %v2791_v25 = vadd.f32 %v2790_v3, %v2789_v9  ;;  %v2891_v45 = vrot.slane %v2890_v35, 4 }
 0x265   : > { %v2792_v54 = vrot.slane %v2791_v25, 2  ;;  %v2892_v30 = vadd.f32 %v2891_v45, %v2890_v35 }
 0x267   : > { %v2793_v26 = vadd.f32 %v2792_v54, %v2791_v25  ;;  %v2893_v1 = vrot.slane %v2892_v30, 2 }
 0x269   : > { %v2794_v41 = vrot.slane %v2793_v26, 1  ;;  %v2894_v16 = vadd.f32 %v2893_v1, %v2892_v30 }
 0x26b   : > { %v2795_v11 = vadd.f32 %v2794_v41, %v2793_v26  ;;  %v2895_v48 = vrot.slane %v2894_v16, 1 }
 0x26d   : > { %v2896_v55 = vadd.f32 %v2895_v48, %v2894_v16  ;;  %v2897_v60 = vmul.f32 0.00390625, %v2795_v11 }
 0x26f   : > { %v2898_v18 = vmul.f32 0.00390625, %v2896_v55  ;;  %v2899_v39 = vmul.f32 %v2897_v60, %v2897_v60 }
 0x271   : > { %v2900_v28 = vsub.f32 %v2898_v18, %v2899_v39 }
 0x273   : > { %v2902_v32 = vadd.f32 1e-05, %v2900_v28 }
 0x275   : > { %7225 = vrsqrt.f32 %v2902_v32 }
 0x282   : > { %v7226_v2 = vpop.eup %7225 }
 0x283   : > { %v2904_v57 = vmul.f32 %v7226_v2, %v2901_v22  ;;  %v7149_v2 = vld [vmem:[%s10686_s2 + $0x60] sm:$0xff]  }
 0x285   : > { %v2906_v9 = vmul.f32 %v2904_v57, %v2897_v60  ;;  %v2912_v63 = vrot.slane %v2904_v57, %v8942_v53  ;;  %v7148_v60 = vld [vmem:[%s10686_s2 + $0x38] sm:$0xff]  }
 0x286   : > { %4699 = vmatpush1.bf16.msra.mxu0 %v7148_v60 }
 0x287   : > { %v2907_v3 = vsub.f32 %v2905_v59, %v2906_v9  ;;  %v2945_v35 = vmul.f32 %v2912_v63, %v2726_v7  ;;  %v2914_v25 = vmul.f32 %v2912_v63, %v8647_v44  ;;  %v2915_v45 = vmul.f32 %v2912_v63, %v8650_v31  ;;  %4700 = vmatprep.subr.bf16.mxu0 %v10758_v47 }
 0x288   : > { %v2916_v54 = vmul.f32 %v2912_v63, %v8653_v27  ;;  %v2917_v30 = vmul.f32 %v2912_v63, %v8656_v10  ;;  %v2918_v26 = vmul.f32 %v2912_v63, %v8659_v62  ;;  %v2919_v1 = vmul.f32 %v2912_v63, %v8689_v38 }
 0x289   : > { %v8955_v41 = vrot.slane %v2907_v3, %v8942_v53  ;;  %v2920_v16 = vmul.f32 %v2912_v63, %v8698_v17  ;;  %v2921_v11 = vmul.f32 %v2912_v63, %v8708_v4  ;;  %v2922_v7 = vmul.f32 %v2912_v63, %v8716_v37  ;;  %v7150_v3 = vld [vmem:[%s10686_s2 + $0x30] sm:$0xff]  }
 0x28a   : > { %v2923_v44 = vmul.f32 %v2912_v63, %v8724_v43  ;;  %v2924_v31 = vmul.f32 %v2912_v63, %v8732_v15  ;;  %v2925_v27 = vmul.f32 %v2912_v63, %v8740_v6  ;;  %v2926_v10 = vmul.f32 %v2912_v63, %v8749_v21  ;;  %4701 = vmatpush1.bf16.msra.mxu0 %v7150_v3 }
 0x28b   : > { %v8965_v62 = vadd.f32 %v8955_v41, %v2945_v35  ;;  %v2927_v38 = vmul.f32 %v2912_v63, %v8758_v34  ;;  %v2928_v48 = vmul.f32 %v2912_v63, %v8767_v20  ;;  %v2929_v17 = vmul.f32 %v2912_v63, %v8776_v13  ;;  %4702 = vmatprep.subr.bf16.mxu0 %v10758_v47 }
 0x28c   : > { %v2930_v4 = vmul.f32 %v2912_v63, %v8785_v51  ;;  %v2931_v37 = vmul.f32 %v2912_v63, %v8796_v49  ;;  %v2932_v43 = vmul.f32 %v2912_v63, %v8804_v36  ;;  %v2933_v15 = vmul.f32 %v2912_v63, %v8813_v52 }
 0x28d   : > { %v2934_v6 = vmul.f32 %v2912_v63, %v8821_v46  ;;  %v2935_v21 = vmul.f32 %v2912_v63, %v8829_v23  ;;  %v2936_v55 = vmul.f32 %v2912_v63, %v8837_v33  ;;  %v2937_v34 = vmul.f32 %v2912_v63, %v8845_v14 }
 0x28e   : > { %v2938_v20 = vmul.f32 %v2912_v63, %v8853_v8  ;;  %v2939_v13 = vmul.f32 %v2912_v63, %v8864_v42  ;;  %v2940_v51 = vmul.f32 %v2912_v63, %v8878_v58  ;;  %v2941_v49 = vmul.f32 %v2912_v63, %v8889_v56 }
 0x28f   : > { %v2942_v36 = vmul.f32 %v2912_v63, %v8898_v12  ;;  %v2943_v52 = vmul.f32 %v2912_v63, %v8906_v19  ;;  %v2944_v46 = vmul.f32 %v2912_v63, %v8917_v5  ;;  %v2952_v23 = vadd.f32 %v8955_v41, %v2914_v25  ;;  %v7147_v5 = vld [vmem:[%s10686_s2 + $0x68] sm:$0xff]  }
 0x290   : > { %v2953_v33 = vadd.f32 %v8955_v41, %v2915_v45  ;;  %v2954_v14 = vadd.f32 %v8955_v41, %v2916_v54  ;;  %v2955_v8 = vadd.f32 %v8955_v41, %v2917_v30  ;;  %v8990_v42 = vadd.f32 %v8955_v41, %v2918_v26  ;;  %4286 = vmatpush1.bf16.msra.mxu1 %v7147_v5 }
 0x291   : > { %v8993_v58 = vadd.f32 %v8955_v41, %v2919_v1  ;;  %v8996_v56 = vadd.f32 %v8955_v41, %v2920_v16  ;;  %v8999_v12 = vadd.f32 %v8955_v41, %v2921_v11  ;;  %v9002_v19 = vadd.f32 %v8955_v41, %v2922_v7  ;;  %4287 = vmatprep.subr.bf16.mxu1 %v10758_v47 }
 0x292   : > { %v9011_v24 = vadd.f32 %v8955_v41, %v2923_v44  ;;  %v9014_v18 = vadd.f32 %v8955_v41, %v2924_v31  ;;  %v9017_v39 = vadd.f32 %v8955_v41, %v2925_v27  ;;  %v9020_v28 = vadd.f32 %v8955_v41, %v2926_v10  ;;  %v7151_v31 = vld [vmem:[%s10686_s2 + $0x28] sm:$0xff]   ;;  %v7153_v27 = vld [vmem:[%s10686_s2 + $0xb8] sm:$0xff]  }
 0x293   : > { %v9023_v32 = vadd.f32 %v8955_v41, %v2927_v38  ;;  %v9026_v0 = vadd.f32 %v8955_v41, %v2928_v48  ;;  %v9029_v50 = vadd.f32 %v8955_v41, %v2929_v17  ;;  %v9032_v22 = vadd.f32 %v8955_v41, %v2930_v4  ;;  %v7167_v17 = vld [vmem:[#allocation2 + $0x4] ss:$8 sps:$4 sm:$0xff]   ;;  %4703 = vmatpush1.bf16.msra.mxu0 %v7151_v31 }
 0x294   : > { %v9038_v57 = vadd.f32 %v8955_v41, %v2931_v37  ;;  %v9041_v59 = vadd.f32 %v8955_v41, %v2932_v43  ;;  %v9044_v9 = vadd.f32 %v8955_v41, %v2933_v15  ;;  %v9047_v63 = vadd.f32 %v8955_v41, %v2934_v6  ;;  %4288 = vmatpush1.bf16.msra.mxu1 %v7149_v2  ;;  %v7160_v31 = vld [vmem:[%s10686_s2 + $0xa8] sm:$0xff]  }
 0x295   : > { %v9053_v35 = vadd.f32 %v8955_v41, %v2935_v21  ;;  %v9056_v25 = vadd.f32 %v8955_v41, %v2936_v55  ;;  %v9059_v45 = vadd.f32 %v8955_v41, %v2937_v34  ;;  %v9062_v54 = vadd.f32 %v8955_v41, %v2938_v20  ;;  %4297 = vmatprep.subr.bf16.mxu1 %v10758_v47  ;;  %v7156_v34 = vld [vmem:[%s10686_s2 + $0xb0] sm:$0xff]  }
 0x296   : > { %v9066_v30 = vadd.f32 %v8955_v41, %v2939_v13  ;;  %v9069_v26 = vadd.f32 %v8955_v41, %v2940_v51  ;;  %v9072_v1 = vadd.f32 %v8955_v41, %v2941_v49  ;;  %v9075_v16 = vadd.f32 %v8955_v41, %v2942_v36  ;;  %6837 = vmatprep.mubr.msk.bf16.mxu0 %vm1577_vm2, %v7167_v17  ;;  %v7152_v36 = vld [vmem:[%s10686_s2 + $0x20] sm:$0xff]   ;;  %v3833_v17 = vld [vmem:[#allocation2 + $0x1c] sm:$0xf] }
 0x297   : > { %v9079_v11 = vadd.f32 %v8955_v41, %v2943_v52  ;;  %v9082_v7 = vadd.f32 %v8955_v41, %v2944_v46  ;;  %vm2985_vm4 = vcmp.gt.f32.partialorder %v2953_v33, 0.0  ;;  %v3017_v44 = vmul.f32 0.2, %v2953_v33  ;;  %4704 = vmatprep.subr.bf16.mxu0 %v10758_v47 }
 0x298   : > { %vm2984_vm8 = vcmp.gt.f32.partialorder %v2952_v23, 0.0  ;;  %v3016_v10 = vmul.f32 0.2, %v2952_v23  ;;  %vm2987_vm9 = vcmp.gt.f32.partialorder %v2955_v8, 0.0  ;;  %v3019_v38 = vmul.f32 0.2, %v2955_v8  ;;  %4298 = vmatpush2.bf16.msra.mxu1 %v7153_v27  ;;  %4705 = vmatpush1.bf16.msra.mxu0 %v7152_v36 }
 0x299   : > { %v3049_v41 = vsel %vm2985_vm4, %v2953_v33, %v3017_v44  ;;  %vm2986_vm10 = vcmp.gt.f32.partialorder %v2954_v14, 0.0  ;;  %v3018_v48 = vmul.f32 0.2, %v2954_v14  ;;  %vm2989_vm11 = vcmp.gt.f32.partialorder %v8993_v58, 0.0  ;;  %4299 = vmatprep.subr.bf16.mxu1 %v10758_v47  ;;  %4706 = vmatprep.subr.bf16.mxu0 %v10758_v47 }
 0x29a   : > { %v6976_v4 = vpack.c.bf16 %v3049_v41, %v3049_v41  ;;  %v3048_v37 = vsel %vm2984_vm8, %v2952_v23, %v3016_v10  ;;  %v3051_v43 = vsel %vm2987_vm9, %v2955_v8, %v3019_v38  ;;  %v3021_v15 = vmul.f32 0.2, %v8993_v58 }
 0x29b   : > { %v6975_v6 = vpack.c.bf16 %v3048_v37, %v3048_v37  ;;  %v6978_v21 = vpack.c.bf16 %v3051_v43, %v3051_v43  ;;  %v3050_v55 = vsel %vm2986_vm10, %v2954_v14, %v3018_v48  ;;  %vm2988_vm12 = vcmp.gt.f32.partialorder %v8990_v42, 0.0  ;;  %v7154_v48 = vld [vmem:[%s10686_s2 + $0x18] sm:$0xff]  }
 0x29c   : > { %3530 = vrot.lane.b32.xlu1 %v6976_v4, %s7292_s20  ;;  %v3185_v20 = vshrl.u32 %v6976_v4, 16  ;;  %v3188_v13 = vshll.u32 %v6976_v4, 16  ;;  %v6977_v51 = vpack.c.bf16 %v3050_v55, %v3050_v55  ;;  %v3053_v49 = vsel %vm2989_vm11, %v8993_v58, %v3021_v15  ;;  %4300 = vmatpush2.bf16.msra.mxu1 %v7156_v34  ;;  %v3464_v55 = vld [vmem:[#allocation2 + $0x10] sm:$0xf] }
 0x29d   : > { %3528 = vrot.lane.b32.xlu0 %v6975_v6, %s7292_s20  ;;  %v3177_v52 = vshrl.u32 %v6975_v6, 16  ;;  %v3180_v46 = vshll.u32 %v6975_v6, 16  ;;  %v3201_v23 = vshrl.u32 %v6978_v21, 16  ;;  %v3204_v33 = vshll.u32 %v6978_v21, 16  ;;  %4301 = vmatprep.subr.bf16.mxu1 %v10758_v47 }
 0x29e   : > { %v3187_v14 = vrot.slane %v3185_v20, 7  ;;  %v3660_v8 = vrot.slane %v3188_v13, 5  ;;  %v3662_v5 = vrot.slane %v3185_v20, 4  ;;  %v3193_v60 = vshrl.u32 %v6977_v51, 16  ;;  %4707 = vmatpush1.bf16.msra.mxu0 %v7154_v48 }
 0x29f   : > { %v3179_v58 = vrot.slane %v3177_v52, 7  ;;  %v3656_v2 = vrot.slane %v3177_v52, 4  ;;  %v3657_v3 = vrot.slane %v3180_v46, 5  ;;  %v3203_v44 = vrot.slane %v3201_v23, 7  ;;  %4708 = vmatprep.subr.bf16.mxu0 %v10758_v47 }
 0x2a0   : > { %v3190_v27 = vor.u32 %v3188_v13, %v3187_v14  ;;  %v3663_v10 = vor.u32 %v3662_v5, %v3660_v8  ;;  %v9112_v38 = vrot.slane %v3204_v33, 5  ;;  %v3671_v41 = vrot.slane %v3201_v23, 4  ;;  %3534 = vrot.lane.b32.xlu1 %v6978_v21, %s7292_s20  ;;  %4302 = vmatpush2.bf16.msra.mxu1 %v7160_v31  ;;  %v3468_v31 = vld [vmem:[#allocation2 + $0x20] sm:$0xf] }
 0x2a1   : > { %v3182_v4 = vor.u32 %v3180_v46, %v3179_v58  ;;  %v3183_v37 = vrot.slane %v3179_v58, 4  ;;  %v3658_v43 = vor.u32 %v3657_v3, %v3656_v2  ;;  %v3206_v15 = vor.u32 %v3204_v33, %v3203_v44  ;;  %3532 = vrot.lane.b32.xlu0 %v6977_v51, %s7292_s20  ;;  %v3837_v46 = vld [vmem:[#allocation2 + $0x2c] sm:$0xf]  ;;  %v7164_v33 = vld [vmem:[%s10686_s2 + $0xa0] sm:$0xff]   ;;  %v7155_v3 = vld [vmem:[%s10686_s2 + $0x10] sm:$0xff]   ;;  %4303 = vmatprep.subr.bf16.mxu1 %v10758_v47 }
 0x2a2   : > { %v3664_v6 = vrot.slane %v3663_v10, 4  ;;  %v3672_v34 = vor.u32 %v3671_v41, %v9112_v38  ;;  %v3195_v20 = vrot.slane %v3193_v60, 7  ;;  %v3196_v21 = vshll.u32 %v6977_v51, 16  ;;  %4709 = vmatpush1.bf16.msra.mxu0 %v7155_v3 }
 0x2a3   : > { %v3191_v13 = vsel %vm8026_vm13, %v3183_v37, %v3190_v27  ;;  %v3465_v36 = vsel %vm8040_vm14, %v3182_v4, %v3464_v55  ;;  %v3659_v52 = vrot.slane %v3658_v43, 4  ;;  %v3665_v23 = vrot.slane %v3193_v60, 4  ;;  %4710 = vmatprep.subr.bf16.mxu0 %v10758_v47 }
 0x2a4   : > { %v3834_v5 = vsel %vm7468_vm7, %v3664_v6, %v3833_v17  ;;  %3466 = vst [vmem:[#allocation2 + $0x10] sm:$0xf] %v3465_v36  ;;  %3467 = vst.msk [vmem:[#allocation2 + $0x18] sm:$0xf] %vm807_vm5, %v3191_v13  ;;  %v3673_v51 = vrot.slane %v3672_v34, 4  ;;  %v3198_v58 = vor.u32 %v3196_v21, %v3195_v20  ;;  %v3199_v2 = vrot.slane %v3195_v20, 4  ;;  %4304 = vmatpush2.bf16.msra.mxu1 %v7164_v33 }
 0x2a5   : > { %3835 = vst [vmem:[#allocation2 + $0x1c] sm:$0xf] %v3834_v5  ;;  %v3661_v44 = vsel %vm7456_vm6, %v3659_v52, %v3660_v8  ;;  %v3666_v27 = vrot.slane %v3196_v21, 5  ;;  %v6980_v10 = vpack.c.bf16 %v3053_v49, %v3053_v49  ;;  %v3020_v41 = vmul.f32 0.2, %v8990_v42  ;;  %v7157_v34 = vld [vmem:[%s10686_s2 + $0x8] sm:$0xff]   ;;  %5180 = vmatprep.subr.bf16.mxu1 %v10758_v47 }
 0x2a6   : > { %3832 = vst.msk [vmem:[#allocation2 + $0x14] sm:$0xf] %vm807_vm5, %v3661_v44  ;;  %v3838_v48 = vsel %vm7468_vm7, %v3673_v51, %v3837_v46  ;;  %v3207_v17 = vsel %vm8026_vm13, %v3199_v2, %v3206_v15  ;;  %v3469_v4 = vsel %vm8040_vm14, %v3198_v58, %v3468_v31  ;;  %vm2991_vm15 = vcmp.gt.f32.partialorder %v8999_v12, 0.0  ;;  %v3841_v2 = vld [vmem:[#allocation2 + $0x3c] sm:$0xf]  ;;  %4711 = vmatpush1.bf16.msra.mxu0 %v7157_v34 }
 0x2a7   : > { %3839 = vst [vmem:[#allocation2 + $0x2c] sm:$0xf] %v3838_v48  ;;  %3470 = vst [vmem:[#allocation2 + $0x20] sm:$0xf] %v3469_v4  ;;  %v3667_v49 = vor.u32 %v3666_v27, %v3665_v23  ;;  %v3217_v8 = vshrl.u32 %v6980_v10, 16  ;;  %v3220_v37 = vshll.u32 %v6980_v10, 16  ;;  %3538 = vrot.lane.b32.xlu1 %v6980_v10, %s7292_s20  ;;  %v3052_v43 = vsel %vm2988_vm12, %v8990_v42, %v3020_v41 }
 0x2a8   : > { %3471 = vst.msk [vmem:[#allocation2 + $0x28] sm:$0xf] %vm807_vm5, %v3207_v17  ;;  %v6979_v15 = vpack.c.bf16 %v3052_v43, %v3052_v43  ;;  %v3023_v6 = vmul.f32 0.2, %v8999_v12  ;;  %vm2990_vm0 = vcmp.gt.f32.partialorder %v8996_v56, 0.0  ;;  %vm2993_vm1 = vcmp.gt.f32.partialorder %v9011_v24, 0.0  ;;  %4712 = vmatprep.subr.bf16.mxu0 %v10758_v47 }
 0x2a9   : > { %v3022_v55 = vmul.f32 0.2, %v8996_v56  ;;  %v3668_v20 = vrot.slane %v3667_v49, 4  ;;  %v3219_v21 = vrot.slane %v3217_v8, 7  ;;  %v3678_v13 = vrot.slane %v3220_v37, 5 }
 0x2aa   : > { %v3680_v36 = vrot.slane %v3217_v8, 4  ;;  %v3209_v42 = vshrl.u32 %v6979_v15, 16  ;;  %v3212_v52 = vshll.u32 %v6979_v15, 16  ;;  %3536 = vrot.lane.b32.xlu0 %v6979_v15, %s7292_s20  ;;  %v3055_v46 = vsel %vm2991_vm15, %v8999_v12, %v3023_v6  ;;  %v7158_v12 = vld [vmem:[%s10686_s2] sm:$0xff]   ;;  %v3472_v8 = vld [vmem:[#allocation2 + $0x30] sm:$0xf] }
 0x2ab   : > { %v3054_v23 = vsel %vm2990_vm0, %v8996_v56, %v3022_v55  ;;  %v3670_v33 = vsel %vm7456_vm6, %v3668_v20, %v9112_v38  ;;  %v3222_v5 = vor.u32 %v3220_v37, %v3219_v21  ;;  %v6982_v58 = vpack.c.bf16 %v3055_v46, %v3055_v46  ;;  %4713 = vmatpush1.bf16.msra.mxu0 %v7158_v12  ;;  %v7159_v21 = vld [vmem:[%s10686_s2 + $0x58] sm:$0xff]  }
 0x2ac   : > { %v3681_v51 = vor.u32 %v3680_v36, %v3678_v13  ;;  %3836 = vst.msk [vmem:[#allocation2 + $0x24] sm:$0xf] %vm807_vm5, %v3670_v33  ;;  %v3211_v3 = vrot.slane %v3209_v42, 7  ;;  %v3674_v44 = vrot.slane %v3209_v42, 4  ;;  %v3675_v31 = vrot.slane %v3212_v52, 5  ;;  %4722 = vmatprep.subr.bf16.mxu0 %v10758_v47 }
 0x2ad   : > { %v6981_v27 = vpack.c.bf16 %v3054_v23, %v3054_v23  ;;  %v3233_v10 = vshrl.u32 %v6982_v58, 16  ;;  %v3236_v41 = vshll.u32 %v6982_v58, 16  ;;  %3542 = vrot.lane.b32.xlu1 %v6982_v58, %s7292_s20  ;;  %v3845_v33 = vld [vmem:[#allocation2 + $0x4c] sm:$0xf]  ;;  %vm2992_vm4 = vcmp.gt.f32.partialorder %v9002_v19, 0.0 }
 0x2ae   : > { %v3682_v56 = vrot.slane %v3681_v51, 4  ;;  %v3214_v38 = vor.u32 %v3212_v52, %v3211_v3  ;;  %v3215_v48 = vrot.slane %v3211_v3, 4  ;;  %v3676_v17 = vor.u32 %v3675_v31, %v3674_v44 }
 0x2af   : > { %v3225_v4 = vshrl.u32 %v6981_v27, 16  ;;  %3540 = vrot.lane.b32.xlu0 %v6981_v27, %s7292_s20  ;;  %v3235_v37 = vrot.slane %v3233_v10, 7  ;;  %v9179_v43 = vrot.slane %v3236_v41, 5  ;;  %v3689_v15 = vrot.slane %v3233_v10, 4  ;;  %4723 = vmatpush2.bf16.msra.mxu0 %v7159_v21 }
 0x2b0   : > { %v3842_v49 = vsel %vm7468_vm7, %v3682_v56, %v3841_v2  ;;  %v3223_v6 = vsel %vm8026_vm13, %v3215_v48, %v3222_v5  ;;  %v3473_v55 = vsel %vm8040_vm14, %v3214_v38, %v3472_v8  ;;  %v3677_v34 = vrot.slane %v3676_v17, 4  ;;  %v7161_v56 = vld [vmem:[%s10686_s2 + $0x50] sm:$0xff]   ;;  %4724 = vmatprep.subr.bf16.mxu0 %v10758_v47 }
 0x2b1   : > { %3843 = vst [vmem:[#allocation2 + $0x3c] sm:$0xf] %v3842_v49  ;;  %v3227_v20 = vrot.slane %v3225_v4, 7  ;;  %3474 = vst [vmem:[#allocation2 + $0x30] sm:$0xf] %v3473_v55  ;;  %v3238_v36 = vor.u32 %v3236_v41, %v3235_v37  ;;  %v3690_v42 = vor.u32 %v3689_v15, %v9179_v43  ;;  %v3228_v52 = vshll.u32 %v6981_v27, 16 }
 0x2b2   : > { %3475 = vst.msk [vmem:[#allocation2 + $0x38] sm:$0xf] %vm807_vm5, %v3223_v6  ;;  %v3683_v46 = vrot.slane %v3225_v4, 4  ;;  %v3679_v23 = vsel %vm7456_vm6, %v3677_v34, %v3678_v13  ;;  %v3025_v51 = vmul.f32 0.2, %v9011_v24  ;;  %vm2995_vm8 = vcmp.gt.f32.partialorder %v9017_v39, 0.0 }
 0x2b3   : > { %v3231_v5 = vrot.slane %v3227_v20, 4  ;;  %3840 = vst.msk [vmem:[#allocation2 + $0x34] sm:$0xf] %vm807_vm5, %v3679_v23  ;;  %v3691_v58 = vrot.slane %v3690_v42, 4  ;;  %v3230_v2 = vor.u32 %v3228_v52, %v3227_v20  ;;  %v3684_v3 = vrot.slane %v3228_v52, 5  ;;  %4725 = vmatpush2.bf16.msra.mxu0 %v7161_v56 }
 0x2b4   : > { %v3024_v44 = vmul.f32 0.2, %v9002_v19  ;;  %v3476_v27 = vld [vmem:[#allocation2 + $0x40] sm:$0xf]  ;;  %v3057_v13 = vsel %vm2993_vm1, %v9011_v24, %v3025_v51  ;;  %v3027_v12 = vmul.f32 0.2, %v9017_v39  ;;  %4726 = vmatprep.subr.bf16.mxu0 %v10758_v47 }
 0x2b5   : > { %v3239_v31 = vsel %vm8026_vm13, %v3231_v5, %v3238_v36  ;;  %v3846_v10 = vsel %vm7468_vm7, %v3691_v58, %v3845_v33  ;;  %v3477_v41 = vsel %vm8040_vm14, %v3230_v2, %v3476_v27  ;;  %v3685_v38 = vor.u32 %v3684_v3, %v3683_v46  ;;  %v3849_v5 = vld [vmem:[#allocation2 + $0x5c] sm:$0xf]  ;;  %v9460_v60 = vld [vmem:[#allocation2 + $0x24] ss:$8 sps:$4 sm:$0xff]  }
 0x2b6   : > { %3479 = vst.msk [vmem:[#allocation2 + $0x48] sm:$0xf] %vm807_vm5, %v3239_v31  ;;  %v6984_v48 = vpack.c.bf16 %v3057_v13, %v3057_v13  ;;  %3847 = vst [vmem:[#allocation2 + $0x4c] sm:$0xf] %v3846_v10  ;;  %v3056_v24 = vsel %vm2992_vm4, %v9002_v19, %v3024_v44  ;;  %v3059_v17 = vsel %vm2995_vm8, %v9017_v39, %v3027_v12  ;;  %vm2994_vm9 = vcmp.gt.f32.partialorder %v9014_v18, 0.0  ;;  %v7162_v19 = vld [vmem:[%s10686_s2 + $0x48] sm:$0xff]  }
 0x2b7   : > { %3478 = vst [vmem:[#allocation2 + $0x40] sm:$0xf] %v3477_v41  ;;  %v3026_v4 = vmul.f32 0.2, %v9014_v18  ;;  %v3686_v49 = vrot.slane %v3685_v38, 4  ;;  %v6983_v15 = vpack.c.bf16 %v3056_v24, %v3056_v24  ;;  %v6986_v6 = vpack.c.bf16 %v3059_v17, %v3059_v17  ;;  %4727 = vmatpush2.bf16.msra.mxu0 %v7162_v19  ;;  %v7163_v31 = vld [vmem:[%s10686_s2 + $0x40] sm:$0xff]  }
 0x2b8   : > { %v3249_v8 = vshrl.u32 %v6984_v48, 16  ;;  %v3252_v37 = vshll.u32 %v6984_v48, 16  ;;  %3546 = vrot.lane.b32.xlu1 %v6984_v48, %s7292_s20  ;;  %vm2997_vm10 = vcmp.gt.f32.partialorder %v9023_v32, 0.0  ;;  %v3029_v34 = vmul.f32 0.2, %v9023_v32  ;;  %4728 = vmatprep.subr.bf16.mxu0 %v10758_v47 }
 0x2b9   : > { %v3058_v55 = vsel %vm2994_vm9, %v9014_v18, %v3026_v4  ;;  %v3688_v39 = vsel %vm7456_vm6, %v3686_v49, %v9179_v43  ;;  %3544 = vrot.lane.b32.xlu0 %v6983_v15, %s7292_s20  ;;  %v3241_v18 = vshrl.u32 %v6983_v15, 16  ;;  %v3244_v42 = vshll.u32 %v6983_v15, 16  ;;  %v3480_v24 = vld [vmem:[#allocation2 + $0x50] sm:$0xf] }
 0x2ba   : > { %v3251_v20 = vrot.slane %v3249_v8, 7  ;;  %v3696_v21 = vrot.slane %v3252_v37, 5  ;;  %v3698_v36 = vrot.slane %v3249_v8, 4  ;;  %3844 = vst.msk [vmem:[#allocation2 + $0x44] sm:$0xf] %vm807_vm5, %v3688_v39  ;;  %v3265_v52 = vshrl.u32 %v6986_v6, 16 }
 0x2bb   : > { %v3268_v46 = vshll.u32 %v6986_v6, 16  ;;  %v6985_v51 = vpack.c.bf16 %v3058_v55, %v3058_v55  ;;  %v3061_v43 = vsel %vm2997_vm10, %v9023_v32, %v3029_v34  ;;  %v3243_v58 = vrot.slane %v3241_v18, 7  ;;  %v7165_v8 = vld [vmem:[#allocation2] ss:$8 sps:$4 sm:$0xff]   ;;  %v3853_v55 = vld [vmem:[#allocation2 + $0x6c] sm:$0xf]  ;;  %4729 = vmatpush2.bf16.msra.mxu0 %v7163_v31 }
 0x2bc   : > { %v3254_v23 = vor.u32 %v3252_v37, %v3251_v20  ;;  %v3699_v33 = vor.u32 %v3698_v36, %v3696_v21  ;;  %3550 = vrot.lane.b32.xlu1 %v6986_v6, %s7292_s20  ;;  %v3692_v2 = vrot.slane %v3241_v18, 4  ;;  %v3693_v3 = vrot.slane %v3244_v42, 5 }
 0x2bd   : > { %v3267_v44 = vrot.slane %v3265_v52, 7  ;;  %v3705_v13 = vrot.slane %v3268_v46, 5  ;;  %v3707_v12 = vrot.slane %v3265_v52, 4  ;;  %v3257_v56 = vshrl.u32 %v6985_v51, 16  ;;  %3548 = vrot.lane.b32.xlu0 %v6985_v51, %s7292_s20 }
 0x2be   : > { %v3700_v27 = vrot.slane %v3699_v33, 4  ;;  %v3246_v10 = vor.u32 %v3244_v42, %v3243_v58  ;;  %v3247_v41 = vrot.slane %v3243_v58, 4  ;;  %v3694_v32 = vor.u32 %v3693_v3, %v3692_v2  ;;  %v3484_v42 = vld [vmem:[#allocation2 + $0x60] sm:$0xf]  ;;  %4731 = vmatmul.mubr.bf16.vlgmr.msra.gmra.mxu0 %v7165_v8 }
 0x2bf   : > { %v3270_v38 = vor.u32 %v3268_v46, %v3267_v44  ;;  %v3708_v17 = vor.u32 %v3707_v12, %v3705_v13  ;;  %v3259_v4 = vrot.slane %v3257_v56, 7  ;;  %v3260_v49 = vshll.u32 %v6985_v51, 16 }
 0x2c0   : > { %v3850_v48 = vsel %vm7468_vm7, %v3700_v27, %v3849_v5  ;;  %v3255_v37 = vsel %vm8026_vm13, %v3247_v41, %v3254_v23  ;;  %v3481_v15 = vsel %vm8040_vm14, %v3246_v10, %v3480_v24  ;;  %v3695_v6 = vrot.slane %v3694_v32, 4 }
 0x2c1   : > { %3851 = vst [vmem:[#allocation2 + $0x5c] sm:$0xf] %v3850_v48  ;;  %v3701_v34 = vrot.slane %v3257_v56, 4  ;;  %3482 = vst [vmem:[#allocation2 + $0x50] sm:$0xf] %v3481_v15  ;;  %v3709_v19 = vrot.slane %v3708_v17, 4  ;;  %v3262_v39 = vor.u32 %v3260_v49, %v3259_v4  ;;  %v6988_v52 = vpack.c.bf16 %v3061_v43, %v3061_v43 }
 0x2c2   : > { %3483 = vst.msk [vmem:[#allocation2 + $0x58] sm:$0xf] %vm807_vm5, %v3255_v37  ;;  %v3263_v20 = vrot.slane %v3259_v4, 4  ;;  %v3702_v36 = vrot.slane %v3260_v49, 5  ;;  %v3697_v18 = vsel %vm7456_vm6, %v3695_v6, %v3696_v21  ;;  %vm2996_vm11 = vcmp.gt.f32.partialorder %v9020_v28, 0.0 }
 0x2c3   : > { %v3028_v46 = vmul.f32 0.2, %v9020_v28  ;;  %3848 = vst.msk [vmem:[#allocation2 + $0x54] sm:$0xf] %vm807_vm5, %v3697_v18  ;;  %v3854_v23 = vsel %vm7468_vm7, %v3709_v19, %v3853_v55  ;;  %v3485_v5 = vsel %vm8040_vm14, %v3262_v39, %v3484_v42  ;;  %v3281_v21 = vshrl.u32 %v6988_v52, 16  ;;  %3554 = vrot.lane.b32.xlu1 %v6988_v52, %s7292_s20 }
 0x2c4   : > { %v3271_v33 = vsel %vm8026_vm13, %v3263_v20, %v3270_v38  ;;  %v3703_v51 = vor.u32 %v3702_v36, %v3701_v34  ;;  %3855 = vst [vmem:[#allocation2 + $0x6c] sm:$0xf] %v3854_v23  ;;  %3486 = vst [vmem:[#allocation2 + $0x60] sm:$0xf] %v3485_v5  ;;  %v3284_v43 = vshll.u32 %v6988_v52, 16  ;;  %vm2999_vm12 = vcmp.gt.f32.partialorder %v9029_v50, 0.0 }
 0x2c5   : > { %3487 = vst.msk [vmem:[#allocation2 + $0x68] sm:$0xf] %vm807_vm5, %v3271_v33  ;;  %v3060_v58 = vsel %vm2996_vm11, %v9020_v28, %v3028_v46  ;;  %v3031_v44 = vmul.f32 0.2, %v9029_v50  ;;  %vm2998_vm15 = vcmp.gt.f32.partialorder %v9026_v0, 0.0  ;;  %v3283_v31 = vrot.slane %v3281_v21, 7 }
 0x2c6   : > { %v3704_v2 = vrot.slane %v3703_v51, 4  ;;  %v6987_v3 = vpack.c.bf16 %v3060_v58, %v3060_v58  ;;  %v3714_v27 = vrot.slane %v3284_v43, 5  ;;  %v3716_v12 = vrot.slane %v3281_v21, 4  ;;  %v3857_v4 = vld [vmem:[#allocation2 + $0x7c] sm:$0xf] }
 0x2c7   : > { %v3030_v56 = vmul.f32 0.2, %v9026_v0  ;;  %v3063_v28 = vsel %vm2999_vm12, %v9029_v50, %v3031_v44  ;;  %v3286_v38 = vor.u32 %v3284_v43, %v3283_v31  ;;  %vm3001_vm0 = vcmp.gt.f32.partialorder %v9038_v57, 0.0  ;;  %v3488_v20 = vld [vmem:[#allocation2 + $0x70] sm:$0xf] }
 0x2c8   : > { %v3706_v10 = vsel %vm7456_vm6, %v3704_v2, %v3705_v13  ;;  %v3273_v41 = vshrl.u32 %v6987_v3, 16  ;;  %v3276_v32 = vshll.u32 %v6987_v3, 16  ;;  %3552 = vrot.lane.b32.xlu0 %v6987_v3, %s7292_s20  ;;  %v3717_v48 = vor.u32 %v3716_v12, %v3714_v27  ;;  %v3861_v2 = vld [vmem:[#allocation2 + $0x8c] sm:$0xf] }
 0x2c9   : > { %3852 = vst.msk [vmem:[#allocation2 + $0x64] sm:$0xf] %vm807_vm5, %v3706_v10  ;;  %v6990_v24 = vpack.c.bf16 %v3063_v28, %v3063_v28  ;;  %v3062_v17 = vsel %vm2998_vm15, %v9026_v0, %v3030_v56  ;;  %v3033_v44 = vmul.f32 0.2, %v9038_v57  ;;  %vm3000_vm1 = vcmp.gt.f32.partialorder %v9032_v22, 0.0 }
 0x2ca   : > { %v3275_v49 = vrot.slane %v3273_v41, 7  ;;  %v3710_v8 = vrot.slane %v3273_v41, 4  ;;  %v3711_v37 = vrot.slane %v3276_v32, 5  ;;  %v6989_v15 = vpack.c.bf16 %v3062_v17, %v3062_v17 }
 0x2cb   : > { %v3718_v6 = vrot.slane %v3717_v48, 4  ;;  %v3297_v13 = vshrl.u32 %v6990_v24, 16  ;;  %v3300_v55 = vshll.u32 %v6990_v24, 16  ;;  %3558 = vrot.lane.b32.xlu1 %v6990_v24, %s7292_s20  ;;  %v3032_v10 = vmul.f32 0.2, %v9032_v22 }
 0x2cc   : > { %v3278_v50 = vor.u32 %v3276_v32, %v3275_v49  ;;  %v3279_v34 = vrot.slane %v3275_v49, 4  ;;  %v3712_v19 = vor.u32 %v3711_v37, %v3710_v8  ;;  %v3289_v39 = vshrl.u32 %v6989_v15, 16  ;;  %3556 = vrot.lane.b32.xlu0 %v6989_v15, %s7292_s20  ;;  %v3492_v32 = vld [vmem:[#allocation2 + $0x80] sm:$0xf] }
 0x2cd   : > { %v3858_v0 = vsel %vm7468_vm7, %v3718_v6, %v3857_v4  ;;  %v3299_v36 = vrot.slane %v3297_v13, 7  ;;  %v3723_v18 = vrot.slane %v3300_v55, 5  ;;  %v3725_v42 = vrot.slane %v3297_v13, 4 }
 0x2ce   : > { %3859 = vst [vmem:[#allocation2 + $0x7c] sm:$0xf] %v3858_v0  ;;  %v3287_v52 = vsel %vm8026_vm13, %v3279_v34, %v3286_v38  ;;  %v3489_v46 = vsel %vm8040_vm14, %v3278_v50, %v3488_v20  ;;  %v3713_v23 = vrot.slane %v3712_v19, 4  ;;  %v3291_v33 = vrot.slane %v3289_v39, 7 }
 0x2cf   : > { %3490 = vst [vmem:[#allocation2 + $0x70] sm:$0xf] %v3489_v46  ;;  %3491 = vst.msk [vmem:[#allocation2 + $0x78] sm:$0xf] %vm807_vm5, %v3287_v52  ;;  %v3302_v5 = vor.u32 %v3300_v55, %v3299_v36  ;;  %v3726_v51 = vor.u32 %v3725_v42, %v3723_v18  ;;  %v3292_v21 = vshll.u32 %v6989_v15, 16  ;;  %v3719_v43 = vrot.slane %v3289_v39, 4 }
 0x2d0   : > { %v3715_v58 = vsel %vm7456_vm6, %v3713_v23, %v3714_v27  ;;  %v3295_v3 = vrot.slane %v3291_v33, 4  ;;  %v3065_v27 = vsel %vm3001_vm0, %v9038_v57, %v3033_v44  ;;  %vm3003_vm4 = vcmp.gt.f32.partialorder %v9044_v9, 0.0  ;;  %v3865_v46 = vld [vmem:[#allocation2 + $0x9c] sm:$0xf] }
 0x2d1   : > { %3856 = vst.msk [vmem:[#allocation2 + $0x74] sm:$0xf] %vm807_vm5, %v3715_v58  ;;  %v3727_v31 = vrot.slane %v3726_v51, 4  ;;  %v3294_v12 = vor.u32 %v3292_v21, %v3291_v33  ;;  %v3720_v56 = vrot.slane %v3292_v21, 5  ;;  %v3035_v28 = vmul.f32 0.2, %v9044_v9 }
 0x2d2   : > { %v3303_v41 = vsel %vm8026_vm13, %v3295_v3, %v3302_v5  ;;  %v6992_v17 = vpack.c.bf16 %v3065_v27, %v3065_v27  ;;  %v3064_v57 = vsel %vm3000_vm1, %v9032_v22, %v3032_v10  ;;  %vm3002_vm8 = vcmp.gt.f32.partialorder %v9041_v59, 0.0  ;;  %v3496_v10 = vld [vmem:[#allocation2 + $0x90] sm:$0xf] }
 0x2d3   : > { %v3862_v38 = vsel %vm7468_vm7, %v3727_v31, %v3861_v2  ;;  %v3493_v48 = vsel %vm8040_vm14, %v3294_v12, %v3492_v32  ;;  %v3721_v24 = vor.u32 %v3720_v56, %v3719_v43  ;;  %3495 = vst.msk [vmem:[#allocation2 + $0x88] sm:$0xf] %vm807_vm5, %v3303_v41  ;;  %v3067_v4 = vsel %vm3003_vm4, %v9044_v9, %v3035_v28 }
 0x2d4   : > { %3863 = vst [vmem:[#allocation2 + $0x8c] sm:$0xf] %v3862_v38  ;;  %3494 = vst [vmem:[#allocation2 + $0x80] sm:$0xf] %v3493_v48  ;;  %v3034_v49 = vmul.f32 0.2, %v9041_v59  ;;  %3562 = vrot.lane.b32.xlu1 %v6992_v17, %s7292_s20  ;;  %v6991_v6 = vpack.c.bf16 %v3064_v57, %v3064_v57  ;;  %v6994_v13 = vpack.c.bf16 %v3067_v4, %v3067_v4 }
 0x2d5   : > { %v3722_v8 = vrot.slane %v3721_v24, 4  ;;  %v3313_v37 = vshrl.u32 %v6992_v17, 16  ;;  %v3316_v15 = vshll.u32 %v6992_v17, 16  ;;  %vm3005_vm9 = vcmp.gt.f32.partialorder %v9053_v35, 0.0  ;;  %v3869_v48 = vld [vmem:[#allocation2 + $0xac] sm:$0xf] }
 0x2d6   : > { %v3066_v55 = vsel %vm3002_vm8, %v9041_v59, %v3034_v49  ;;  %v3037_v50 = vmul.f32 0.2, %v9053_v35  ;;  %3560 = vrot.lane.b32.xlu0 %v6991_v6, %s7292_s20  ;;  %v3305_v39 = vshrl.u32 %v6991_v6, 16  ;;  %v3308_v0 = vshll.u32 %v6991_v6, 16 }
 0x2d7   : > { %v3724_v22 = vsel %vm7456_vm6, %v3722_v8, %v3723_v18  ;;  %v3315_v9 = vrot.slane %v3313_v37, 7  ;;  %v3732_v34 = vrot.slane %v3316_v15, 5  ;;  %v3734_v19 = vrot.slane %v3313_v37, 4  ;;  %v3500_v37 = vld [vmem:[#allocation2 + $0xa0] sm:$0xf] }
 0x2d8   : > { %3860 = vst.msk [vmem:[#allocation2 + $0x84] sm:$0xf] %vm807_vm5, %v3724_v22  ;;  %v3329_v20 = vshrl.u32 %v6994_v13, 16  ;;  %v3332_v36 = vshll.u32 %v6994_v13, 16  ;;  %3566 = vrot.lane.b32.xlu1 %v6994_v13, %s7292_s20  ;;  %v6993_v52 = vpack.c.bf16 %v3066_v55, %v3066_v55  ;;  %v3069_v18 = vsel %vm3005_vm9, %v9053_v35, %v3037_v50 }
 0x2d9   : > { %v3318_v42 = vor.u32 %v3316_v15, %v3315_v9  ;;  %v3735_v59 = vor.u32 %v3734_v19, %v3732_v34  ;;  %v3307_v23 = vrot.slane %v3305_v39, 7  ;;  %v3728_v33 = vrot.slane %v3305_v39, 4 }
 0x2da   : > { %v3729_v5 = vrot.slane %v3308_v0, 5  ;;  %v3331_v51 = vrot.slane %v3329_v20, 7  ;;  %v3741_v43 = vrot.slane %v3332_v36, 5  ;;  %v3743_v58 = vrot.slane %v3329_v20, 4  ;;  %3564 = vrot.lane.b32.xlu0 %v6993_v52, %s7292_s20 }
 0x2db   : > { %v3736_v21 = vrot.slane %v3735_v59, 4  ;;  %v3321_v2 = vshrl.u32 %v6993_v52, 16  ;;  %v3310_v3 = vor.u32 %v3308_v0, %v3307_v23  ;;  %v3311_v44 = vrot.slane %v3307_v23, 4 }
 0x2dc   : > { %v3730_v31 = vor.u32 %v3729_v5, %v3728_v33  ;;  %v3334_v12 = vor.u32 %v3332_v36, %v3331_v51  ;;  %v3744_v35 = vor.u32 %v3743_v58, %v3741_v43  ;;  %v3324_v32 = vshll.u32 %v6993_v52, 16  ;;  %v3873_v58 = vld [vmem:[#allocation2 + $0xbc] sm:$0xf] }
 0x2dd   : > { %v3866_v56 = vsel %vm7468_vm7, %v3736_v21, %v3865_v46  ;;  %v3323_v41 = vrot.slane %v3321_v2, 7  ;;  %v3319_v27 = vsel %vm8026_vm13, %v3311_v44, %v3318_v42  ;;  %v3497_v28 = vsel %vm8040_vm14, %v3310_v3, %v3496_v10 }
 0x2de   : > { %3867 = vst [vmem:[#allocation2 + $0x9c] sm:$0xf] %v3866_v56  ;;  %v3731_v38 = vrot.slane %v3730_v31, 4  ;;  %v3737_v24 = vrot.slane %v3321_v2, 4  ;;  %3498 = vst [vmem:[#allocation2 + $0x90] sm:$0xf] %v3497_v28  ;;  %v6996_v15 = vpack.c.bf16 %v3069_v18, %v3069_v18 }
 0x2df   : > { %3499 = vst.msk [vmem:[#allocation2 + $0x98] sm:$0xf] %vm807_vm5, %v3319_v27  ;;  %v3745_v17 = vrot.slane %v3744_v35, 4  ;;  %v3326_v57 = vor.u32 %v3324_v32, %v3323_v41  ;;  %v3327_v4 = vrot.slane %v3323_v41, 4  ;;  %v3738_v49 = vrot.slane %v3324_v32, 5 }
 0x2e0   : > { %v3733_v8 = vsel %vm7456_vm6, %v3731_v38, %v3732_v34  ;;  %vm3004_vm10 = vcmp.gt.f32.partialorder %v9047_v63, 0.0  ;;  %v3036_v6 = vmul.f32 0.2, %v9047_v63  ;;  %v3345_v9 = vshrl.u32 %v6996_v15, 16  ;;  %3570 = vrot.lane.b32.xlu1 %v6996_v15, %s7292_s20  ;;  %v3504_v32 = vld [vmem:[#allocation2 + $0xb0] sm:$0xf] }
 0x2e1   : > { %3864 = vst.msk [vmem:[#allocation2 + $0x94] sm:$0xf] %vm807_vm5, %v3733_v8  ;;  %v3870_v13 = vsel %vm7468_vm7, %v3745_v17, %v3869_v48  ;;  %v3335_v55 = vsel %vm8026_vm13, %v3327_v4, %v3334_v12  ;;  %v3501_v50 = vsel %vm8040_vm14, %v3326_v57, %v3500_v37  ;;  %v3739_v22 = vor.u32 %v3738_v49, %v3737_v24 }
 0x2e2   : > { %3871 = vst [vmem:[#allocation2 + $0xac] sm:$0xf] %v3870_v13  ;;  %3502 = vst [vmem:[#allocation2 + $0xa0] sm:$0xf] %v3501_v50  ;;  %v3348_v34 = vshll.u32 %v6996_v15, 16  ;;  %v3068_v19 = vsel %vm3004_vm10, %v9047_v63, %v3036_v6  ;;  %vm3007_vm11 = vcmp.gt.f32.partialorder %v9059_v45, 0.0 }
 0x2e3   : > { %3503 = vst.msk [vmem:[#allocation2 + $0xa8] sm:$0xf] %vm807_vm5, %v3335_v55  ;;  %v3740_v39 = vrot.slane %v3739_v22, 4  ;;  %v6995_v0 = vpack.c.bf16 %v3068_v19, %v3068_v19  ;;  %v3039_v20 = vmul.f32 0.2, %v9059_v45  ;;  %vm3006_vm12 = vcmp.gt.f32.partialorder %v9056_v25, 0.0 }
 0x2e4   : > { %v3347_v36 = vrot.slane %v3345_v9, 7  ;;  %v3750_v42 = vrot.slane %v3348_v34, 5  ;;  %v3752_v59 = vrot.slane %v3345_v9, 4  ;;  %v3038_v52 = vmul.f32 0.2, %v9056_v25 }
 0x2e5   : > { %v3742_v18 = vsel %vm7456_vm6, %v3740_v39, %v3741_v43  ;;  %v3337_v46 = vshrl.u32 %v6995_v0, 16  ;;  %v3340_v23 = vshll.u32 %v6995_v0, 16  ;;  %3568 = vrot.lane.b32.xlu0 %v6995_v0, %s7292_s20  ;;  %v3071_v63 = vsel %vm3007_vm11, %v9059_v45, %v3039_v20  ;;  %v3877_v6 = vld [vmem:[#allocation2 + $0xcc] sm:$0xf]  ;;  %v3508_v39 = vld [vmem:[#allocation2 + $0xc0] sm:$0xf] }
 0x2e6   : > { %3868 = vst.msk [vmem:[#allocation2 + $0xa4] sm:$0xf] %vm807_vm5, %v3742_v18  ;;  %v3350_v33 = vor.u32 %v3348_v34, %v3347_v36  ;;  %v3753_v5 = vor.u32 %v3752_v59, %v3750_v42  ;;  %v6998_v51 = vpack.c.bf16 %v3071_v63, %v3071_v63  ;;  %v3070_v21 = vsel %vm3006_vm12, %v9056_v25, %v3038_v52 }
 0x2e7   : > { %v3339_v2 = vrot.slane %v3337_v46, 7  ;;  %v3746_v3 = vrot.slane %v3337_v46, 4  ;;  %v3747_v44 = vrot.slane %v3340_v23, 5  ;;  %v6997_v31 = vpack.c.bf16 %v3070_v21, %v3070_v21 }
 0x2e8   : > { %v3754_v12 = vrot.slane %v3753_v5, 4  ;;  %v3361_v43 = vshrl.u32 %v6998_v51, 16  ;;  %v3364_v56 = vshll.u32 %v6998_v51, 16  ;;  %3574 = vrot.lane.b32.xlu1 %v6998_v51, %s7292_s20  ;;  %vm3009_vm15 = vcmp.gt.f32.partialorder %v9066_v30, 0.0 }
 0x2e9   : > { %v3342_v45 = vor.u32 %v3340_v23, %v3339_v2  ;;  %v3343_v10 = vrot.slane %v3339_v2, 4  ;;  %v3748_v35 = vor.u32 %v3747_v44, %v3746_v3  ;;  %v3353_v41 = vshrl.u32 %v6997_v31, 16  ;;  %3572 = vrot.lane.b32.xlu0 %v6997_v31, %s7292_s20 }
 0x2ea   : > { %v3874_v25 = vsel %vm7468_vm7, %v3754_v12, %v3873_v58  ;;  %v3363_v27 = vrot.slane %v3361_v43, 7  ;;  %v3759_v28 = vrot.slane %v3364_v56, 5  ;;  %v3761_v38 = vrot.slane %v3361_v43, 4 }
 0x2eb   : > { %3875 = vst [vmem:[#allocation2 + $0xbc] sm:$0xf] %v3874_v25  ;;  %v3351_v48 = vsel %vm8026_vm13, %v3343_v10, %v3350_v33  ;;  %v3505_v24 = vsel %vm8040_vm14, %v3342_v45, %v3504_v32  ;;  %v3749_v17 = vrot.slane %v3748_v35, 4  ;;  %v3355_v57 = vrot.slane %v3353_v41, 7  ;;  %v3881_v35 = vld [vmem:[#allocation2 + $0xdc] sm:$0xf] }
 0x2ec   : > { %3506 = vst [vmem:[#allocation2 + $0xb0] sm:$0xf] %v3505_v24  ;;  %3507 = vst.msk [vmem:[#allocation2 + $0xb8] sm:$0xf] %vm807_vm5, %v3351_v48  ;;  %v3366_v4 = vor.u32 %v3364_v56, %v3363_v27  ;;  %v3762_v49 = vor.u32 %v3761_v38, %v3759_v28  ;;  %v3356_v8 = vshll.u32 %v6997_v31, 16  ;;  %v3755_v37 = vrot.slane %v3353_v41, 4 }
 0x2ed   : > { %v3751_v15 = vsel %vm7456_vm6, %v3749_v17, %v3750_v42  ;;  %v3359_v13 = vrot.slane %v3355_v57, 4  ;;  %v3041_v55 = vmul.f32 0.2, %v9066_v30  ;;  %vm3008_vm0 = vcmp.gt.f32.partialorder %v9062_v54, 0.0 }
 0x2ee   : > { %3872 = vst.msk [vmem:[#allocation2 + $0xb4] sm:$0xf] %vm807_vm5, %v3751_v15  ;;  %v3763_v50 = vrot.slane %v3762_v49, 4  ;;  %v3358_v22 = vor.u32 %v3356_v8, %v3355_v57  ;;  %v3756_v9 = vrot.slane %v3356_v8, 5  ;;  %v3040_v34 = vmul.f32 0.2, %v9062_v54 }
 0x2ef   : > { %v3367_v19 = vsel %vm8026_vm13, %v3359_v13, %v3366_v4  ;;  %v3073_v0 = vsel %vm3009_vm15, %v9066_v30, %v3041_v55  ;;  %vm3011_vm1 = vcmp.gt.f32.partialorder %v9072_v1, 0.0  ;;  %v3043_v20 = vmul.f32 0.2, %v9072_v1 }
 0x2f0   : > { %v3878_v36 = vsel %vm7468_vm7, %v3763_v50, %v3877_v6  ;;  %v3509_v42 = vsel %vm8040_vm14, %v3358_v22, %v3508_v39  ;;  %v3757_v59 = vor.u32 %v3756_v9, %v3755_v37  ;;  %3511 = vst.msk [vmem:[#allocation2 + $0xc8] sm:$0xf] %vm807_vm5, %v3367_v19  ;;  %v7000_v52 = vpack.c.bf16 %v3073_v0, %v3073_v0  ;;  %v3512_v37 = vld [vmem:[#allocation2 + $0xd0] sm:$0xf]  ;;  %v3885_v22 = vld [vmem:[#allocation2 + $0xec] sm:$0xf] }
 0x2f1   : > { %3879 = vst [vmem:[#allocation2 + $0xcc] sm:$0xf] %v3878_v36  ;;  %3510 = vst [vmem:[#allocation2 + $0xc0] sm:$0xf] %v3509_v42  ;;  %v3072_v30 = vsel %vm3008_vm0, %v9062_v54, %v3040_v34  ;;  %v3075_v18 = vsel %vm3011_vm1, %v9072_v1, %v3043_v20  ;;  %vm3010_vm4 = vcmp.gt.f32.partialorder %v9069_v26, 0.0  ;;  %vm3013_vm8 = vcmp.gt.f32.partialorder %v9079_v11, 0.0 }
 0x2f2   : > { %v3042_v46 = vmul.f32 0.2, %v9069_v26  ;;  %v3758_v23 = vrot.slane %v3757_v59, 4  ;;  %v3377_v63 = vshrl.u32 %v7000_v52, 16  ;;  %v3380_v33 = vshll.u32 %v7000_v52, 16  ;;  %3578 = vrot.lane.b32.xlu1 %v7000_v52, %s7292_s20 }
 0x2f3   : > { %v6999_v5 = vpack.c.bf16 %v3072_v30, %v3072_v30  ;;  %v7002_v51 = vpack.c.bf16 %v3075_v18, %v3075_v18  ;;  %v3045_v58 = vmul.f32 0.2, %v9079_v11  ;;  %v3516_v36 = vld [vmem:[#allocation2 + $0xe0] sm:$0xf]  ;;  %vm3012_vm9 = vcmp.gt.f32.partialorder %v9075_v16, 0.0 }
 0x2f4   : > { %v3074_v21 = vsel %vm3010_vm4, %v9069_v26, %v3042_v46  ;;  %v3760_v54 = vsel %vm7456_vm6, %v3758_v23, %v3759_v28  ;;  %v3379_v1 = vrot.slane %v3377_v63, 7  ;;  %v3768_v2 = vrot.slane %v3380_v33, 5 }
 0x2f5   : > { %v3770_v3 = vrot.slane %v3377_v63, 4  ;;  %3576 = vrot.lane.b32.xlu0 %v6999_v5, %s7292_s20  ;;  %3876 = vst.msk [vmem:[#allocation2 + $0xc4] sm:$0xf] %vm807_vm5, %v3760_v54  ;;  %v3369_v44 = vshrl.u32 %v6999_v5, 16  ;;  %v3372_v31 = vshll.u32 %v6999_v5, 16  ;;  %v3393_v12 = vshrl.u32 %v7002_v51, 16 }
 0x2f6   : > { %v3396_v43 = vshll.u32 %v7002_v51, 16  ;;  %v3382_v56 = vor.u32 %v3380_v33, %v3379_v1  ;;  %3582 = vrot.lane.b32.xlu1 %v7002_v51, %s7292_s20  ;;  %v7001_v45 = vpack.c.bf16 %v3074_v21, %v3074_v21  ;;  %v3077_v10 = vsel %vm3013_vm8, %v9079_v11, %v3045_v58 }
 0x2f7   : > { %v3771_v26 = vor.u32 %v3770_v3, %v3768_v2  ;;  %v3371_v41 = vrot.slane %v3369_v44, 7  ;;  %v3764_v25 = vrot.slane %v3369_v44, 4  ;;  %v3765_v32 = vrot.slane %v3372_v31, 5 }
 0x2f8   : > { %v3395_v27 = vrot.slane %v3393_v12, 7  ;;  %v3777_v38 = vrot.slane %v3396_v43, 5  ;;  %v3779_v48 = vrot.slane %v3393_v12, 4  ;;  %v3385_v24 = vshrl.u32 %v7001_v45, 16 }
 0x2f9   : > { %v3772_v28 = vrot.slane %v3771_v26, 4  ;;  %3580 = vrot.lane.b32.xlu0 %v7001_v45, %s7292_s20  ;;  %v3374_v17 = vor.u32 %v3372_v31, %v3371_v41  ;;  %v3375_v57 = vrot.slane %v3371_v41, 4  ;;  %v3766_v4 = vor.u32 %v3765_v32, %v3764_v25 }
 0x2fa   : > { %v3398_v49 = vor.u32 %v3396_v43, %v3395_v27  ;;  %v3780_v11 = vor.u32 %v3779_v48, %v3777_v38  ;;  %v3387_v15 = vrot.slane %v3385_v24, 7  ;;  %v3388_v6 = vshll.u32 %v7001_v45, 16  ;;  %v3889_v45 = vld [vmem:[#allocation2 + $0xfc] sm:$0xf] }
 0x2fb   : > { %v3882_v8 = vsel %vm7468_vm7, %v3772_v28, %v3881_v35  ;;  %v3383_v13 = vsel %vm8026_vm13, %v3375_v57, %v3382_v56  ;;  %v3513_v55 = vsel %vm8040_vm14, %v3374_v17, %v3512_v37  ;;  %v3767_v50 = vrot.slane %v3766_v4, 4 }
 0x2fc   : > { %3883 = vst [vmem:[#allocation2 + $0xdc] sm:$0xf] %v3882_v8  ;;  %v3773_v9 = vrot.slane %v3385_v24, 4  ;;  %3514 = vst [vmem:[#allocation2 + $0xd0] sm:$0xf] %v3513_v55  ;;  %v3781_v34 = vrot.slane %v3780_v11, 4  ;;  %v3390_v19 = vor.u32 %v3388_v6, %v3387_v15  ;;  %v7004_v42 = vpack.c.bf16 %v3077_v10, %v3077_v10 }
 0x2fd   : > { %3515 = vst.msk [vmem:[#allocation2 + $0xd8] sm:$0xf] %vm807_vm5, %v3383_v13  ;;  %v3391_v39 = vrot.slane %v3387_v15, 4  ;;  %v3774_v0 = vrot.slane %v3388_v6, 5  ;;  %v3769_v20 = vsel %vm7456_vm6, %v3767_v50, %v3768_v2  ;;  %v3044_v59 = vmul.f32 0.2, %v9075_v16 }
 0x2fe   : > { %3880 = vst.msk [vmem:[#allocation2 + $0xd4] sm:$0xf] %vm807_vm5, %v3769_v20  ;;  %v3886_v52 = vsel %vm7468_vm7, %v3781_v34, %v3885_v22  ;;  %v3517_v18 = vsel %vm8040_vm14, %v3390_v19, %v3516_v36  ;;  %v3409_v23 = vshrl.u32 %v7004_v42, 16  ;;  %v3412_v63 = vshll.u32 %v7004_v42, 16  ;;  %3586 = vrot.lane.b32.xlu1 %v7004_v42, %s7292_s20  ;;  %v3524_v36 = vld [vmem:[#allocation2 + $0x100] sm:$0xf] }
 0x2ff   : > { %v3399_v30 = vsel %vm8026_vm13, %v3391_v39, %v3398_v49  ;;  %v3775_v46 = vor.u32 %v3774_v0, %v3773_v9  ;;  %3887 = vst [vmem:[#allocation2 + $0xec] sm:$0xf] %v3886_v52  ;;  %3518 = vst [vmem:[#allocation2 + $0xe0] sm:$0xf] %v3517_v18  ;;  %v3076_v33 = vsel %vm3012_vm9, %v9075_v16, %v3044_v59  ;;  %vm3015_vm10 = vcmp.gt.f32.partialorder %v8965_v62, 0.0 }
 0x300   : > { %3519 = vst.msk [vmem:[#allocation2 + $0xe8] sm:$0xf] %vm807_vm5, %v3399_v30  ;;  %v7003_v51 = vpack.c.bf16 %v3076_v33, %v3076_v33  ;;  %v3047_v21 = vmul.f32 0.2, %v8965_v62  ;;  %vm3014_vm11 = vcmp.gt.f32.partialorder %v9082_v7, 0.0  ;;  %v3411_v58 = vrot.slane %v3409_v23, 7 }
 0x301   : > { %v3776_v5 = vrot.slane %v3775_v46, 4  ;;  %v3786_v54 = vrot.slane %v3412_v63, 5  ;;  %v3788_v1 = vrot.slane %v3409_v23, 4  ;;  %v3046_v2 = vmul.f32 0.2, %v9082_v7  ;;  %v7171_v23 = vld [vmem:[%s10686_s2 + $0xf8] sm:$0xff]  }
 0x302   : > { %v3401_v44 = vshrl.u32 %v7003_v51, 16  ;;  %v3404_v31 = vshll.u32 %v7003_v51, 16  ;;  %3584 = vrot.lane.b32.xlu0 %v7003_v51, %s7292_s20  ;;  %v3079_v16 = vsel %vm3015_vm10, %v8965_v62, %v3047_v21  ;;  %v3414_v12 = vor.u32 %v3412_v63, %v3411_v58  ;;  %v3893_v9 = vld [vmem:[#allocation2 + $0x10c] sm:$0xf]  ;;  %v7170_v33 = vld [vmem:[#allocation2 + $0x14] ss:$8 sps:$4 sm:$0xff]  }
 0x303   : > { %v3778_v3 = vsel %vm7456_vm6, %v3776_v5, %v3777_v38  ;;  %v3789_v43 = vor.u32 %v3788_v1, %v3786_v54  ;;  %v7006_v56 = vpack.c.bf16 %v3079_v16, %v3079_v16  ;;  %v3078_v26 = vsel %vm3014_vm11, %v9082_v7, %v3046_v2  ;;  %v3520_v7 = vld [vmem:[#allocation2 + $0xf0] sm:$0xf]  ;;  %6777 = vmatprep.mubr.msk.bf16.mxu1 %vm1577_vm2, %v7170_v33  ;;  %v7179_v2 = vld [vmem:[%s10686_s2 + $0xe8] sm:$0xff]   ;;  %v9484_v16 = vld [vmem:[#allocation2 + $0x34] ss:$8 sps:$4 sm:$0xff]  }
 0x304   : > { %3884 = vst.msk [vmem:[#allocation2 + $0xe4] sm:$0xf] %vm807_vm5, %v3778_v3  ;;  %v3403_v10 = vrot.slane %v3401_v44, 7  ;;  %v3782_v35 = vrot.slane %v3401_v44, 4  ;;  %v3783_v41 = vrot.slane %v3404_v31, 5  ;;  %v7005_v25 = vpack.c.bf16 %v3078_v26, %v3078_v26  ;;  %6838 = vmatprep.mubr.msk.bf16.mxu0 %vm1577_vm2, %v7170_v33  ;;  %v7176_v51 = vld [vmem:[%s10686_s2 + $0xf0] sm:$0xff]  }
 0x305   : > { %v3790_v32 = vrot.slane %v3789_v43, 4  ;;  %v3425_v27 = vshrl.u32 %v7006_v56, 16  ;;  %v3428_v28 = vshll.u32 %v7006_v56, 16  ;;  %3590 = vrot.lane.b32.xlu1 %v7006_v56, %s7292_s20  ;;  %v7187_v26 = vld [vmem:[%s10686_s2 + $0xd8] sm:$0xff]  }
 0x306   : > { %v3406_v38 = vor.u32 %v3404_v31, %v3403_v10  ;;  %v3407_v48 = vrot.slane %v3403_v10, 4  ;;  %v3784_v62 = vor.u32 %v3783_v41, %v3782_v35  ;;  %v3417_v24 = vshrl.u32 %v7005_v25, 16  ;;  %3588 = vrot.lane.b32.xlu0 %v7005_v25, %s7292_s20  ;;  %v7182_v31 = vld [vmem:[%s10686_s2 + $0xe0] sm:$0xff]   ;;  %v7190_v41 = vld [vmem:[%s10686_s2 + $0xd0] sm:$0xff]  }
 0x307   : > { %v3890_v17 = vsel %vm7468_vm7, %v3790_v32, %v3889_v45  ;;  %v3427_v57 = vrot.slane %v3425_v27, 7  ;;  %v3795_v4 = vrot.slane %v3428_v28, 5  ;;  %v3797_v49 = vrot.slane %v3425_v27, 4  ;;  %v9497_v10 = vld [vmem:[#allocation2 + $0x44] ss:$8 sps:$4 sm:$0xff]  }
 0x308   : > { %3891 = vst [vmem:[#allocation2 + $0xfc] sm:$0xf] %v3890_v17  ;;  %v3415_v8 = vsel %vm8026_vm13, %v3407_v48, %v3414_v12  ;;  %v3521_v37 = vsel %vm8040_vm14, %v3406_v38, %v3520_v7  ;;  %v3785_v11 = vrot.slane %v3784_v62, 4  ;;  %v3419_v15 = vrot.slane %v3417_v24, 7  ;;  %v7195_v48 = vld [vmem:[%s10686_s2 + $0xc8] sm:$0xff]  }
 0x309   : > { %3522 = vst [vmem:[#allocation2 + $0xf0] sm:$0xf] %v3521_v37  ;;  %3523 = vst.msk [vmem:[#allocation2 + $0xf8] sm:$0xf] %vm807_vm5, %v3415_v8  ;;  %v3430_v6 = vor.u32 %v3428_v28, %v3427_v57  ;;  %v3798_v13 = vor.u32 %v3797_v49, %v3795_v4  ;;  %v3420_v55 = vshll.u32 %v7005_v25, 16  ;;  %v3791_v50 = vrot.slane %v3417_v24, 4 }
 0x30a   : > { %v3787_v22 = vsel %vm7456_vm6, %v3785_v11, %v3786_v54  ;;  %v3423_v34 = vrot.slane %v3419_v15, 4  ;;  %v9521_v62 = vld [vmem:[#allocation2 + $0x54] ss:$8 sps:$4 sm:$0xff]   ;;  %v7201_v24 = vld [vmem:[%s10686_s2 + $0xc0] sm:$0xff]  }
 0x30b   : > { %3888 = vst.msk [vmem:[#allocation2 + $0xf4] sm:$0xf] %vm807_vm5, %v3787_v22  ;;  %v3799_v19 = vrot.slane %v3798_v13, 4  ;;  %v3422_v39 = vor.u32 %v3420_v55, %v3419_v15  ;;  %v3792_v0 = vrot.slane %v3420_v55, 5  ;;  %v7205_v49 = vld [vmem:[%s10686_s2 + $0x118] sm:$0xff]   ;;  %v7210_v15 = vld [vmem:[%s10686_s2 + $0x110] sm:$0xff]  }
 0x30c   : > { %v3431_v20 = vsel %vm8026_vm13, %v3423_v34, %v3430_v6  ;;  %v9537_v37 = vld [vmem:[#allocation2 + $0x64] ss:$8 sps:$4 sm:$0xff]   ;;  %v9611_v33 = vld [vmem:[#allocation2 + $0xb4] ss:$8 sps:$4 sm:$0xff]  }
 0x30d   : > { %v3894_v42 = vsel %vm7468_vm7, %v3799_v19, %v3893_v9  ;;  %v3525_v59 = vsel %vm8040_vm14, %v3422_v39, %v3524_v36  ;;  %v3793_v52 = vor.u32 %v3792_v0, %v3791_v50  ;;  %3527 = vst.msk [vmem:[#allocation2 + $0x108] sm:$0xf] %vm807_vm5, %v3431_v20  ;;  %v7216_v22 = vld [vmem:[%s10686_s2 + $0x108] sm:$0xff]   ;;  %v9558_v9 = vld [vmem:[#allocation2 + $0x74] ss:$8 sps:$4 sm:$0xff]   ;;  %v7220_v34 = vld [vmem:[%s10686_s2 + $0x100] sm:$0xff]  }
 0x30e   : > { %3895 = vst [vmem:[#allocation2 + $0x10c] sm:$0xf] %v3894_v42  ;;  %3526 = vst [vmem:[#allocation2 + $0x100] sm:$0xf] %v3525_v59  ;;  %v3531_v18 = vpop.permute.xlu1 %3530  ;;  %v9575_v42 = vld [vmem:[#allocation2 + $0x84] ss:$8 sps:$4 sm:$0xff]  }
 0x30f   : > { %v3794_v30 = vrot.slane %v3793_v52, 4  ;;  %3625 = vst.msk [vmem:[#allocation2 + $0x18] sm:$0xf] %vm971_vm3, %v3531_v18  ;;  %v3529_v46 = vpop.permute.xlu0 %3528 }
 0x310   : > { %3624 = vst.msk [vmem:[#allocation2 + $0x10] sm:$0xf] %vm971_vm3, %v3529_v46 }
 0x311   : > { %v3796_v40 = vsel %vm7456_vm6, %v3794_v30, %v3795_v4  ;;  %v9587_v30 = vld [vmem:[#allocation2 + $0x94] ss:$8 sps:$4 sm:$0xff]  }
 0x312   : > { %3892 = vst.msk [vmem:[#allocation2 + $0x104] sm:$0xf] %vm807_vm5, %v3796_v40  ;;  %v3535_v14 = vpop.permute.xlu1 %3534 }
 0x313   : > { %3627 = vst.msk [vmem:[#allocation2 + $0x28] sm:$0xf] %vm971_vm3, %v3535_v14  ;;  %v3533_v61 = vpop.permute.xlu0 %3532 }
 0x314   : > { %3626 = vst.msk [vmem:[#allocation2 + $0x20] sm:$0xf] %vm971_vm3, %v3533_v61  ;;  %v9599_v61 = vld [vmem:[#allocation2 + $0xa4] ss:$8 sps:$4 sm:$0xff]  }
 0x317   : > { %v7168_v63 = vld [vmem:[#allocation2 + $0x10] ss:$8 sps:$4 sm:$0xff]  }
 0x318   : > { %4306 = vmatmul.mubr.bf16.vlgmr.msra.gmra.mxu1 %v7168_v63  ;;  %4739 = vmatmul.mubr.bf16.gmra.mxu0 %v7168_v63 }
 0x319   : > { %v3539_v5 = vpop.permute.xlu1 %3538  ;;  %5181 = vmatpush1.bf16.msra.mxu1 %v7171_v23  ;;  %6778 = vmatprep.mubr.msk.bf16.mxu1 %vm1577_vm2, %v9460_v60 }
 0x31a   : > { %3629 = vst.msk [vmem:[#allocation2 + $0x38] sm:$0xf] %vm971_vm3, %v3539_v5  ;;  %5182 = vmatprep.subr.bf16.mxu1 %v10758_v47  ;;  %v3955_v54 = vld [vmem:[#allocation2 + $0x28] sm:$0xff]  ;;  %6839 = vmatprep.mubr.msk.bf16.mxu0 %vm1577_vm2, %v9460_v60 }
 0x31b   : > { %v3954_v58 = vld [vmem:[#allocation2 + $0x20] sm:$0xff] }
 0x31c   : > { %v3537_v21 = vpop.permute.xlu0 %3536  ;;  %v9475_v44 = vcombine.low %v3954_v58, %v3955_v54 }
 0x31d   : > { %3628 = vst.msk [vmem:[#allocation2 + $0x30] sm:$0xf] %vm971_vm3, %v3537_v21  ;;  %5183 = vmatpush1.bf16.msra.mxu1 %v7176_v51 }
 0x31e   : > { %5184 = vmatprep.subr.bf16.mxu1 %v10758_v47 }
 0x31f   : > { %v3543_v1 = vpop.permute.xlu1 %3542 }
 0x320   : > { %3631 = vst.msk [vmem:[#allocation2 + $0x48] sm:$0xf] %vm971_vm3, %v3543_v1  ;;  %4314 = vmatmul.mubr.bf16.gmra.mxu1 %v9475_v44  ;;  %4747 = vmatmul.mubr.bf16.gmra.mxu0 %v9475_v44  ;;  %v9624_v1 = vld [vmem:[#allocation2 + $0xc4] ss:$8 sps:$4 sm:$0xff]  }
 0x321   : > { %v3541_v3 = vpop.permute.xlu0 %3540  ;;  %5185 = vmatpush1.bf16.msra.mxu1 %v7179_v2  ;;  %v3957_v43 = vld [vmem:[#allocation2 + $0x38] sm:$0xff]  ;;  %6779 = vmatprep.mubr.msk.bf16.mxu1 %vm1577_vm2, %v9484_v16 }
 0x322   : > { %3630 = vst.msk [vmem:[#allocation2 + $0x40] sm:$0xf] %vm971_vm3, %v3541_v3  ;;  %5186 = vmatprep.subr.bf16.mxu1 %v10758_v47  ;;  %6840 = vmatprep.mubr.msk.bf16.mxu0 %vm1577_vm2, %v9484_v16 }
 0x324   : > { %v3956_v12 = vld [vmem:[#allocation2 + $0x30] sm:$0xff] }
 0x325   : > { %5187 = vmatpush1.bf16.msra.mxu1 %v7182_v31  ;;  %v9491_v56 = vcombine.low %v3956_v12, %v3957_v43  ;;  %v9636_v31 = vld [vmem:[#allocation2 + $0xd4] ss:$8 sps:$4 sm:$0xff]  }
 0x326   : > { %5188 = vmatprep.subr.bf16.mxu1 %v10758_v47 }
 0x327   : > { %v3959_v27 = vld [vmem:[#allocation2 + $0x48] sm:$0xff] }
 0x328   : > { %4322 = vmatmul.mubr.bf16.gmra.mxu1 %v9491_v56  ;;  %4755 = vmatmul.mubr.bf16.gmra.mxu0 %v9491_v56 }
 0x329   : > { %6780 = vmatprep.mubr.msk.bf16.mxu1 %vm1577_vm2, %v9497_v10  ;;  %6841 = vmatprep.mubr.msk.bf16.mxu0 %vm1577_vm2, %v9497_v10  ;;  %v3958_v32 = vld [vmem:[#allocation2 + $0x40] sm:$0xff] }
 0x32a   : > { %v3547_v45 = vpop.permute.xlu1 %3546  ;;  %5189 = vmatpush1.bf16.msra.mxu1 %v7187_v26  ;;  %v9513_v38 = vcombine.low %v3958_v32, %v3959_v27 }
 0x32b   : > { %3633 = vst.msk [vmem:[#allocation2 + $0x58] sm:$0xf] %vm971_vm3, %v3547_v45  ;;  %v3545_v35 = vpop.permute.xlu0 %3544  ;;  %5190 = vmatprep.subr.bf16.mxu1 %v10758_v47 }
 0x32c   : > { %3632 = vst.msk [vmem:[#allocation2 + $0x50] sm:$0xf] %vm971_vm3, %v3545_v35  ;;  %v9649_v35 = vld [vmem:[#allocation2 + $0xe4] ss:$8 sps:$4 sm:$0xff]  }
 0x32e   : > { %v3551_v25 = vpop.permute.xlu1 %3550  ;;  %5191 = vmatpush1.bf16.msra.mxu1 %v7190_v41 }
 0x32f   : > { %3635 = vst.msk [vmem:[#allocation2 + $0x68] sm:$0xf] %vm971_vm3, %v3551_v25  ;;  %v3549_v28 = vpop.permute.xlu0 %3548  ;;  %5192 = vmatprep.subr.bf16.mxu1 %v10758_v47  ;;  %v9659_v25 = vld [vmem:[#allocation2 + $0xf4] ss:$8 sps:$4 sm:$0xff]  }
 0x330   : > { %3634 = vst.msk [vmem:[#allocation2 + $0x60] sm:$0xf] %vm971_vm3, %v3549_v28  ;;  %4330 = vmatmul.mubr.bf16.gmra.mxu1 %v9513_v38  ;;  %4763 = vmatmul.mubr.bf16.gmra.mxu0 %v9513_v38 }
 0x331   : > { %6781 = vmatprep.mubr.msk.bf16.mxu1 %vm1577_vm2, %v9521_v62  ;;  %6842 = vmatprep.mubr.msk.bf16.mxu0 %vm1577_vm2, %v9521_v62 }
 0x332   : > { %5193 = vmatpush1.bf16.msra.mxu1 %v7195_v48  ;;  %v3961_v7 = vld [vmem:[#allocation2 + $0x58] sm:$0xff] }
 0x333   : > { %v3960_v17 = vld [vmem:[#allocation2 + $0x50] sm:$0xff]  ;;  %5194 = vmatprep.subr.bf16.mxu1 %v10758_v47 }
 0x334   : > { %v9532_v4 = vcombine.low %v3960_v17, %v3961_v7 }
 0x335   : > { %v3555_v57 = vpop.permute.xlu1 %3554 }
 0x336   : > { %3637 = vst.msk [vmem:[#allocation2 + $0x78] sm:$0xf] %vm971_vm3, %v3555_v57  ;;  %5195 = vmatpush1.bf16.msra.mxu1 %v7201_v24  ;;  %v3963_v55 = vld [vmem:[#allocation2 + $0x68] sm:$0xff] }
 0x337   : > { %5204 = vmatprep.subr.bf16.mxu1 %v10758_v47  ;;  %v3962_v13 = vld [vmem:[#allocation2 + $0x60] sm:$0xff] }
 0x338   : > { %4338 = vmatmul.mubr.bf16.gmra.mxu1 %v9532_v4  ;;  %4771 = vmatmul.mubr.bf16.gmra.mxu0 %v9532_v4  ;;  %v9553_v50 = vcombine.low %v3962_v13, %v3963_v55  ;;  %v9673_v24 = vld [vmem:[#allocation2 + $0x104] ss:$8 sps:$4 sm:$0xff]  }
 0x339   : > { %6782 = vmatprep.mubr.msk.bf16.mxu1 %vm1577_vm2, %v9537_v37  ;;  %6843 = vmatprep.mubr.msk.bf16.mxu0 %vm1577_vm2, %v9537_v37 }
 0x33a   : > { %v3553_v8 = vpop.permute.xlu0 %3552  ;;  %5205 = vmatpush2.bf16.msra.mxu1 %v7205_v49 }
 0x33b   : > { %3636 = vst.msk [vmem:[#allocation2 + $0x70] sm:$0xf] %vm971_vm3, %v3553_v8  ;;  %5206 = vmatprep.subr.bf16.mxu1 %v10758_v47 }
 0x33d   : > { %v3559_v11 = vpop.permute.xlu1 %3558  ;;  %v3965_v39 = vld [vmem:[#allocation2 + $0x78] sm:$0xff] }
 0x33e   : > { %3639 = vst.msk [vmem:[#allocation2 + $0x88] sm:$0xf] %vm971_vm3, %v3559_v11  ;;  %v3557_v6 = vpop.permute.xlu0 %3556  ;;  %5207 = vmatpush2.bf16.msra.mxu1 %v7210_v15 }
 0x33f   : > { %3638 = vst.msk [vmem:[#allocation2 + $0x80] sm:$0xf] %vm971_vm3, %v3557_v6  ;;  %5208 = vmatprep.subr.bf16.mxu1 %v10758_v47 }
 0x340   : > { %4346 = vmatmul.mubr.bf16.gmra.mxu1 %v9553_v50  ;;  %4779 = vmatmul.mubr.bf16.gmra.mxu0 %v9553_v50 }
 0x341   : > { %6783 = vmatprep.mubr.msk.bf16.mxu1 %vm1577_vm2, %v9558_v9  ;;  %6844 = vmatprep.mubr.msk.bf16.mxu0 %vm1577_vm2, %v9558_v9 }
 0x342   : > { %5209 = vmatpush2.bf16.msra.mxu1 %v7216_v22  ;;  %v3964_v19 = vld [vmem:[#allocation2 + $0x70] sm:$0xff] }
 0x343   : > { %5210 = vmatprep.subr.bf16.mxu1 %v10758_v47  ;;  %v9572_v36 = vcombine.low %v3964_v19, %v3965_v39 }
 0x346   : > { %v3563_v0 = vpop.permute.xlu1 %3562  ;;  %5211 = vmatpush2.bf16.msra.mxu1 %v7220_v34  ;;  %v9585_v52 = vld [vmem:[#allocation2 + $0x80] ss:$8 sps:$4 sm:$0xff]  }
 0x347   : > { %3641 = vst.msk [vmem:[#allocation2 + $0x98] sm:$0xf] %vm971_vm3, %v3563_v0 }
 0x348   : > { %v3561_v20 = vpop.permute.xlu0 %3560  ;;  %4354 = vmatmul.mubr.bf16.gmra.mxu1 %v9572_v36  ;;  %4787 = vmatmul.mubr.bf16.gmra.mxu0 %v9572_v36 }
 0x349   : > { %3640 = vst.msk [vmem:[#allocation2 + $0x90] sm:$0xf] %vm971_vm3, %v3561_v20  ;;  %6784 = vmatprep.mubr.msk.bf16.mxu1 %vm1577_vm2, %v9575_v42  ;;  %6845 = vmatprep.mubr.msk.bf16.mxu0 %vm1577_vm2, %v9575_v42 }
 0x34a   : > { %v3567_v59 = vpop.permute.xlu1 %3566 }
 0x34b   : > { %3643 = vst.msk [vmem:[#allocation2 + $0xa8] sm:$0xf] %vm971_vm3, %v3567_v59 }
 0x34c   : > { %v3565_v47 = vpop.permute.xlu0 %3564 }
 0x34d   : > { %3642 = vst.msk [vmem:[#allocation2 + $0xa0] sm:$0xf] %vm971_vm3, %v3565_v47 }
 0x350   : > { %4362 = vmatmul.mubr.bf16.gmra.mxu1 %v9585_v52  ;;  %4795 = vmatmul.mubr.bf16.gmra.mxu0 %v9585_v52  ;;  %v9597_v40 = vld [vmem:[#allocation2 + $0x90] ss:$8 sps:$4 sm:$0xff]  }
 0x351   : > { %6785 = vmatprep.mubr.msk.bf16.mxu1 %vm1577_vm2, %v9587_v30  ;;  %6846 = vmatprep.mubr.msk.bf16.mxu0 %vm1577_vm2, %v9587_v30 }
 0x352   : > { %v3571_v18 = vpop.permute.xlu1 %3570 }
 0x353   : > { %3645 = vst.msk [vmem:[#allocation2 + $0xb8] sm:$0xf] %vm971_vm3, %v3571_v18 }
 0x354   : > { %v9609_v63 = vld [vmem:[#allocation2 + $0xa0] ss:$8 sps:$4 sm:$0xff]  }
 0x357   : > { %v3569_v46 = vpop.permute.xlu0 %3568 }
 0x358   : > { %3644 = vst.msk [vmem:[#allocation2 + $0xb0] sm:$0xf] %vm971_vm3, %v3569_v46  ;;  %4370 = vmatmul.mubr.bf16.gmra.mxu1 %v9597_v40  ;;  %4803 = vmatmul.mubr.bf16.gmra.mxu0 %v9597_v40 }
 0x359   : > { %6786 = vmatprep.mubr.msk.bf16.mxu1 %vm1577_vm2, %v9599_v61  ;;  %6847 = vmatprep.mubr.msk.bf16.mxu0 %vm1577_vm2, %v9599_v61 }
 0x35a   : > { %v3575_v14 = vpop.permute.xlu1 %3574 }
 0x35b   : > { %3647 = vst.msk [vmem:[#allocation2 + $0xc8] sm:$0xf] %vm971_vm3, %v3575_v14  ;;  %v3573_v23 = vpop.permute.xlu0 %3572 }
 0x35c   : > { %3646 = vst.msk [vmem:[#allocation2 + $0xc0] sm:$0xf] %vm971_vm3, %v3573_v23 }
 0x35f   : > { %v9622_v58 = vld [vmem:[#allocation2 + $0xb0] ss:$8 sps:$4 sm:$0xff]  }
 0x360   : > { %4378 = vmatmul.mubr.bf16.gmra.mxu1 %v9609_v63  ;;  %4811 = vmatmul.mubr.bf16.gmra.mxu0 %v9609_v63 }
 0x361   : > { %6787 = vmatprep.mubr.msk.bf16.mxu1 %vm1577_vm2, %v9611_v33  ;;  %6848 = vmatprep.mubr.msk.bf16.mxu0 %vm1577_vm2, %v9611_v33 }
 0x363   : > { %v9633_v3 = vld [vmem:[#allocation2 + $0xc0] ss:$8 sps:$4 sm:$0xff]  }
 0x364   : > { %v3579_v5 = vpop.permute.xlu1 %3578 }
 0x365   : > { %3649 = vst.msk [vmem:[#allocation2 + $0xd8] sm:$0xf] %vm971_vm3, %v3579_v5 }
 0x367   : > { %v3577_v51 = vpop.permute.xlu0 %3576 }
 0x368   : > { %3648 = vst.msk [vmem:[#allocation2 + $0xd0] sm:$0xf] %vm971_vm3, %v3577_v51  ;;  %v3583_v21 = vpop.permute.xlu1 %3582  ;;  %4386 = vmatmul.mubr.bf16.gmra.mxu1 %v9622_v58  ;;  %4819 = vmatmul.mubr.bf16.gmra.mxu0 %v9622_v58 }
 0x369   : > { %3651 = vst.msk [vmem:[#allocation2 + $0xe8] sm:$0xf] %vm971_vm3, %v3583_v21  ;;  %6788 = vmatprep.mubr.msk.bf16.mxu1 %vm1577_vm2, %v9624_v1  ;;  %6849 = vmatprep.mubr.msk.bf16.mxu0 %vm1577_vm2, %v9624_v1 }
 0x36b   : > { %v3581_v54 = vpop.permute.xlu0 %3580 }
 0x36c   : > { %3650 = vst.msk [vmem:[#allocation2 + $0xe0] sm:$0xf] %vm971_vm3, %v3581_v54 }
 0x36f   : > { %v9647_v45 = vld [vmem:[#allocation2 + $0xd0] ss:$8 sps:$4 sm:$0xff]  }
 0x370   : > { %v3587_v2 = vpop.permute.xlu1 %3586  ;;  %4394 = vmatmul.mubr.bf16.gmra.mxu1 %v9633_v3  ;;  %4827 = vmatmul.mubr.bf16.gmra.mxu0 %v9633_v3 }
 0x371   : > { %3653 = vst.msk [vmem:[#allocation2 + $0xf8] sm:$0xf] %vm971_vm3, %v3587_v2  ;;  %6789 = vmatprep.mubr.msk.bf16.mxu1 %vm1577_vm2, %v9636_v31  ;;  %6850 = vmatprep.mubr.msk.bf16.mxu0 %vm1577_vm2, %v9636_v31 }
 0x373   : > { %v9657_v41 = vld [vmem:[#allocation2 + $0xe0] ss:$8 sps:$4 sm:$0xff]  }
 0x374   : > { %v3585_v12 = vpop.permute.xlu0 %3584 }
 0x375   : > { %3652 = vst.msk [vmem:[#allocation2 + $0xf0] sm:$0xf] %vm971_vm3, %v3585_v12 }
 0x377   : > { %v3591_v43 = vpop.permute.xlu1 %3590 }
 0x378   : > { %3655 = vst.msk [vmem:[#allocation2 + $0x108] sm:$0xf] %vm971_vm3, %v3591_v43  ;;  %v3589_v26 = vpop.permute.xlu0 %3588  ;;  %4402 = vmatmul.mubr.bf16.gmra.mxu1 %v9647_v45  ;;  %4835 = vmatmul.mubr.bf16.gmra.mxu0 %v9647_v45 }
 0x379   : > { %3654 = vst.msk [vmem:[#allocation2 + $0x100] sm:$0xf] %vm971_vm3, %v3589_v26  ;;  %6790 = vmatprep.mubr.msk.bf16.mxu1 %vm1577_vm2, %v9649_v35  ;;  %6851 = vmatprep.mubr.msk.bf16.mxu0 %vm1577_vm2, %v9649_v35 }
 0x37c   : > { %v9671_v48 = vld [vmem:[#allocation2 + $0xf0] ss:$8 sps:$4 sm:$0xff]  }
 0x37e   : > { %v9667_v32 = vpop.f32.mrf.mxu0 }
 0x380   : > { %4410 = vmatmul.mubr.bf16.gmra.mxu1 %v9657_v41  ;;  %4843 = vmatmul.mubr.bf16.gmra.mxu0 %v9657_v41  ;;  %v4734_v27 = vpop.f32.mrf.mxu0  ;;  %v9679_v7 = vld [vmem:[#allocation2 + $0x100] ss:$8 sps:$4 sm:$0xff]  }
 0x381   : > { %6791 = vmatprep.mubr.msk.bf16.mxu1 %vm1577_vm2, %v9659_v25  ;;  %6852 = vmatprep.mubr.msk.bf16.mxu0 %vm1577_vm2, %v9659_v25 }
 0x382   : > { %v9669_v28 = vpop.f32.mrf.mxu0 }
 0x384   : > { %v4737_v17 = vpop.f32.mrf.mxu0 }
 0x385   : > { %v7222_v17 = vld [vmem:[#allocation2 + $0x114] ss:$8 sps:$4 sm:$0xff]  }
 0x388   : > { %4418 = vmatmul.mubr.bf16.gmra.mxu1 %v9671_v48  ;;  %4851 = vmatmul.mubr.bf16.gmra.mxu0 %v9671_v48 }
 0x389   : > { %6792 = vmatprep.mubr.msk.bf16.mxu1 %vm1577_vm2, %v9673_v24 }
 0x390   : > { %4426 = vmatmul.mubr.bf16.gmra.mxu1 %v9679_v7 }
 0x391   : > { %6921 = vmatprep.mubr.msk.bf16.mxu1 %vm1577_vm2, %v9460_v60 }
 0x398   : > { %5213 = vmatmul.mubr.bf16.vlgmr.msra.gmra.mxu1 %v9475_v44 }
 0x399   : > { %6922 = vmatprep.mubr.msk.bf16.mxu1 %vm1577_vm2, %v9484_v16 }
 0x3a0   : > { %5221 = vmatmul.mubr.bf16.gmra.mxu1 %v9491_v56 }
 0x3a1   : > { %6923 = vmatprep.mubr.msk.bf16.mxu1 %vm1577_vm2, %v9497_v10 }
 0x3a8   : > { %5229 = vmatmul.mubr.bf16.gmra.mxu1 %v9513_v38 }
 0x3a9   : > { %6924 = vmatprep.mubr.msk.bf16.mxu1 %vm1577_vm2, %v9521_v62 }
 0x3b0   : > { %5237 = vmatmul.mubr.bf16.gmra.mxu1 %v9532_v4 }
 0x3b1   : > { %6925 = vmatprep.mubr.msk.bf16.mxu1 %vm1577_vm2, %v9537_v37 }
 0x3b8   : > { %5245 = vmatmul.mubr.bf16.gmra.mxu1 %v9553_v50 }
 0x3b9   : > { %6926 = vmatprep.mubr.msk.bf16.mxu1 %vm1577_vm2, %v9558_v9 }
 0x3c0   : > { %5253 = vmatmul.mubr.bf16.gmra.mxu1 %v9572_v36 }
 0x3c1   : > { %6927 = vmatprep.mubr.msk.bf16.mxu1 %vm1577_vm2, %v9575_v42 }
 0x3c8   : > { %5261 = vmatmul.mubr.bf16.gmra.mxu1 %v9585_v52 }
 0x3c9   : > { %6928 = vmatprep.mubr.msk.bf16.mxu1 %vm1577_vm2, %v9587_v30 }
 0x3d0   : > { %5269 = vmatmul.mubr.bf16.gmra.mxu1 %v9597_v40 }
 0x3d1   : > { %6929 = vmatprep.mubr.msk.bf16.mxu1 %vm1577_vm2, %v9599_v61 }
 0x3d8   : > { %v9708_v60 = vpop.f32.mrf.mxu1  ;;  %v4740_v44 = vpop.f32.mrf.mxu0  ;;  %5277 = vmatmul.mubr.bf16.gmra.mxu1 %v9609_v63 }
 0x3d9   : > { %6930 = vmatprep.mubr.msk.bf16.mxu1 %vm1577_vm2, %v9611_v33 }
 0x3da   : > { %v4309_v16 = vpop.f32.mrf.mxu1  ;;  %v4742_v56 = vpop.f32.mrf.mxu0 }
 0x3dc   : > { %v9713_v10 = vpop.f32.mrf.mxu1  ;;  %v4743_v38 = vpop.f32.mrf.mxu0 }
 0x3de   : > { %v4312_v62 = vpop.f32.mrf.mxu1  ;;  %v4745_v57 = vpop.f32.mrf.mxu0 }
 0x3e0   : > { %v4315_v4 = vpop.f32.mrf.mxu1  ;;  %v4748_v49 = vpop.f32.mrf.mxu0  ;;  %5285 = vmatmul.mubr.bf16.gmra.mxu1 %v9622_v58 }
 0x3e1   : > { %v9716_v8 = vadd.f32 %v4740_v44, %v4315_v4  ;;  %6931 = vmatprep.mubr.msk.bf16.mxu1 %vm1577_vm2, %v9624_v1 }
 0x3e2   : > { %v4317_v37 = vpop.f32.mrf.mxu1  ;;  %v4750_v11 = vpop.f32.mrf.mxu0 }
 0x3e4   : > { %v4318_v15 = vpop.f32.mrf.mxu1  ;;  %v4751_v6 = vpop.f32.mrf.mxu0 }
 0x3e5   : > { %v9720_v13 = vadd.f32 %v4743_v38, %v4318_v15 }
 0x3e6   : > { %v4320_v55 = vpop.f32.mrf.mxu1  ;;  %v4753_v50 = vpop.f32.mrf.mxu0 }
 0x3e8   : > { %v4323_v22 = vpop.f32.mrf.mxu1  ;;  %v4756_v9 = vpop.f32.mrf.mxu0  ;;  %5293 = vmatmul.mubr.bf16.gmra.mxu1 %v9633_v3 }
 0x3e9   : > { %v9723_v34 = vadd.f32 %v4748_v49, %v4323_v22  ;;  %6932 = vmatprep.mubr.msk.bf16.mxu1 %vm1577_vm2, %v9636_v31  ;;  %v7224_v49 = vld [vmem:[#allocation2 + $0x110] ss:$8 sps:$4 sm:$0xff]  }
 0x3ea   : > { %v4325_v19 = vpop.f32.mrf.mxu1  ;;  %v4758_v39 = vpop.f32.mrf.mxu0 }
 0x3ec   : > { %v4326_v0 = vpop.f32.mrf.mxu1  ;;  %v4759_v20 = vpop.f32.mrf.mxu0 }
 0x3ed   : > { %v9727_v36 = vadd.f32 %v4751_v6, %v4326_v0 }
 0x3ee   : > { %v4328_v42 = vpop.f32.mrf.mxu1  ;;  %v4761_v59 = vpop.f32.mrf.mxu0 }
 0x3f0   : > { %v4331_v47 = vpop.f32.mrf.mxu1  ;;  %v4764_v52 = vpop.f32.mrf.mxu0  ;;  %5301 = vmatmul.mubr.bf16.gmra.mxu1 %v9647_v45 }
 0x3f1   : > { %v9730_v30 = vadd.f32 %v4756_v9, %v4331_v47  ;;  %6933 = vmatprep.mubr.msk.bf16.mxu1 %vm1577_vm2, %v9649_v35 }
 0x3f2   : > { %v4333_v18 = vpop.f32.mrf.mxu1  ;;  %v4766_v46 = vpop.f32.mrf.mxu0 }
 0x3f4   : > { %v4334_v40 = vpop.f32.mrf.mxu1  ;;  %v4767_v14 = vpop.f32.mrf.mxu0 }
 0x3f5   : > { %v9734_v61 = vadd.f32 %v4759_v20, %v4334_v40 }
 0x3f6   : > { %v4336_v23 = vpop.f32.mrf.mxu1  ;;  %v4769_v63 = vpop.f32.mrf.mxu0 }
 0x3f8   : > { %v4339_v33 = vpop.f32.mrf.mxu1  ;;  %v4772_v5 = vpop.f32.mrf.mxu0  ;;  %5309 = vmatmul.mubr.bf16.gmra.mxu1 %v9657_v41 }
 0x3f9   : > { %v9737_v51 = vadd.f32 %v4764_v52, %v4339_v33  ;;  %6934 = vmatprep.mubr.msk.bf16.mxu1 %vm1577_vm2, %v9659_v25 }
 0x3fa   : > { %v4341_v21 = vpop.f32.mrf.mxu1  ;;  %v4774_v58 = vpop.f32.mrf.mxu0 }
 0x3fc   : > { %v4342_v54 = vpop.f32.mrf.mxu1  ;;  %v4775_v1 = vpop.f32.mrf.mxu0 }
 0x3fd   : > { %v9741_v2 = vadd.f32 %v4767_v14, %v4342_v54 }
 0x3fe   : > { %v4344_v3 = vpop.f32.mrf.mxu1  ;;  %v4777_v31 = vpop.f32.mrf.mxu0 }
 0x400   : > { %v4347_v12 = vpop.f32.mrf.mxu1  ;;  %v4780_v43 = vpop.f32.mrf.mxu0  ;;  %5317 = vmatmul.mubr.bf16.gmra.mxu1 %v9671_v48 }
 0x401   : > { %v9744_v26 = vadd.f32 %v4772_v5, %v4347_v12  ;;  %6935 = vmatprep.mubr.msk.bf16.mxu1 %vm1577_vm2, %v9673_v24 }
 0x402   : > { %v4349_v45 = vpop.f32.mrf.mxu1  ;;  %v4782_v35 = vpop.f32.mrf.mxu0 }
 0x404   : > { %v4350_v41 = vpop.f32.mrf.mxu1  ;;  %v4783_v25 = vpop.f32.mrf.mxu0 }
 0x405   : > { %v9748_v27 = vadd.f32 %v4775_v1, %v4350_v41 }
 0x406   : > { %v4352_v44 = vpop.f32.mrf.mxu1  ;;  %v4785_v16 = vpop.f32.mrf.mxu0 }
 0x408   : > { %v4355_v56 = vpop.f32.mrf.mxu1  ;;  %v4788_v38 = vpop.f32.mrf.mxu0  ;;  %5325 = vmatmul.mubr.bf16.gmra.mxu1 %v9679_v7 }
 0x409   : > { %v9751_v62 = vadd.f32 %v4780_v43, %v4355_v56  ;;  %6936 = vmatprep.mubr.msk.bf16.mxu1 %vm1577_vm2, %v7222_v17 }
 0x40a   : > { %v4357_v48 = vpop.f32.mrf.mxu1  ;;  %v4790_v57 = vpop.f32.mrf.mxu0 }
 0x40c   : > { %v4358_v24 = vpop.f32.mrf.mxu1  ;;  %v4791_v4 = vpop.f32.mrf.mxu0 }
 0x40d   : > { %v9754_v37 = vadd.f32 %v4783_v25, %v4358_v24 }
 0x40e   : > { %v4360_v11 = vpop.f32.mrf.mxu1  ;;  %v4793_v15 = vpop.f32.mrf.mxu0 }
 0x410   : > { %v4363_v6 = vpop.f32.mrf.mxu1  ;;  %v4796_v55 = vpop.f32.mrf.mxu0  ;;  %5333 = vmatmul.mubr.bf16.gmra.mxu1 %v7224_v49 }
 0x411   : > { %v9756_v50 = vadd.f32 %v4788_v38, %v4363_v6 }
 0x412   : > { %v4365_v22 = vpop.f32.mrf.mxu1  ;;  %v4798_v7 = vpop.f32.mrf.mxu0 }
 0x414   : > { %v4366_v9 = vpop.f32.mrf.mxu1  ;;  %v4799_v19 = vpop.f32.mrf.mxu0 }
 0x415   : > { %v9758_v39 = vadd.f32 %v4791_v4, %v4366_v9 }
 0x416   : > { %v4368_v0 = vpop.f32.mrf.mxu1  ;;  %v4801_v20 = vpop.f32.mrf.mxu0 }
 0x418   : > { %v4371_v42 = vpop.f32.mrf.mxu1  ;;  %v4804_v59 = vpop.f32.mrf.mxu0 }
 0x419   : > { %v9760_v47 = vadd.f32 %v4796_v55, %v4371_v42 }
 0x41a   : > { %v4373_v52 = vpop.f32.mrf.mxu1  ;;  %v4806_v18 = vpop.f32.mrf.mxu0 }
 0x41c   : > { %v4374_v46 = vpop.f32.mrf.mxu1  ;;  %v4807_v40 = vpop.f32.mrf.mxu0 }
 0x41d   : > { %v9762_v14 = vadd.f32 %v4799_v19, %v4374_v46 }
 0x41e   : > { %v4376_v23 = vpop.f32.mrf.mxu1  ;;  %v4809_v63 = vpop.f32.mrf.mxu0 }
 0x420   : > { %v4379_v33 = vpop.f32.mrf.mxu1  ;;  %v4812_v5 = vpop.f32.mrf.mxu0 }
 0x421   : > { %v9764_v21 = vadd.f32 %v4804_v59, %v4379_v33 }
 0x422   : > { %v4381_v58 = vpop.f32.mrf.mxu1  ;;  %v4814_v54 = vpop.f32.mrf.mxu0 }
 0x424   : > { %v4382_v1 = vpop.f32.mrf.mxu1  ;;  %v4815_v3 = vpop.f32.mrf.mxu0 }
 0x425   : > { %v9766_v31 = vadd.f32 %v4807_v40, %v4382_v1 }
 0x426   : > { %v4384_v12 = vpop.f32.mrf.mxu1  ;;  %v4817_v43 = vpop.f32.mrf.mxu0 }
 0x428   : > { %v4387_v45 = vpop.f32.mrf.mxu1  ;;  %v4820_v35 = vpop.f32.mrf.mxu0 }
 0x429   : > { %v9768_v41 = vadd.f32 %v4812_v5, %v4387_v45 }
 0x42a   : > { %v4389_v25 = vpop.f32.mrf.mxu1  ;;  %v4822_v17 = vpop.f32.mrf.mxu0 }
 0x42c   : > { %v4390_v44 = vpop.f32.mrf.mxu1  ;;  %v4823_v16 = vpop.f32.mrf.mxu0 }
 0x42d   : > { %v9770_v56 = vadd.f32 %v4815_v3, %v4390_v44 }
 0x42e   : > { %v4392_v38 = vpop.f32.mrf.mxu1  ;;  %v4825_v48 = vpop.f32.mrf.mxu0 }
 0x430   : > { %v4395_v57 = vpop.f32.mrf.mxu1  ;;  %v4828_v24 = vpop.f32.mrf.mxu0 }
 0x431   : > { %v9772_v4 = vadd.f32 %v4820_v35, %v4395_v57 }
 0x432   : > { %v4397_v49 = vpop.f32.mrf.mxu1  ;;  %v4830_v11 = vpop.f32.mrf.mxu0 }
 0x434   : > { %v4398_v15 = vpop.f32.mrf.mxu1  ;;  %v4831_v6 = vpop.f32.mrf.mxu0 }
 0x435   : > { %v9774_v55 = vadd.f32 %v4823_v16, %v4398_v15 }
 0x436   : > { %v4400_v22 = vpop.f32.mrf.mxu1  ;;  %v4833_v7 = vpop.f32.mrf.mxu0 }
 0x438   : > { %v4403_v9 = vpop.f32.mrf.mxu1  ;;  %v4836_v19 = vpop.f32.mrf.mxu0 }
 0x439   : > { %v9776_v0 = vadd.f32 %v4828_v24, %v4403_v9  ;;  %v4733_v9 = vadd.f32 %v9667_v32, %v9708_v60 }
 0x43a   : > { %v4405_v20 = vpop.f32.mrf.mxu1  ;;  %v4838_v42 = vpop.f32.mrf.mxu0 }
 0x43c   : > { %v4406_v59 = vpop.f32.mrf.mxu1  ;;  %v4839_v52 = vpop.f32.mrf.mxu0 }
 0x43d   : > { %v9778_v18 = vadd.f32 %v4831_v6, %v4406_v59  ;;  %v4736_v59 = vadd.f32 %v9669_v28, %v9713_v10 }
 0x43e   : > { %v4408_v46 = vpop.f32.mrf.mxu1  ;;  %v4841_v40 = vpop.f32.mrf.mxu0 }
 0x440   : > { %v4411_v23 = vpop.f32.mrf.mxu1  ;;  %v4844_v63 = vpop.f32.mrf.mxu0 }
 0x441   : > { %v9780_v33 = vadd.f32 %v4836_v19, %v4411_v23 }
 0x442   : > { %v4413_v5 = vpop.f32.mrf.mxu1  ;;  %v4846_v58 = vpop.f32.mrf.mxu0 }
 0x444   : > { %v4414_v54 = vpop.f32.mrf.mxu1  ;;  %v4847_v1 = vpop.f32.mrf.mxu0 }
 0x445   : > { %v9782_v3 = vadd.f32 %v4839_v52, %v4414_v54 }
 0x446   : > { %v4416_v12 = vpop.f32.mrf.mxu1  ;;  %v4849_v43 = vpop.f32.mrf.mxu0 }
 0x448   : > { %v4419_v45 = vpop.f32.mrf.mxu1  ;;  %v4852_v35 = vpop.f32.mrf.mxu0 }
 0x449   : > { %v9784_v25 = vadd.f32 %v4844_v63, %v4419_v45 }
 0x44a   : > { %v4421_v17 = vpop.f32.mrf.mxu1  ;;  %v4854_v44 = vpop.f32.mrf.mxu0 }
 0x44c   : > { %v4422_v16 = vpop.f32.mrf.mxu1  ;;  %v4855_v38 = vpop.f32.mrf.mxu0 }
 0x44d   : > { %v9786_v48 = vadd.f32 %v4847_v1, %v4422_v16 }
 0x44e   : > { %v4424_v57 = vpop.f32.mrf.mxu1  ;;  %v4857_v24 = vpop.f32.mrf.mxu0 }
 0x450   : > { %v4427_v49 = vpop.f32.mrf.mxu1 }
 0x451   : > { %v9788_v11 = vadd.f32 %v4852_v35, %v4427_v49 }
 0x452   : > { %v4429_v15 = vpop.f32.mrf.mxu1 }
 0x454   : > { %v4430_v6 = vpop.f32.mrf.mxu1 }
 0x455   : > { %v9790_v22 = vadd.f32 %v4855_v38, %v4430_v6 }
 0x456   : > { %v4432_v7 = vpop.f32.mrf.mxu1 }
 0x458   : > { %v5214_v19 = vpop.f32.mrf.mxu1 }
 0x459   : > { %v9794_v20 = vadd.f32 %v5214_v19, %v4733_v9 }
 0x45a   : > { %v5216_v42 = vpop.f32.mrf.mxu1 }
 0x45c   : > { %v5217_v52 = vpop.f32.mrf.mxu1 }
 0x45d   : > { %v9798_v46 = vadd.f32 %v5217_v52, %v4736_v59  ;;  %v5373_v59 = vsel %vm1577_vm2, %v9794_v20, 0.0 }
 0x45e   : > { %v5219_v40 = vpop.f32.mrf.mxu1 }
 0x45f   : > { %v5443_v6 = vmul.f32 %v9798_v46, %v9798_v46  ;;  %v5374_v9 = vsel %vm1577_vm2, %v9798_v46, 0.0 }
 0x460   : > { %v5222_v23 = vpop.f32.mrf.mxu1 }
 0x461   : > { %v9801_v63 = vadd.f32 %v5222_v23, %v9716_v8  ;;  %v5475_v52 = vsel %vm1577_vm2, %v5443_v6, 0.0 }
 0x462   : > { %v5224_v5 = vpop.f32.mrf.mxu1 }
 0x463   : > { %v5444_v19 = vmul.f32 %v9801_v63, %v9801_v63  ;;  %v5376_v40 = vsel %vm1577_vm2, %v9801_v63, 0.0 }
 0x464   : > { %v5225_v58 = vpop.f32.mrf.mxu1 }
 0x465   : > { %v9804_v54 = vadd.f32 %v5225_v58, %v9720_v13  ;;  %v5375_v58 = vadd.f32 %v5374_v9, %v5373_v59 }
 0x466   : > { %v5227_v32 = vpop.f32.mrf.mxu1 }
 0x467   : > { %v5445_v23 = vmul.f32 %v9804_v54, %v9804_v54 }
 0x468   : > { %v5230_v60 = vpop.f32.mrf.mxu1 }
 0x469   : > { %v9807_v1 = vadd.f32 %v5230_v60, %v9723_v34  ;;  %v5477_v60 = vsel %vm1577_vm2, %v5444_v19, 0.0 }
 0x46a   : > { %v5232_v12 = vpop.f32.mrf.mxu1 }
 0x46b   : > { %v5378_v12 = vsel %vm1577_vm2, %v9804_v54, 0.0 }
 0x46c   : > { %v5233_v28 = vpop.f32.mrf.mxu1 }
 0x46d   : > { %v9810_v10 = vadd.f32 %v5233_v28, %v9727_v36  ;;  %v5442_v36 = vmul.f32 %v9794_v20, %v9794_v20  ;;  %v5446_v28 = vmul.f32 %v9807_v1, %v9807_v1 }
 0x46e   : > { %v5235_v43 = vpop.f32.mrf.mxu1 }
 0x46f   : > { %v5474_v5 = vsel %vm1577_vm2, %v5442_v36, 0.0 }
 0x470   : > { %v5238_v45 = vpop.f32.mrf.mxu1 }
 0x471   : > { %v9834_v43 = vadd.f32 %v5238_v45, %v9730_v30  ;;  %v5481_v30 = vsel %vm1577_vm2, %v5446_v28, 0.0  ;;  %v5382_v45 = vsel %vm1577_vm2, %v9810_v10, 0.0 }
 0x472   : > { %v5240_v35 = vpop.f32.mrf.mxu1 }
 0x473   : > { %v5476_v35 = vadd.f32 %v5475_v52, %v5474_v5  ;;  %v5448_v19 = vmul.f32 %v9834_v43, %v9834_v43 }
 0x474   : > { %v5241_v8 = vpop.f32.mrf.mxu1 }
 0x475   : > { %v9842_v6 = vadd.f32 %v5241_v8, %v9734_v61  ;;  %v5478_v36 = vadd.f32 %v5477_v60, %v5476_v35  ;;  %v5384_v8 = vsel %vm1577_vm2, %v9834_v43, 0.0 }
 0x476   : > { %v5243_v17 = vpop.f32.mrf.mxu1 }
 0x477   : > { %v5377_v17 = vadd.f32 %v5376_v40, %v5375_v58  ;;  %v5449_v5 = vmul.f32 %v9842_v6, %v9842_v6 }
 0x478   : > { %v5246_v44 = vpop.f32.mrf.mxu1 }
 0x479   : > { %v9850_v59 = vadd.f32 %v5246_v44, %v9737_v51  ;;  %v5485_v51 = vsel %vm1577_vm2, %v5448_v19, 0.0  ;;  %v5386_v44 = vsel %vm1577_vm2, %v9842_v6, 0.0 }
 0x47a   : > { %v5248_v16 = vpop.f32.mrf.mxu1 }
 0x47b   : > { %v5450_v28 = vmul.f32 %v9850_v59, %v9850_v59 }
 0x47c   : > { %v5249_v38 = vpop.f32.mrf.mxu1 }
 0x47d   : > { %v9858_v58 = vadd.f32 %v5249_v38, %v9741_v2  ;;  %v5487_v2 = vsel %vm1577_vm2, %v5449_v5, 0.0  ;;  %v5388_v38 = vsel %vm1577_vm2, %v9850_v59, 0.0 }
 0x47e   : > { %v5251_v13 = vpop.f32.mrf.mxu1 }
 0x47f   : > { %v5479_v13 = vsel %vm1577_vm2, %v5445_v23, 0.0 }
 0x480   : > { %v5254_v57 = vpop.f32.mrf.mxu1  ;;  %v5480_v52 = vadd.f32 %v5479_v13, %v5478_v36 }
 0x481   : > { %v9866_v35 = vadd.f32 %v5254_v57, %v9744_v26  ;;  %v5489_v26 = vsel %vm1577_vm2, %v5450_v28, 0.0  ;;  %v5390_v57 = vsel %vm1577_vm2, %v9858_v58, 0.0 }
 0x482   : > { %v5256_v24 = vpop.f32.mrf.mxu1 }
 0x483   : > { %v5380_v24 = vsel %vm1577_vm2, %v9807_v1, 0.0 }
 0x484   : > { %v5257_v49 = vpop.f32.mrf.mxu1 }
 0x485   : > { %v9874_v36 = vadd.f32 %v5257_v49, %v9748_v27  ;;  %v5392_v49 = vsel %vm1577_vm2, %v9866_v35, 0.0 }
 0x486   : > { %v5259_v15 = vpop.f32.mrf.mxu1 }
 0x487   : > { %v5447_v15 = vmul.f32 %v9810_v10, %v9810_v10 }
 0x488   : > { %v5262_v34 = vpop.f32.mrf.mxu1 }
 0x489   : > { %v5483_v61 = vsel %vm1577_vm2, %v5447_v15, 0.0  ;;  %v5451_v15 = vmul.f32 %v9858_v58, %v9858_v58  ;;  %v9882_v19 = vadd.f32 %v5262_v34, %v9751_v62  ;;  %v5394_v34 = vsel %vm1577_vm2, %v9874_v36, 0.0 }
 0x48a   : > { %v5264_v7 = vpop.f32.mrf.mxu1 }
 0x48b   : > { %v5379_v7 = vadd.f32 %v5378_v12, %v5377_v17  ;;  %v5491_v27 = vsel %vm1577_vm2, %v5451_v15, 0.0 }
 0x48c   : > { %v5265_v42 = vpop.f32.mrf.mxu1 }
 0x48d   : > { %v5381_v40 = vadd.f32 %v5380_v24, %v5379_v7  ;;  %v9890_v5 = vadd.f32 %v5265_v42, %v9754_v37  ;;  %v5396_v42 = vsel %vm1577_vm2, %v9882_v19, 0.0 }
 0x48e   : > { %v5267_v32 = vpop.f32.mrf.mxu1 }
 0x48f   : > { %v5482_v32 = vadd.f32 %v5481_v30, %v5480_v52  ;;  %v5383_v60 = vadd.f32 %v5382_v45, %v5381_v40  ;;  %v5452_v45 = vmul.f32 %v9866_v35, %v9866_v35 }
 0x490   : > { %v5270_v16 = vpop.f32.mrf.mxu1 }
 0x491   : > { %v5484_v17 = vadd.f32 %v5483_v61, %v5482_v32  ;;  %v5385_v13 = vadd.f32 %v5384_v8, %v5383_v60  ;;  %v5453_v8 = vmul.f32 %v9874_v36, %v9874_v36  ;;  %v5493_v62 = vsel %vm1577_vm2, %v5452_v45, 0.0 }
 0x492   : > { %v5272_v9 = vpop.f32.mrf.mxu1 }
 0x493   : > { %v5486_v7 = vadd.f32 %v5485_v51, %v5484_v17  ;;  %v5387_v9 = vadd.f32 %v5386_v44, %v5385_v13  ;;  %v5454_v51 = vmul.f32 %v9882_v19, %v9882_v19  ;;  %v9898_v44 = vadd.f32 %v5270_v16, %v9756_v50 }
 0x494   : > { %v5273_v23 = vpop.f32.mrf.mxu1  ;;  %v5495_v37 = vsel %vm1577_vm2, %v5453_v8, 0.0  ;;  %v5398_v16 = vsel %vm1577_vm2, %v9890_v5, 0.0 }
 0x495   : > { %v5488_v52 = vadd.f32 %v5487_v2, %v5486_v7  ;;  %v5389_v40 = vadd.f32 %v5388_v38, %v5387_v9  ;;  %v5455_v2 = vmul.f32 %v9890_v5, %v9890_v5  ;;  %v9906_v38 = vadd.f32 %v5273_v23, %v9758_v39 }
 0x496   : > { %v5275_v12 = vpop.f32.mrf.mxu1  ;;  %v5497_v50 = vsel %vm1577_vm2, %v5454_v51, 0.0  ;;  %v5400_v23 = vsel %vm1577_vm2, %v9898_v44, 0.0 }
 0x497   : > { %v5490_v32 = vadd.f32 %v5489_v26, %v5488_v52  ;;  %v5391_v60 = vadd.f32 %v5390_v57, %v5389_v40  ;;  %v5499_v39 = vsel %vm1577_vm2, %v5455_v2, 0.0  ;;  %v5457_v40 = vmul.f32 %v9906_v38, %v9906_v38 }
 0x498   : > { %v5278_v24 = vpop.f32.mrf.mxu1 }
 0x499   : > { %v5492_v28 = vadd.f32 %v5491_v27, %v5490_v32  ;;  %v5393_v17 = vadd.f32 %v5392_v49, %v5391_v60  ;;  %v9914_v26 = vadd.f32 %v5278_v24, %v9760_v47  ;;  %v5402_v24 = vsel %vm1577_vm2, %v9906_v38, 0.0 }
 0x49a   : > { %v5280_v30 = vpop.f32.mrf.mxu1 }
 0x49b   : > { %v5494_v15 = vadd.f32 %v5493_v62, %v5492_v28  ;;  %v5395_v7 = vadd.f32 %v5394_v34, %v5393_v17  ;;  %v5456_v30 = vmul.f32 %v9898_v44, %v9898_v44  ;;  %v5458_v60 = vmul.f32 %v9914_v26, %v9914_v26 }
 0x49c   : > { %v5281_v61 = vpop.f32.mrf.mxu1 }
 0x49d   : > { %v5496_v57 = vadd.f32 %v5495_v37, %v5494_v15  ;;  %v5397_v45 = vadd.f32 %v5396_v42, %v5395_v7  ;;  %v9922_v27 = vadd.f32 %v5281_v61, %v9762_v14  ;;  %v5501_v47 = vsel %vm1577_vm2, %v5456_v30, 0.0 }
 0x49e   : > { %v5283_v12 = vpop.f32.mrf.mxu1  ;;  %v5503_v14 = vsel %vm1577_vm2, %v5457_v40, 0.0  ;;  %v5404_v61 = vsel %vm1577_vm2, %v9914_v26, 0.0 }
 0x49f   : > { %v5498_v49 = vadd.f32 %v5497_v50, %v5496_v57  ;;  %v5399_v8 = vadd.f32 %v5398_v16, %v5397_v45  ;;  %v5459_v28 = vmul.f32 %v9922_v27, %v9922_v27 }
 0x4a0   : > { %v5286_v13 = vpop.f32.mrf.mxu1 }
 0x4a1   : > { %v9930_v12 = vadd.f32 %v5286_v13, %v9764_v21  ;;  %v5500_v62 = vadd.f32 %v5499_v39, %v5498_v49  ;;  %v5401_v34 = vadd.f32 %v5400_v23, %v5399_v8  ;;  %v5505_v21 = vsel %vm1577_vm2, %v5458_v60, 0.0 }
 0x4a2   : > { %v5288_v9 = vpop.f32.mrf.mxu1  ;;  %v5406_v13 = vsel %vm1577_vm2, %v9922_v27, 0.0 }
 0x4a3   : > { %v5502_v37 = vadd.f32 %v5501_v47, %v5500_v62  ;;  %v5403_v42 = vadd.f32 %v5402_v24, %v5401_v34  ;;  %v5460_v15 = vmul.f32 %v9930_v12, %v9930_v12  ;;  %v5408_v30 = vsel %vm1577_vm2, %v9930_v12, 0.0 }
 0x4a4   : > { %v5289_v52 = vpop.f32.mrf.mxu1 }
 0x4a5   : > { %v9938_v17 = vadd.f32 %v5289_v52, %v9766_v31  ;;  %v5504_v9 = vadd.f32 %v5503_v14, %v5502_v37  ;;  %v5405_v50 = vadd.f32 %v5404_v61, %v5403_v42  ;;  %v5507_v31 = vsel %vm1577_vm2, %v5459_v28, 0.0 }
 0x4a6   : > { %v5291_v32 = vpop.f32.mrf.mxu1 }
 0x4a7   : > { %v5461_v57 = vmul.f32 %v9938_v17, %v9938_v17  ;;  %v5506_v52 = vadd.f32 %v5505_v21, %v5504_v9  ;;  %v5407_v39 = vadd.f32 %v5406_v13, %v5405_v50  ;;  %v5410_v40 = vsel %vm1577_vm2, %v9938_v17, 0.0 }
 0x4a8   : > { %v5294_v51 = vpop.f32.mrf.mxu1 }
 0x4a9   : > { %v9946_v7 = vadd.f32 %v5294_v51, %v9768_v41  ;;  %v5509_v41 = vsel %vm1577_vm2, %v5460_v15, 0.0  ;;  %v5508_v8 = vadd.f32 %v5507_v31, %v5506_v52  ;;  %v5409_v32 = vadd.f32 %v5408_v30, %v5407_v39 }
 0x4aa   : > { %v5296_v2 = vpop.f32.mrf.mxu1  ;;  %v5511_v24 = vsel %vm1577_vm2, %v5461_v57, 0.0 }
 0x4ab   : > { %v5462_v49 = vmul.f32 %v9946_v7, %v9946_v7  ;;  %v5510_v34 = vadd.f32 %v5509_v41, %v5508_v8  ;;  %v5411_v51 = vadd.f32 %v5410_v40, %v5409_v32 }
 0x4ac   : > { %v5297_v16 = vpop.f32.mrf.mxu1 }
 0x4ad   : > { %v9954_v45 = vadd.f32 %v5297_v16, %v9770_v56  ;;  %v5412_v56 = vsel %vm1577_vm2, %v9946_v7, 0.0  ;;  %v5513_v61 = vsel %vm1577_vm2, %v5462_v49, 0.0  ;;  %v5512_v42 = vadd.f32 %v5511_v24, %v5510_v34 }
 0x4ae   : > { %v5299_v23 = vpop.f32.mrf.mxu1  ;;  %v5413_v2 = vadd.f32 %v5412_v56, %v5411_v51 }
 0x4af   : > { %v5463_v60 = vmul.f32 %v9954_v45, %v9954_v45  ;;  %v5414_v28 = vsel %vm1577_vm2, %v9954_v45, 0.0  ;;  %v5514_v9 = vadd.f32 %v5513_v61, %v5512_v42 }
 0x4b0   : > { %v5302_v47 = vpop.f32.mrf.mxu1  ;;  %v5415_v50 = vadd.f32 %v5414_v28, %v5413_v2 }
 0x4b1   : > { %v9967_v62 = vadd.f32 %v5302_v47, %v9772_v4  ;;  %v5515_v13 = vsel %vm1577_vm2, %v5463_v60, 0.0 }
 0x4b2   : > { %v5304_v14 = vpop.f32.mrf.mxu1  ;;  %v5516_v52 = vadd.f32 %v5515_v13, %v5514_v9 }
 0x4b3   : > { %v5464_v37 = vmul.f32 %v9967_v62, %v9967_v62  ;;  %v5416_v4 = vsel %vm1577_vm2, %v9967_v62, 0.0 }
 0x4b4   : > { %v5305_v21 = vpop.f32.mrf.mxu1  ;;  %v5417_v39 = vadd.f32 %v5416_v4, %v5415_v50 }
 0x4b5   : > { %v9978_v15 = vadd.f32 %v5305_v21, %v9774_v55  ;;  %v5517_v31 = vsel %vm1577_vm2, %v5464_v37, 0.0 }
 0x4b6   : > { %v5307_v16 = vpop.f32.mrf.mxu1  ;;  %v5518_v55 = vadd.f32 %v5517_v31, %v5516_v52 }
 0x4b7   : > { %v5418_v30 = vsel %vm1577_vm2, %v9978_v15, 0.0  ;;  %v5465_v57 = vmul.f32 %v9978_v15, %v9978_v15 }
 0x4b8   : > { %v5310_v23 = vpop.f32.mrf.mxu1  ;;  %v5419_v49 = vadd.f32 %v5418_v30, %v5417_v39 }
 0x4b9   : > { %v5519_v41 = vsel %vm1577_vm2, %v5465_v57, 0.0  ;;  %v9987_v40 = vadd.f32 %v5310_v23, %v9776_v0 }
 0x4ba   : > { %v5312_v8 = vpop.f32.mrf.mxu1  ;;  %v5520_v24 = vadd.f32 %v5519_v41, %v5518_v55 }
 0x4bb   : > { %v5420_v32 = vsel %vm1577_vm2, %v9987_v40, 0.0  ;;  %v5466_v47 = vmul.f32 %v9987_v40, %v9987_v40 }
 0x4bc   : > { %v5421_v56 = vadd.f32 %v5420_v32, %v5419_v49  ;;  %v5313_v60 = vpop.f32.mrf.mxu1 }
 0x4bd   : > { %v5521_v34 = vsel %vm1577_vm2, %v5466_v47, 0.0  ;;  %v9995_v51 = vadd.f32 %v5313_v60, %v9778_v18 }
 0x4be   : > { %v5522_v14 = vadd.f32 %v5521_v34, %v5520_v24  ;;  %v5315_v0 = vpop.f32.mrf.mxu1 }
 0x4bf   : > { %v5422_v61 = vsel %vm1577_vm2, %v9995_v51, 0.0  ;;  %v5467_v28 = vmul.f32 %v9995_v51, %v9995_v51 }
 0x4c0   : > { %v5318_v37 = vpop.f32.mrf.mxu1  ;;  %v5423_v21 = vadd.f32 %v5422_v61, %v5421_v56 }
 0x4c1   : > { %v5523_v42 = vsel %vm1577_vm2, %v5467_v28, 0.0  ;;  %v10003_v2 = vadd.f32 %v5318_v37, %v9780_v33 }
 0x4c2   : > { %v5320_v13 = vpop.f32.mrf.mxu1  ;;  %v5524_v9 = vadd.f32 %v5523_v42, %v5522_v14 }
 0x4c3   : > { %v5424_v18 = vsel %vm1577_vm2, %v10003_v2, 0.0  ;;  %v5468_v4 = vmul.f32 %v10003_v2, %v10003_v2 }
 0x4c4   : > { %v5425_v50 = vadd.f32 %v5424_v18, %v5423_v21  ;;  %v5321_v16 = vpop.f32.mrf.mxu1 }
 0x4c5   : > { %v5525_v31 = vsel %vm1577_vm2, %v5468_v4, 0.0  ;;  %v10011_v30 = vadd.f32 %v5321_v16, %v9782_v3 }
 0x4c6   : > { %v5526_v57 = vadd.f32 %v5525_v31, %v5524_v9  ;;  %v5323_v52 = vpop.f32.mrf.mxu1 }
 0x4c7   : > { %v5426_v33 = vsel %vm1577_vm2, %v10011_v30, 0.0  ;;  %v5469_v39 = vmul.f32 %v10011_v30, %v10011_v30 }
 0x4c8   : > { %v5427_v23 = vadd.f32 %v5426_v33, %v5425_v50  ;;  %v5326_v41 = vpop.f32.mrf.mxu1 }
 0x4c9   : > { %v5527_v55 = vsel %vm1577_vm2, %v5469_v39, 0.0  ;;  %v10019_v49 = vadd.f32 %v5326_v41, %v9784_v25 }
 0x4ca   : > { %v5528_v8 = vadd.f32 %v5527_v55, %v5526_v57  ;;  %v5328_v32 = vpop.f32.mrf.mxu1 }
 0x4cb   : > { %v5428_v3 = vsel %vm1577_vm2, %v10019_v49, 0.0  ;;  %v5470_v47 = vmul.f32 %v10019_v49, %v10019_v49 }
 0x4cc   : > { %v5429_v24 = vadd.f32 %v5428_v3, %v5427_v23  ;;  %v5329_v56 = vpop.f32.mrf.mxu1 }
 0x4cd   : > { %v5529_v60 = vsel %vm1577_vm2, %v5470_v47, 0.0  ;;  %v10027_v34 = vadd.f32 %v5329_v56, %v9786_v48 }
 0x4ce   : > { %v5530_v14 = vadd.f32 %v5529_v60, %v5528_v8  ;;  %v5331_v0 = vpop.f32.mrf.mxu1 }
 0x4cf   : > { %v5430_v25 = vsel %vm1577_vm2, %v10027_v34, 0.0  ;;  %v5471_v61 = vmul.f32 %v10027_v34, %v10027_v34 }
 0x4d0   : > { %v5431_v28 = vadd.f32 %v5430_v25, %v5429_v24  ;;  %v5334_v37 = vpop.f32.mrf.mxu1 }
 0x4d1   : > { %v5531_v42 = vsel %vm1577_vm2, %v5471_v61, 0.0  ;;  %v10035_v21 = vadd.f32 %v5334_v37, %v9788_v11 }
 0x4d2   : > { %v5532_v13 = vadd.f32 %v5531_v42, %v5530_v14  ;;  %v5336_v18 = vpop.f32.mrf.mxu1 }
 0x4d3   : > { %v5432_v48 = vsel %vm1577_vm2, %v10035_v21, 0.0  ;;  %v5472_v4 = vmul.f32 %v10035_v21, %v10035_v21  ;;  %v7293_v18 = vmov 1983009808  }
 0x4d4   : > { %v5433_v9 = vadd.f32 %v5432_v48, %v5431_v28  ;;  %v5337_v50 = vpop.f32.mrf.mxu1  ;;  %v5697_v48 = vunpack.c.l.s4 %v7293_v18 }
 0x4d5   : > { %v5533_v16 = vsel %vm1577_vm2, %v5472_v4, 0.0  ;;  %v5372_v31 = vadd.f32 %v5337_v50, %v9790_v22  ;;  %v7294_v4 = vmov 1934713408   ;;  %v5547_v50 = vld [vmem:[%s10689_s5] sm:$0x1] }
 0x4d6   : > { %v5534_v57 = vadd.f32 %v5533_v16, %v5532_v13  ;;  %v5339_v52 = vpop.f32.mrf.mxu1 }
 0x4d7   : > { %v5434_v33 = vsel %vm1577_vm2, %v5372_v31, 0.0  ;;  %v5473_v11 = vmul.f32 %v5372_v31, %v5372_v31 }
 0x4d8   : > { %v5435_v39 = vadd.f32 %v5434_v33, %v5433_v9  ;;  %v5761_v9 = vunpack.c.l.s4 %v7294_v4 }
 0x4d9   : > { %v5535_v23 = vsel %vm1577_vm2, %v5473_v11, 0.0  ;;  %v5551_v11 = vld [vmem:[%s10690_s6] sm:$0x1] }
 0x4da   : > { %v5436_v41 = vrot.slane %v5435_v39, 4  ;;  %v5536_v55 = vadd.f32 %v5535_v23, %v5534_v57  ;;  %v5698_v57 = vunpack.c.0.s8 %v5697_v48  ;;  %v5762_v52 = vunpack.c.0.s8 %v5761_v9 }
 0x4dc   : > { %v5437_v8 = vadd.f32 %v5436_v41, %v5435_v39  ;;  %v5537_v32 = vrot.slane %v5536_v55, 4  ;;  %v10053_v41 = vsub.s32 %v5698_v57, %v8932_v29 }
 0x4de   : > { %v5438_v3 = vrot.slane %v5437_v8, 2  ;;  %v5538_v47 = vadd.f32 %v5537_v32, %v5536_v55  ;;  %v10056_v55 = vsub.s32 %v5762_v52, %v8932_v29 }
 0x4e0   : > { %v5439_v24 = vadd.f32 %v5438_v3, %v5437_v8  ;;  %v5539_v56 = vrot.slane %v5538_v47, 2 }
 0x4e2   : > { %v5440_v60 = vrot.slane %v5439_v24, 1  ;;  %v5540_v14 = vadd.f32 %v5539_v56, %v5538_v47 }
 0x4e4   : > { %v5441_v0 = vadd.f32 %v5440_v60, %v5439_v24  ;;  %v5541_v22 = vrot.slane %v5540_v14, 1 }
 0x4e6   : > { %v5542_v25 = vadd.f32 %v5541_v22, %v5540_v14  ;;  %v5543_v61 = vmul.f32 0.00390625, %v5441_v0 }
 0x4e8   : > { %v5544_v28 = vmul.f32 0.00390625, %v5542_v25  ;;  %v5545_v37 = vmul.f32 %v5543_v61, %v5543_v61  ;;  %v5661_v25 = vld [vmem:[%s7404_s17 + $0xf8] sm:$0xff] }
 0x4ea   : > { %v5546_v42 = vsub.f32 %v5544_v28, %v5545_v37 }
 0x4ec   : > { %v5548_v13 = vadd.f32 1e-05, %v5546_v42 }
 0x4ee   : > { %7227 = vrsqrt.f32 %v5548_v13 }
 0x4fb   : > { %v7228_v16 = vpop.eup %7227 }
 0x4fc   : > { %v5550_v33 = vmul.f32 %v7228_v16, %v5547_v50 }
 0x4fe   : > { %v5552_v39 = vmul.f32 %v5550_v33, %v5543_v61  ;;  %v5558_v23 = vrot.slane %v5550_v33, %v8942_v53  ;;  %v5630_v33 = vld [vmem:[%s7404_s17] sm:$0xff] }
 0x500   : > { %v5553_v8 = vsub.f32 %v5551_v11, %v5552_v39  ;;  %v5587_v32 = vmul.f32 %v5558_v23, %v10011_v30  ;;  %v5591_v3 = vmul.f32 %v5558_v23, %v5372_v31  ;;  %v5560_v47 = vmul.f32 %v5558_v23, %v9794_v20  ;;  %v5657_v31 = vld [vmem:[%s7404_s17 + $0xd8] sm:$0xff]  ;;  %v5646_v11 = vld [vmem:[%s7404_s17 + $0x80] sm:$0xff]  ;;  %v5648_v39 = vld [vmem:[%s7404_s17 + $0x90] sm:$0xff] }
 0x501   : > { %v5561_v24 = vmul.f32 %v5558_v23, %v9798_v46  ;;  %v5562_v56 = vmul.f32 %v5558_v23, %v9801_v63  ;;  %v5563_v60 = vmul.f32 %v5558_v23, %v9804_v54  ;;  %v5564_v14 = vmul.f32 %v5558_v23, %v9807_v1 }
 0x502   : > { %v10065_v0 = vrot.slane %v5553_v8, %v8942_v53  ;;  %v5565_v29 = vmul.f32 %v5558_v23, %v9810_v10  ;;  %v5566_v22 = vmul.f32 %v5558_v23, %v9834_v43  ;;  %v5567_v30 = vmul.f32 %v5558_v23, %v9842_v6 }
 0x503   : > { %v5568_v20 = vmul.f32 %v5558_v23, %v9850_v59  ;;  %v5569_v46 = vmul.f32 %v5558_v23, %v9858_v58  ;;  %v5570_v63 = vmul.f32 %v5558_v23, %v9866_v35  ;;  %v5571_v54 = vmul.f32 %v5558_v23, %v9874_v36 }
 0x504   : > { %v5625_v1 = vadd.f32 %v10065_v0, %v5587_v32  ;;  %v5629_v53 = vadd.f32 %v10065_v0, %v5591_v3  ;;  %v5572_v10 = vmul.f32 %v5558_v23, %v9882_v19  ;;  %v5573_v43 = vmul.f32 %v5558_v23, %v9890_v5 }
 0x505   : > { %v5574_v6 = vmul.f32 %v5558_v23, %v9898_v44  ;;  %v5575_v61 = vmul.f32 %v5558_v23, %v9906_v38  ;;  %v5576_v59 = vmul.f32 %v5558_v23, %v9914_v26  ;;  %v5577_v58 = vmul.f32 %v5558_v23, %v9922_v27 }
 0x506   : > { %v10084_v28 = vadd.f32 %v5657_v31, %v5625_v1  ;;  %v10086_v35 = vadd.f32 %v5661_v25, %v5629_v53  ;;  %v5578_v36 = vmul.f32 %v5558_v23, %v9930_v12  ;;  %v5579_v37 = vmul.f32 %v5558_v23, %v9938_v17  ;;  %v5631_v31 = vld [vmem:[%s7404_s17 + $0x8] sm:$0xff]  ;;  %v5658_v25 = vld [vmem:[%s7404_s17 + $0xe0] sm:$0xff]  ;;  %v5632_v53 = vld [vmem:[%s7404_s17 + $0x10] sm:$0xff] }
 0x507   : > { %v5580_v19 = vmul.f32 %v5558_v23, %v9946_v7  ;;  %v5581_v5 = vmul.f32 %v5558_v23, %v9954_v45  ;;  %v5582_v44 = vmul.f32 %v5558_v23, %v9967_v62  ;;  %v5583_v38 = vmul.f32 %v5558_v23, %v9978_v15 }
 0x508   : > { %v6150_v26 = vcombine.low %v10084_v28, %v10086_v35  ;;  %v6151_v27 = vcombine.high %v10084_v28, %v10086_v35  ;;  %v5584_v42 = vmul.f32 %v5558_v23, %v9987_v40  ;;  %v5585_v12 = vmul.f32 %v5558_v23, %v9995_v51 }
 0x509   : > { %v5586_v17 = vmul.f32 %v5558_v23, %v10003_v2  ;;  %v5588_v7 = vmul.f32 %v5558_v23, %v10019_v49  ;;  %v5589_v45 = vmul.f32 %v5558_v23, %v10027_v34  ;;  %v5590_v62 = vmul.f32 %v5558_v23, %v10035_v21  ;;  %v5650_v23 = vld [vmem:[%s7404_s17 + $0xa0] sm:$0xff] }
 0x50a   : > { %v5598_v15 = vadd.f32 %v10065_v0, %v5560_v47  ;;  %v5599_v13 = vadd.f32 %v10065_v0, %v5561_v24  ;;  %v5600_v18 = vadd.f32 %v10065_v0, %v5562_v56  ;;  %v5601_v40 = vadd.f32 %v10065_v0, %v5563_v60  ;;  %v5652_v24 = vld [vmem:[%s7404_s17 + $0xb0] sm:$0xff]  ;;  %v5654_v56 = vld [vmem:[%s7404_s17 + $0xc0] sm:$0xff] }
 0x50b   : > { %v10109_v51 = vadd.f32 %v10065_v0, %v5564_v14  ;;  %v10112_v2 = vadd.f32 %v10065_v0, %v5565_v29  ;;  %v10115_v49 = vadd.f32 %v10065_v0, %v5566_v22  ;;  %v10118_v34 = vadd.f32 %v10065_v0, %v5567_v30  ;;  %v5656_v60 = vld [vmem:[%s7404_s17 + $0xd0] sm:$0xff] }
 0x50c   : > { %v10121_v21 = vadd.f32 %v10065_v0, %v5568_v20  ;;  %v10124_v48 = vadd.f32 %v10065_v0, %v5569_v46  ;;  %v10127_v4 = vadd.f32 %v10065_v0, %v5570_v63  ;;  %v10130_v9 = vadd.f32 %v10065_v0, %v5571_v54  ;;  %v5660_v20 = vld [vmem:[%s7404_s17 + $0xf0] sm:$0xff] }
 0x50d   : > { %v10133_v50 = vadd.f32 %v10065_v0, %v5572_v10  ;;  %v10136_v16 = vadd.f32 %v10065_v0, %v5573_v43  ;;  %v10139_v57 = vadd.f32 %v10065_v0, %v5574_v6  ;;  %v10142_v52 = vadd.f32 %v10065_v0, %v5575_v61  ;;  %v5633_v10 = vld [vmem:[%s7404_s17 + $0x18] sm:$0xff] }
 0x50e   : > { %v5614_v8 = vadd.f32 %v10065_v0, %v5576_v59  ;;  %v10150_v32 = vadd.f32 %v10065_v0, %v5577_v58  ;;  %v5616_v3 = vadd.f32 %v10065_v0, %v5578_v36  ;;  %v10154_v47 = vadd.f32 %v10065_v0, %v5579_v37  ;;  %v5634_v58 = vld [vmem:[%s7404_s17 + $0x20] sm:$0xff]  ;;  %v5635_v36 = vld [vmem:[%s7404_s17 + $0x28] sm:$0xff] }
 0x50f   : > { %v5618_v14 = vadd.f32 %v10065_v0, %v5580_v19  ;;  %v10161_v29 = vadd.f32 %v10065_v0, %v5581_v5  ;;  %v5620_v22 = vadd.f32 %v10065_v0, %v5582_v44  ;;  %v10165_v30 = vadd.f32 %v10065_v0, %v5583_v38  ;;  %v5636_v38 = vld [vmem:[%s7404_s17 + $0x30] sm:$0xff] }
 0x510   : > { %v5622_v46 = vadd.f32 %v10065_v0, %v5584_v42  ;;  %v10172_v63 = vadd.f32 %v10065_v0, %v5585_v12  ;;  %v5624_v54 = vadd.f32 %v10065_v0, %v5586_v17  ;;  %v5626_v1 = vadd.f32 %v10065_v0, %v5588_v7 }
 0x511   : > { %v5627_v43 = vadd.f32 %v10065_v0, %v5589_v45  ;;  %v5628_v6 = vadd.f32 %v10065_v0, %v5590_v62  ;;  %v10180_v61 = vadd.f32 %v5646_v11, %v5614_v8  ;;  %v10182_v59 = vadd.f32 %v5648_v39, %v5616_v3  ;;  %v5637_v0 = vld [vmem:[%s7404_s17 + $0x38] sm:$0xff]  ;;  %v5638_v45 = vld [vmem:[%s7404_s17 + $0x40] sm:$0xff]  ;;  %v5639_v62 = vld [vmem:[%s7404_s17 + $0x48] sm:$0xff] }
 0x512   : > { %v10186_v37 = vadd.f32 %v5650_v23, %v5618_v14  ;;  %v10188_v19 = vadd.f32 %v5652_v24, %v5620_v22  ;;  %v10190_v5 = vadd.f32 %v5654_v56, %v5622_v46  ;;  %v10192_v44 = vadd.f32 %v5656_v60, %v5624_v54  ;;  %v5644_v60 = vld [vmem:[%s7404_s17 + $0x70] sm:$0xff]  ;;  %v5645_v14 = vld [vmem:[%s7404_s17 + $0x78] sm:$0xff]  ;;  %v5651_v46 = vld [vmem:[%s7404_s17 + $0xa8] sm:$0xff] }
 0x513   : > { %v10196_v42 = vadd.f32 %v5658_v25, %v5626_v1  ;;  %v10198_v12 = vadd.f32 %v5660_v20, %v5628_v6  ;;  %v10200_v17 = vadd.f32 %v5630_v33, %v5598_v15  ;;  %v10202_v7 = vadd.f32 %v5631_v31, %v5599_v13  ;;  %v5640_v15 = vld [vmem:[%s7404_s17 + $0x50] sm:$0xff]  ;;  %v5641_v33 = vld [vmem:[%s7404_s17 + $0x58] sm:$0xff]  ;;  %v5642_v13 = vld [vmem:[%s7404_s17 + $0x60] sm:$0xff] }
 0x514   : > { %v5830_v11 = vcombine.low %v10180_v61, %v10186_v37  ;;  %v5846_v39 = vcombine.low %v10182_v59, %v10188_v19  ;;  %v10210_v23 = vadd.f32 %v5632_v53, %v5600_v18  ;;  %v10212_v8 = vadd.f32 %v5633_v10, %v5601_v40  ;;  %v5643_v40 = vld [vmem:[%s7404_s17 + $0x68] sm:$0xff] }
 0x515   : > { %v5862_v3 = vcombine.low %v10190_v5, %v10196_v42  ;;  %v5878_v24 = vcombine.low %v10192_v44, %v10198_v12  ;;  %v10222_v56 = vadd.f32 %v5634_v58, %v10109_v51  ;;  %v10225_v18 = vadd.f32 %v5635_v36, %v10112_v2  ;;  %v5647_v20 = vld [vmem:[%s7404_s17 + $0x88] sm:$0xff]  ;;  %v5649_v2 = vld [vmem:[%s7404_s17 + $0x98] sm:$0xff] }
 0x516   : > { %v10231_v22 = vrot.slane %v5830_v11, %v10053_v41  ;;  %v10234_v31 = vrot.slane %v5846_v39, %v10053_v41  ;;  %v10237_v25 = vadd.f32 %v5636_v38, %v10115_v49  ;;  %v10240_v51 = vadd.f32 %v5637_v0, %v10118_v34  ;;  %v5653_v49 = vld [vmem:[%s7404_s17 + $0xb8] sm:$0xff]  ;;  %v5655_v6 = vld [vmem:[%s7404_s17 + $0xc8] sm:$0xff] }
 0x517   : > { %v10246_v54 = vrot.slane %v5862_v3, %v10053_v41  ;;  %v10249_v1 = vrot.slane %v5878_v24, %v10053_v41  ;;  %v10252_v53 = vadd.f32 %v5638_v45, %v10121_v21  ;;  %v10255_v10 = vadd.f32 %v5639_v62, %v10124_v48  ;;  %v5659_v58 = vld [vmem:[%s7404_s17 + $0xe8] sm:$0xff]  ;;  %s269_s17 = sand.u32 1, %s7281_s25  }
 0x518   : > { %v5894_v34 = vcombine.low %v10231_v22, %v10234_v31  ;;  %v10263_v36 = vadd.f32 %v5640_v15, %v10127_v4  ;;  %v10266_v38 = vadd.f32 %v5641_v33, %v10130_v9  ;;  %v10269_v0 = vadd.f32 %v5642_v13, %v10133_v50  ;;  %s6414_s13 = sshll.u32 %s269_s17, 7  ;;  %s10643_s28 = scalar_lea.sflag [#allocation4], %s269_s17 }
 0x519   : > { %v5926_v21 = vcombine.low %v10246_v54, %v10249_v1  ;;  %v10274_v48 = vadd.f32 %v5643_v40, %v10136_v16  ;;  %v10277_v45 = vadd.f32 %v5644_v60, %v10139_v57  ;;  %v10280_v62 = vadd.f32 %v5645_v14, %v10142_v52  ;;  %s10599_s14 = scalar_lea.vmem [#allocation3], %s6414_s13 }
 0x51a   : > { %v10283_v4 = vrot.slane %v5894_v34, %v10056_v55  ;;  %v10286_v9 = vadd.f32 %v5647_v20, %v10150_v32  ;;  %v10289_v50 = vadd.f32 %v5649_v2, %v10154_v47  ;;  %v10292_v11 = vadd.f32 %v5651_v46, %v10161_v29  ;;  %s6348_s16 = sshll.u32 %s10599_s14, 4  ;;  %s10637_s16 = int_to_ptr.vmem [resolvable:$true] %s6348_s16 }
 0x51b   : > { %v10295_v16 = vrot.slane %v5926_v21, %v10056_v55  ;;  %v10298_v57 = vadd.f32 %v5653_v49, %v10165_v30  ;;  %v10301_v52 = vadd.f32 %v5655_v6, %v10172_v63  ;;  %v10303_v39 = vadd.f32 %v5659_v58, %v5627_v43  ;;  %s7229_s22 = scalar_lea.vmem %s10637_s16, 2048  ;;  %p7236_p0 = scmp.lt.s32.totalorder %s10637_s16, %s7234_s29 }
 0x51c   : > { %v5831_v32 = vcombine.high %v10180_v61, %v10186_v37  ;;  %v5847_v47 = vcombine.high %v10182_v59, %v10188_v19  ;;  %v5863_v29 = vcombine.high %v10190_v5, %v10196_v42  ;;  %v5879_v15 = vcombine.high %v10192_v44, %v10198_v12  ;;  %p7230_p11 = scmp.ne.s32.totalorder %s10637_s16, %s7229_s22  ;;  %p7237_p1 = scmp.lt.s32.totalorder %s7235_s8, %s7229_s22 }
 0x51d   : > { %v5959_v30 = vcombine.high %v10283_v4, %v10295_v16  ;;  %v5694_v63 = vcombine.low %v10200_v17, %v10222_v56  ;;  %v5710_v43 = vcombine.low %v10210_v23, %v10237_v25  ;;  %v5726_v61 = vcombine.low %v10252_v53, %v10269_v0 }
 0x51e   : > { %v5742_v59 = vcombine.low %v10263_v36, %v10277_v45  ;;  %v5695_v37 = vcombine.high %v10200_v17, %v10222_v56  ;;  %v5711_v19 = vcombine.high %v10210_v23, %v10237_v25  ;;  %v5727_v5 = vcombine.high %v10252_v53, %v10269_v0  ;;  %p7231_p12 = pnand %p7230_p11, %p7375_p5  ;;  %p7238_p2 = por %p7237_p1, %p7236_p0 }
 0x51f   : > { %6242 = vrot.lane.b32.xlu1 %v5959_v30, %s7292_s20  ;;  %v5702_v44 = vrot.slane %v5694_v63, %v10053_v41  ;;  %v5718_v42 = vrot.slane %v5710_v43, %v10053_v41  ;;  %v5734_v12 = vrot.slane %v5726_v61, %v10053_v41  ;;  %v5743_v33 = vcombine.high %v10263_v36, %v10277_v45 }
 0x520   : > { %v5750_v13 = vrot.slane %v5742_v59, %v10053_v41  ;;  %v5966_v17 = vcombine.low %v10202_v7, %v10225_v18  ;;  %v5967_v23 = vcombine.high %v10202_v7, %v10225_v18  ;;  %v5982_v3 = vcombine.low %v10212_v8, %v10240_v51  ;;  %p7232_p13 = pneg %p7231_p12 }
 0x521   : > { %v5758_v24 = vcombine.low %v5702_v44, %v5718_v42  ;;  %v5983_v56 = vcombine.high %v10212_v8, %v10240_v51  ;;  %v5998_v40 = vcombine.low %v10255_v10, %v10274_v48  ;;  %v5999_v60 = vcombine.high %v10255_v10, %v10274_v48 }
 0x522   : > { %v5790_v14 = vcombine.low %v5734_v12, %v5750_v13  ;;  %v6014_v25 = vcombine.low %v10266_v38, %v10280_v62  ;;  %v6102_v2 = vcombine.low %v10286_v9, %v10292_v11  ;;  %v6103_v53 = vcombine.high %v10286_v9, %v10292_v11  ;;  %p7239_p3 = pnand %p7238_p2, %p7232_p13 }
 0x523   : > { %v10355_v46 = vrot.slane %v5758_v24, %v10056_v55  ;;  %v6118_v49 = vcombine.low %v10289_v50, %v10298_v57  ;;  %v6119_v6 = vcombine.high %v10289_v50, %v10298_v57  ;;  %v6134_v34 = vcombine.low %v10301_v52, %v10303_v39 }
 0x524   : > { %v10364_v58 = vrot.slane %v5790_v14, %v10056_v55  ;;  %v6135_v36 = vcombine.high %v10301_v52, %v10303_v39  ;;  %v5895_v0 = vcombine.high %v10231_v22, %v10234_v31  ;;  %v5927_v21 = vcombine.high %v10246_v54, %v10249_v1 }
 0x525   : > { %v5759_v45 = vcombine.high %v5702_v44, %v5718_v42  ;;  %v5791_v30 = vcombine.high %v5734_v12, %v5750_v13  ;;  %v5845_v63 = vrot.slane %v5831_v32, %v10053_v41  ;;  %v5861_v59 = vrot.slane %v5847_v47, %v10053_v41 }
 0x526   : > { %v5823_v43 = vcombine.high %v10355_v46, %v10364_v58  ;;  %v10378_v61 = vrot.slane %v5895_v0, %v10056_v55  ;;  %v5877_v24 = vrot.slane %v5863_v29, %v10053_v41  ;;  %v10383_v14 = vrot.slane %v5927_v21, %v10056_v55 }
 0x527   : > { %v10386_v22 = vrot.slane %v5759_v45, %v10056_v55  ;;  %v10389_v31 = vrot.slane %v5791_v30, %v10056_v55  ;;  %v5893_v54 = vrot.slane %v5879_v15, %v10053_v41  ;;  %v5910_v1 = vcombine.low %v5845_v63, %v5861_v59 }
 0x528   : > { %6240 = vrot.lane.b32.xlu0 %v5823_v43, %s7292_s20  ;;  %v5709_v32 = vrot.slane %v5695_v37, %v10053_v41  ;;  %v5725_v47 = vrot.slane %v5711_v19, %v10053_v41  ;;  %v5741_v29 = vrot.slane %v5727_v5, %v10053_v41  ;;  %v5961_v44 = vcombine.high %v10378_v61, %v10383_v14 }
 0x529   : > { %v5825_v42 = vcombine.high %v10386_v22, %v10389_v31  ;;  %v5942_v12 = vcombine.low %v5877_v24, %v5893_v54  ;;  %v5757_v13 = vrot.slane %v5743_v33, %v10053_v41  ;;  %v10402_v15 = vrot.slane %v5910_v1, %v10056_v55 }
 0x52a   : > { %v5774_v0 = vcombine.low %v5709_v32, %v5725_v47  ;;  %v5911_v21 = vcombine.high %v5845_v63, %v5861_v59  ;;  %v5943_v45 = vcombine.high %v5877_v24, %v5893_v54  ;;  %6250 = vrot.lane.b32.xlu1 %v5961_v44, %s7292_s20  ;;  %v5775_v5 = vcombine.high %v5709_v32, %v5725_v47 }
 0x52b   : > { %v10406_v37 = vrot.slane %v5942_v12, %v10056_v55  ;;  %v5806_v19 = vcombine.low %v5741_v29, %v5757_v13  ;;  %v5807_v30 = vcombine.high %v5741_v29, %v5757_v13  ;;  %v6110_v63 = vrot.slane %v6102_v2, %v10053_v41 }
 0x52c   : > { %6248 = vrot.lane.b32.xlu0 %v5825_v42, %s7292_s20  ;;  %v10410_v43 = vrot.slane %v5774_v0, %v10056_v55  ;;  %v10413_v33 = vrot.slane %v5911_v21, %v10056_v55  ;;  %v10416_v1 = vrot.slane %v5943_v45, %v10056_v55  ;;  %v10425_v54 = vrot.slane %v5775_v5, %v10056_v55 }
 0x52d   : > { %v5963_v59 = vcombine.high %v10402_v15, %v10406_v37  ;;  %v10422_v24 = vrot.slane %v5806_v19, %v10056_v55  ;;  %v10428_v32 = vrot.slane %v5807_v30, %v10056_v55  ;;  %v6126_v29 = vrot.slane %v6118_v49, %v10053_v41 }
 0x52e   : > { %v5965_v47 = vcombine.high %v10413_v33, %v10416_v1  ;;  %v6142_v44 = vrot.slane %v6134_v34, %v10053_v41  ;;  %v6158_v2 = vrot.slane %v6150_v26, %v10053_v41  ;;  %v5974_v49 = vrot.slane %v5966_v17, %v10053_v41 }
 0x52f   : > { %6258 = vrot.lane.b32.xlu1 %v5963_v59, %s7292_s20  ;;  %v5827_v42 = vcombine.high %v10410_v43, %v10422_v24  ;;  %v5829_v12 = vcombine.high %v10425_v54, %v10428_v32  ;;  %v5990_v34 = vrot.slane %v5982_v3, %v10053_v41  ;;  %v6166_v13 = vcombine.low %v6110_v63, %v6126_v29 }
 0x530   : > { %v6198_v26 = vcombine.low %v6142_v44, %v6158_v2  ;;  %v6006_v0 = vrot.slane %v5998_v40, %v10053_v41  ;;  %v6022_v21 = vrot.slane %v6014_v25, %v10053_v41  ;;  %v6167_v19 = vcombine.high %v6110_v63, %v6126_v29 }
 0x531   : > { %6256 = vrot.lane.b32.xlu0 %v5827_v42, %s7292_s20  ;;  %v6030_v45 = vcombine.low %v5974_v49, %v5990_v34  ;;  %v6199_v5 = vcombine.high %v6142_v44, %v6158_v2  ;;  %v6031_v17 = vcombine.high %v5974_v49, %v5990_v34  ;;  %v10458_v30 = vrot.slane %v6166_v13, %v10056_v55 }
 0x532   : > { %v10461_v3 = vrot.slane %v6198_v26, %v10056_v55  ;;  %v6062_v59 = vcombine.low %v6006_v0, %v6022_v21  ;;  %v6063_v20 = vcombine.high %v6006_v0, %v6022_v21  ;;  %v10468_v25 = vrot.slane %v6167_v19, %v10056_v55 }
 0x533   : > { %6266 = vrot.lane.b32.xlu1 %v5965_v47, %s7292_s20  ;;  %v10465_v40 = vrot.slane %v6030_v45, %v10056_v55  ;;  %v10471_v63 = vrot.slane %v6199_v5, %v10056_v55  ;;  %v10474_v29 = vrot.slane %v6031_v17, %v10056_v55  ;;  %v6117_v42 = vrot.slane %v6103_v53, %v10053_v41 }
 0x534   : > { %v6231_v44 = vcombine.high %v10458_v30, %v10461_v3  ;;  %v10479_v2 = vrot.slane %v6062_v59, %v10056_v55  ;;  %v10482_v47 = vrot.slane %v6063_v20, %v10056_v55  ;;  %v6133_v34 = vrot.slane %v6119_v6, %v10053_v41 }
 0x535   : > { %6264 = vrot.lane.b32.xlu0 %v5829_v12, %s7292_s20  ;;  %v6233_v49 = vcombine.high %v10468_v25, %v10471_v63  ;;  %v6149_v20 = vrot.slane %v6135_v36, %v10053_v41  ;;  %v6165_v9 = vrot.slane %v6151_v27, %v10053_v41  ;;  %v5981_v50 = vrot.slane %v5967_v23, %v10053_v41 }
 0x536   : > { %v6095_v11 = vcombine.high %v10465_v40, %v10479_v2  ;;  %v6097_v53 = vcombine.high %v10474_v29, %v10482_v47  ;;  %v5997_v57 = vrot.slane %v5983_v56, %v10053_v41  ;;  %v6182_v28 = vcombine.low %v6117_v42, %v6133_v34 }
 0x537   : > { %6274 = vrot.lane.b32.xlu1 %v6231_v44, %s7292_s20  ;;  %v6214_v35 = vcombine.low %v6149_v20, %v6165_v9  ;;  %v6013_v27 = vrot.slane %v5999_v60, %v10053_v41  ;;  %v10819_v52 = vcombine.high %v10266_v38, %v10280_v62  ;;  %v6183_v39 = vcombine.high %v6117_v42, %v6133_v34 }
 0x538   : > { %v6046_v18 = vcombine.low %v5981_v50, %v5997_v57  ;;  %v6215_v23 = vcombine.high %v6149_v20, %v6165_v9  ;;  %v6047_v6 = vcombine.high %v5981_v50, %v5997_v57  ;;  %v10526_v8 = vrot.slane %v6182_v28, %v10056_v55 }
 0x539   : > { %v6029_v7 = vrot.slane %v10819_v52, %v10053_v41  ;;  %6272 = vrot.lane.b32.xlu0 %v6095_v11, %s7292_s20  ;;  %v10529_v51 = vrot.slane %v6214_v35, %v10056_v55  ;;  %v10535_v38 = vrot.slane %v6183_v39, %v10056_v55  ;;  %v5958_v13 = vcombine.low %v10283_v4, %v10295_v16 }
 0x53a   : > { %v10532_v48 = vrot.slane %v6046_v18, %v10056_v55  ;;  %v10538_v41 = vrot.slane %v6215_v23, %v10056_v55  ;;  %v10541_v62 = vrot.slane %v6047_v6, %v10056_v55  ;;  %v5822_v0 = vcombine.low %v10355_v46, %v10364_v58 }
 0x53b   : > { %v6078_v56 = vcombine.low %v6013_v27, %v6029_v7  ;;  %v6079_v10 = vcombine.high %v6013_v27, %v6029_v7  ;;  %6282 = vrot.lane.b32.xlu1 %v6233_v49, %s7292_s20  ;;  %v6235_v60 = vcombine.high %v10526_v8, %v10529_v51  ;;  %v5960_v21 = vcombine.low %v10378_v61, %v10383_v14 }
 0x53c   : > { %v6237_v26 = vcombine.high %v10535_v38, %v10538_v41  ;;  %v5824_v45 = vcombine.low %v10386_v22, %v10389_v31  ;;  %v5962_v16 = vcombine.low %v10402_v15, %v10406_v37  ;;  %v5826_v46 = vcombine.low %v10410_v43, %v10422_v24 }
 0x53d   : > { %v10547_v36 = vrot.slane %v6078_v56, %v10056_v55  ;;  %v10550_v12 = vrot.slane %v6079_v10, %v10056_v55  ;;  %6280 = vrot.lane.b32.xlu0 %v6097_v53, %s7292_s20  ;;  %v5964_v58 = vcombine.low %v10413_v33, %v10416_v1  ;;  %v5828_v61 = vcombine.low %v10425_v54, %v10428_v32 }
 0x53e   : > { %v6230_v14 = vcombine.low %v10458_v30, %v10461_v3  ;;  %v6094_v22 = vcombine.low %v10465_v40, %v10479_v2  ;;  %v6232_v31 = vcombine.low %v10468_v25, %v10471_v63  ;;  %v6096_v15 = vcombine.low %v10474_v29, %v10482_v47 }
 0x53f   : > { %v6099_v55 = vcombine.high %v10532_v48, %v10547_v36  ;;  %v6101_v4 = vcombine.high %v10541_v62, %v10550_v12  ;;  %6290 = vrot.lane.b32.xlu1 %v6235_v60, %s7292_s20  ;;  %v6234_v37 = vcombine.low %v10526_v8, %v10529_v51  ;;  %v6098_v43 = vcombine.low %v10532_v48, %v10547_v36 }
 0x540   : > { %v6236_v33 = vcombine.low %v10535_v38, %v10538_v41  ;;  %v6100_v1 = vcombine.low %v10541_v62, %v10550_v12 }
 0x541   : > { %6288 = vrot.lane.b32.xlu0 %v6099_v55, %s7292_s20 }
 0x543   : > { %6298 = vrot.lane.b32.xlu1 %v6237_v26, %s7292_s20 }
 0x545   : > { %6296 = vrot.lane.b32.xlu0 %v6101_v4, %s7292_s20 }
 0x591   : > { %v6243_v24 = vpop.permute.xlu1 %6242 }
 0x592   : > { %v6303_v54 = vsel %vm1577_vm2, %v5958_v13, %v6243_v24 }
 0x593   : > { %6326 = vst [vmem:[%s10599_s14 + $0x40] sm:$0xff] %v6303_v54 }
 0x59a   : > { %v6241_v32 = vpop.permute.xlu0 %6240 }
 0x59b   : > { %v6302_v19 = vsel %vm1577_vm2, %v5822_v0, %v6241_v32 }
 0x59c   : > { %6318 = vst [vmem:[%s10599_s14] sm:$0xff] %v6302_v19  ;;  %v6251_v5 = vpop.permute.xlu1 %6250 }
 0x59d   : > { %v6305_v17 = vsel %vm1577_vm2, %v5960_v21, %v6251_v5 }
 0x59e   : > { %v6249_v30 = vpop.permute.xlu0 %6248  ;;  %6327 = vst [vmem:[%s10599_s14 + $0x48] sm:$0xff] %v6305_v17 }
 0x59f   : > { %v6304_v3 = vsel %vm1577_vm2, %v5824_v45, %v6249_v30 }
 0x5a0   : > { %6319 = vst [vmem:[%s10599_s14 + $0x8] sm:$0xff] %v6304_v3 }
 0x5a1   : > { %v6259_v59 = vpop.permute.xlu1 %6258 }
 0x5a2   : > { %v6307_v40 = vsel %vm1577_vm2, %v5962_v16, %v6259_v59 }
 0x5a3   : > { %6328 = vst [vmem:[%s10599_s14 + $0x50] sm:$0xff] %v6307_v40  ;;  %v6257_v25 = vpop.permute.xlu0 %6256 }
 0x5a4   : > { %v6306_v63 = vsel %vm1577_vm2, %v5826_v46, %v6257_v25 }
 0x5a5   : > { %6320 = vst [vmem:[%s10599_s14 + $0x10] sm:$0xff] %v6306_v63  ;;  %v6267_v29 = vpop.permute.xlu1 %6266 }
 0x5a6   : > { %v6309_v44 = vsel %vm1577_vm2, %v5964_v58, %v6267_v29 }
 0x5a7   : > { %6329 = vst [vmem:[%s10599_s14 + $0x58] sm:$0xff] %v6309_v44  ;;  %v6265_v2 = vpop.permute.xlu0 %6264 }
 0x5a8   : > { %v6308_v47 = vsel %vm1577_vm2, %v5828_v61, %v6265_v2 }
 0x5a9   : > { %6321 = vst [vmem:[%s10599_s14 + $0x18] sm:$0xff] %v6308_v47  ;;  %v6275_v42 = vpop.permute.xlu1 %6274 }
 0x5aa   : > { %v6311_v49 = vsel %vm1577_vm2, %v6230_v14, %v6275_v42 }
 0x5ab   : > { %6330 = vst [vmem:[%s10599_s14 + $0x60] sm:$0xff] %v6311_v49  ;;  %v6273_v34 = vpop.permute.xlu0 %6272 }
 0x5ac   : > { %v6310_v20 = vsel %vm1577_vm2, %v6094_v22, %v6273_v34 }
 0x5ad   : > { %6322 = vst [vmem:[%s10599_s14 + $0x20] sm:$0xff] %v6310_v20  ;;  %v6283_v9 = vpop.permute.xlu1 %6282 }
 0x5ae   : > { %v6313_v11 = vsel %vm1577_vm2, %v6232_v31, %v6283_v9 }
 0x5af   : > { %6331 = vst [vmem:[%s10599_s14 + $0x68] sm:$0xff] %v6313_v11  ;;  %v6281_v53 = vpop.permute.xlu0 %6280 }
 0x5b0   : > { %v6312_v50 = vsel %vm1577_vm2, %v6096_v15, %v6281_v53 }
 0x5b1   : > { %6323 = vst [vmem:[%s10599_s14 + $0x28] sm:$0xff] %v6312_v50  ;;  %v6291_v57 = vpop.permute.xlu1 %6290 }
 0x5b2   : > { %v6315_v28 = vsel %vm1577_vm2, %v6234_v37, %v6291_v57 }
 0x5b3   : > { %6332 = vst [vmem:[%s10599_s14 + $0x70] sm:$0xff] %v6315_v28  ;;  %v6289_v35 = vpop.permute.xlu0 %6288 }
 0x5b4   : > { %v6314_v27 = vsel %vm1577_vm2, %v6098_v43, %v6289_v35 }
 0x5b5   : > { %6324 = vst [vmem:[%s10599_s14 + $0x30] sm:$0xff] %v6314_v27  ;;  %v6299_v52 = vpop.permute.xlu1 %6298 }
 0x5b6   : > { %v6317_v7 = vsel %vm1577_vm2, %v6236_v33, %v6299_v52 }
 0x5b7   : > { %6333 = vst [vmem:[%s10599_s14 + $0x78] sm:$0xff] %v6317_v7  ;;  %v6297_v18 = vpop.permute.xlu0 %6296 }
 0x5b8   : > { %v6316_v39 = vsel %vm1577_vm2, %v6100_v1, %v6297_v18 }
 0x5b9   : > { %6325 = vst [vmem:[%s10599_s14 + $0x38] sm:$0xff] %v6316_v39 }
 0x5ba   : > { %7242 = shalt.err (!%p7239_p3)
}
 0x5bb   : > { %s7243_s9 = scalar_lea.hbm %s10634_s21, 2048  ;;  %s7247_s14 = scalar_lea.hbm %s10691_s7, 4096 }
 0x5bc   : > { %p7244_p4 = scmp.ne.s32.totalorder %s10634_s21, %s7243_s9  ;;  %p7248_p9 = scmp.lt.s32.totalorder %s10634_s21, %s10691_s7 }
 0x5bd   : > { %p7249_p10 = scmp.lt.s32.totalorder %s7247_s14, %s7243_s9 }
 0x5be   : > { %p7245_p7 = pnand %p7244_p4, %p7375_p5 }
 0x5bf   : > { %p7250_p11 = por %p7249_p10, %p7248_p9 }
 0x5c0   : > { %p7246_p8 = pneg %p7245_p7 }
 0x5c2   : > { %p7251_p12 = pnand %p7250_p11, %p7246_p8 }
 0x5c4   : > { %7254 = shalt.err (!%p7251_p12)
}
 0x5c5   : > { %s7296_s19 = smov 1024  }
 0x5c6   : > { %7008 = dma.vmem_to_hbm [thread:$0]  (%p7375_p5), %s10637_s16, 2048, %s10634_s21, %s10643_s28, %s7296_s19, %s7296_s19, %s7292_s20  }
 0x5c7 PF: > { %p7014_p13 = scmp.ge.s32.totalorder %s7289_s27, 2  ;;  %s6363_s22 = sand.u32 1, %s7277_s24  }
 0x5c8   : > { %s6364_s23 = scalar_lea.sflag [#allocation4], %s6363_s22 }
 0x5c9   : > { %p7011_p0 = pnand %p7014_p13, %p7379_p6 }
 0x5cb   : > { %p7012_p1 = pneg %p7011_p0 }
 0x5cd   : > { %7272 = dma.done.wait (%p7012_p1), %s6364_s23, 2048  }
 0x5ce   : > { %7274 = vsyncadd (%p7012_p1), %s6364_s23, 4294965248  ;;  %p17_p2 = scmp.ge.s32.totalorder %s7362_s30, 4   ;;  %s10820_s24 = smov %s7281_s25 }
 0x5cf   : > { %s10821_s25 = smov %s7285_s26  ;;  %s10822_s26 = smov %s7373_s10 }
 0x5d0   : > { %s10823_s27 = smov %s7362_s30  ;;  %19 = sbr.rel (!%p17_p2) target bundleno = 3 (0x3), region = 90 }
 0x5d5   :  { %6369 = vsyncpa [#allocation4], 1 }
 0x5d6   :  { %6371 = vsyncpa [#allocation4 + $0x1], 1 }

</bundles_post_ra>
